<compile_context>
chip_gen: v6e
topology: v6e:2x2x1
jax: 0.10.0
libtpu: 0.0.40
codegen_flags: <defaults>
</compile_context>

<pallas_src>
import jax
import jax.numpy as jnp
import numpy as np
from jax.experimental import pallas as pl
from jax.experimental.pallas import tpu as pltpu

DEPTH = 4
CH = 8
MAX_CHANNELS = 32
IN_CHANNELS = 4
H0 = 16
W0 = 16


def _stage_plan(h0, w0):
    plan = []
    h, w = h0, w0
    cin, cout = IN_CHANNELS, CH
    for bi in range(DEPTH):
        plan.append((h, w, cin, cout))
        if bi < DEPTH - 1:
            h, w = h // 2, w // 2
        cin, cout = cout, min(2 * cout, MAX_CHANNELS)
    return tuple(plan)


# ((16,16,4,8), (8,8,8,16), (4,4,16,32), (2,2,32,32))
STAGES = _stage_plan(H0, W0)
_N_CONV_REFS = 4 * DEPTH              # (Wb, bias) x 2 convs per stage
_N_POOL_REFS = 2 * (DEPTH - 1)        # (row-selector, col-selector) per pooled stage
_N_IN = 1 + _N_CONV_REFS + _N_POOL_REFS


# ----------------------------------------------------------------------------
# Fused encoder kernel: one invocation per batch image (grid=(N,)).
# All activations use the lane-dense folded layout (H, W*C).
# ----------------------------------------------------------------------------
def _encoder_kernel(*refs):
    x_ref = refs[0]
    conv_refs = refs[1:1 + _N_CONV_REFS]
    pool_refs = refs[1 + _N_CONV_REFS:_N_IN]
    out_refs = refs[_N_IN:_N_IN + DEPTH]
    pad_refs = refs[_N_IN + DEPTH:_N_IN + DEPTH + 2 * DEPTH]

    def conv3x3_relu(pad_ref, x2d, w_ref, b_ref, hs):
        # pad_ref: (hs+2, W*Cin) VMEM scratch (vertical zero halo)
        # x2d:     (hs,   W*Cin) folded input plane
        # w_ref:   (3, W*Cin, W*Cout) banded folded weights; b_ref: (1, W*Cout)
        pad_ref[...] = jnp.zeros(pad_ref.shape, jnp.float32)
        pad_ref[1:hs + 1, :] = x2d
        acc = jnp.dot(pad_ref[0:hs, :], w_ref[0], preferred_element_type=jnp.float32)
        acc = acc + jnp.dot(pad_ref[1:hs + 1, :], w_ref[1],
                            preferred_element_type=jnp.float32)
        acc = acc + jnp.dot(pad_ref[2:hs + 2, :], w_ref[2],
                            preferred_element_type=jnp.float32)
        return jnp.maximum(acc + b_ref[...], 0.0)

    def maxpool2x2(x2d, sv_ref, sh_ref):
        # x2d: (H, W*C); sv_ref: (2, H/2, H) row selectors; sh_ref: (2, W*C, (W/2)*C)
        v = jnp.maximum(
            jnp.dot(sv_ref[0], x2d, preferred_element_type=jnp.float32),
            jnp.dot(sv_ref[1], x2d, preferred_element_type=jnp.float32))
        return jnp.maximum(
            jnp.dot(v, sh_ref[0], preferred_element_type=jnp.float32),
            jnp.dot(v, sh_ref[1], preferred_element_type=jnp.float32))

    x = x_ref[0]                                     # (H0, W0*Cin) folded input plane
    for si, (hs, ws, _ci, _co) in enumerate(STAGES):
        w_a, b_a = conv_refs[4 * si + 0], conv_refs[4 * si + 1]
        w_b, b_b = conv_refs[4 * si + 2], conv_refs[4 * si + 3]
        c = conv3x3_relu(pad_refs[2 * si + 0], x, w_a, b_a, hs)       # ConvBlock 1
        c = conv3x3_relu(pad_refs[2 * si + 1], c, w_b, b_b, hs)       # ConvBlock 2
        out_refs[si][0] = c.astype(out_refs[si].dtype)                # lane-dense skip out
        if si < DEPTH - 1:                                            # MaxPool2d(2,2)
            x = maxpool2x2(c, pool_refs[2 * si], pool_refs[2 * si + 1])


# ----------------------------------------------------------------------------
# Host-side parameter folding (done once, outside the kernel)
# ----------------------------------------------------------------------------
def _fold_conv(w_hwio, b, w_cols):
    """Fold an HWIO 3x3 conv into 3 banded matrices acting on the folded (H, W*C) layout."""
    cin, cout = w_hwio.shape[2], w_hwio.shape[3]
    wm = np.zeros((3, w_cols * cin, w_cols * cout), np.float32)
    for dy in range(3):
        for dx in range(3):
            for wo in range(w_cols):
                wi = wo + dx - 1
                if 0 <= wi < w_cols:
                    wm[dy, wi * cin:(wi + 1) * cin,
                       wo * cout:(wo + 1) * cout] = w_hwio[dy, dx]
    bm = np.tile(np.asarray(b, np.float32), w_cols).reshape(1, w_cols * cout)
    return wm, bm


def _pool_selectors(hs, ws, c):
    """Exact 0/1 selection matrices so 2x2 maxpool = 4 matmuls + 2 elementwise maxes."""
    ho, wo = hs // 2, ws // 2
    sv = np.zeros((2, ho, hs), np.float32)
    for i in range(ho):
        sv[0, i, 2 * i] = 1.0
        sv[1, i, 2 * i + 1] = 1.0
    sh = np.zeros((2, ws * c, wo * c), np.float32)
    for j in range(wo):
        for cc in range(c):
            sh[0, (2 * j) * c + cc, j * c + cc] = 1.0
            sh[1, (2 * j + 1) * c + cc, j * c + cc] = 1.0
    return sv, sh


def prepare_params(params):
    """Pre-reshape the raw HWIO conv params into kernel-ready banded operands (host-side)."""
    ops = []
    for si, (hs, ws, _ci, _co) in enumerate(STAGES):
        p = params[f"block{si}"]
        wm0, bm0 = _fold_conv(np.asarray(p["w0"]), np.asarray(p["b0"]), ws)
        wm1, bm1 = _fold_conv(np.asarray(p["w1"]), np.asarray(p["b1"]), ws)
        ops += [jnp.asarray(wm0), jnp.asarray(bm0), jnp.asarray(wm1), jnp.asarray(bm1)]
    for si in range(DEPTH - 1):
        hs, ws, _ci, co = STAGES[si]
        sv, sh = _pool_selectors(hs, ws, co)
        ops += [jnp.asarray(sv), jnp.asarray(sh)]
    return tuple(ops)


# ----------------------------------------------------------------------------
# Forward pass
# ----------------------------------------------------------------------------
@jax.jit
def _forward_jit(x_nchw, folded):
    n, cin, h, w = x_nchw.shape
    x_folded = jnp.transpose(x_nchw, (0, 2, 3, 1)).reshape(n, h, w * cin)

    in_specs = [pl.BlockSpec((1, h, w * cin), lambda i: (i, 0, 0))]
    for a in folded:
        if a.ndim == 3:
            in_specs.append(pl.BlockSpec(a.shape, lambda i: (0, 0, 0)))
        else:
            in_specs.append(pl.BlockSpec(a.shape, lambda i: (0, 0)))

    out_shapes, out_specs, scratch = [], [], []
    for (hs, ws, ci, co) in STAGES:
        out_shapes.append(jax.ShapeDtypeStruct((n, hs, ws * co), jnp.float32))
        out_specs.append(pl.BlockSpec((1, hs, ws * co), lambda i: (i, 0, 0)))
        scratch.append(pltpu.VMEM((hs + 2, ws * ci), jnp.float32))   # conv A padded plane
        scratch.append(pltpu.VMEM((hs + 2, ws * co), jnp.float32))   # conv B padded plane

    outs = pl.pallas_call(
        _encoder_kernel,
        out_shape=tuple(out_shapes),
        grid=(n,),
        in_specs=in_specs,
        out_specs=tuple(out_specs),
        scratch_shapes=tuple(scratch),
        compiler_params=pltpu.CompilerParams(dimension_semantics=("parallel",)),
    )(x_folded, *folded)

    results = []
    for o, (hs, ws, _ci, co) in zip(outs, STAGES):
        results.append(jnp.transpose(o.reshape(n, hs, ws, co), (0, 3, 1, 2)))
    return results[::-1]


def unet_encoder_forward(x_nchw, folded_params, backbone_features=None):
    """Mirrors UNetEncoder.forward (depth=4, backbone_from=-1 -> no connectors, no norm)."""
    del backbone_features  # backbone_from=-1: the connector path is never instantiated
    assert x_nchw.shape[1:] == (IN_CHANNELS, H0, W0), x_nchw.shape
    return list(_forward_jit(x_nchw, folded_params))


# ----------------------------------------------------------------------------
# Parameter construction (deterministic, synthetic) and pure-JAX reference
# ----------------------------------------------------------------------------
def init_params(key):
    params = {}
    for si, (_hs, _ws, cin, cout) in enumerate(STAGES):
        key, k0, k1, k2, k3 = jax.random.split(key, 5)
        params[f"block{si}"] = {
            "w0": 0.1 * jax.random.normal(k0, (3, 3, cin, cout), jnp.float32),
            "b0": 0.1 * jax.random.normal(k1, (cout,), jnp.float32),
            "w1": 0.1 * jax.random.normal(k2, (3, 3, cout, cout), jnp.float32),
            "b1": 0.1 * jax.random.normal(k3, (cout,), jnp.float32),
        }
    return params


def _ref_conv_relu(x, w, b):
    y = jax.lax.conv_general_dilated(
        x, w, window_strides=(1, 1), padding="SAME",
        dimension_numbers=("NHWC", "HWIO", "NHWC"))
    return jnp.maximum(y + b[None, None, None, :], 0.0)


def unet_encoder_ref(x_nchw, params):
    x = jnp.transpose(x_nchw, (0, 2, 3, 1))
    outputs, h = [], x
    for bi in range(DEPTH):
        p = params[f"block{bi}"]
        c = _ref_conv_relu(h, p["w0"], p["b0"])
        c = _ref_conv_relu(c, p["w1"], p["b1"])
        outputs.append(c)
        if bi < DEPTH - 1:
            h = jax.lax.reduce_window(c, -jnp.inf, jax.lax.max,
                                      (1, 2, 2, 1), (1, 2, 2, 1), "VALID")
        else:
            h = c
    return [jnp.transpose(o, (0, 3, 1, 2)) for o in outputs[::-1]]


# ----------------------------------------------------------------------------
if __name__ == "__main__":
    key = jax.random.PRNGKey(0)
    key, kx = jax.random.split(key)
    # PyTorch input convention is NCHW; UNetEncoder expects 4 input channels.
    x = jax.random.normal(kx, (2, IN_CHANNELS, H0, W0), jnp.float32)
    params = init_params(key)
    folded = prepare_params(params)

    outs = unet_encoder_forward(x, folded, backbone_features=None)
    outs = jax.block_until_ready(outs)

    refs = unet_encoder_ref(x, params)
    assert len(outs) == DEPTH
    for o, r in zip(outs, refs):
        assert o.shape == r.shape, (o.shape, r.shape)
        np.testing.assert_allclose(np.asarray(o), np.asarray(r), rtol=1e-4, atol=1e-4)

    # Expected output shapes (reversed order, NCHW):
    # [(2,32,2,2), (2,32,4,4), (2,16,8,8), (2,8,16,16)]
    print("KERNEL_OK")
</pallas_src>

<mosaic_0001>
module attributes {stable_mosaic.version = 11 : i64} {
  func.func @_encoder_kernel(%arg0: i32, %arg1: memref<1x16x64xf32, #tpu.memory_space<vmem>>, %arg2: memref<3x64x128xf32, #tpu.memory_space<vmem>>, %arg3: memref<1x128xf32, #tpu.memory_space<vmem>>, %arg4: memref<3x128x128xf32, #tpu.memory_space<vmem>>, %arg5: memref<1x128xf32, #tpu.memory_space<vmem>>, %arg6: memref<3x64x128xf32, #tpu.memory_space<vmem>>, %arg7: memref<1x128xf32, #tpu.memory_space<vmem>>, %arg8: memref<3x128x128xf32, #tpu.memory_space<vmem>>, %arg9: memref<1x128xf32, #tpu.memory_space<vmem>>, %arg10: memref<3x64x128xf32, #tpu.memory_space<vmem>>, %arg11: memref<1x128xf32, #tpu.memory_space<vmem>>, %arg12: memref<3x128x128xf32, #tpu.memory_space<vmem>>, %arg13: memref<1x128xf32, #tpu.memory_space<vmem>>, %arg14: memref<3x64x64xf32, #tpu.memory_space<vmem>>, %arg15: memref<1x64xf32, #tpu.memory_space<vmem>>, %arg16: memref<3x64x64xf32, #tpu.memory_space<vmem>>, %arg17: memref<1x64xf32, #tpu.memory_space<vmem>>, %arg18: memref<2x8x16xf32, #tpu.memory_space<vmem>>, %arg19: memref<2x128x64xf32, #tpu.memory_space<vmem>>, %arg20: memref<2x4x8xf32, #tpu.memory_space<vmem>>, %arg21: memref<2x128x64xf32, #tpu.memory_space<vmem>>, %arg22: memref<2x2x4xf32, #tpu.memory_space<vmem>>, %arg23: memref<2x128x64xf32, #tpu.memory_space<vmem>>, %arg24: memref<1x16x128xf32, #tpu.memory_space<vmem>>, %arg25: memref<1x8x128xf32, #tpu.memory_space<vmem>>, %arg26: memref<1x4x128xf32, #tpu.memory_space<vmem>>, %arg27: memref<1x2x64xf32, #tpu.memory_space<vmem>>, %arg28: memref<18x64xf32, #tpu.memory_space<vmem>>, %arg29: memref<18x128xf32, #tpu.memory_space<vmem>>, %arg30: memref<10x64xf32, #tpu.memory_space<vmem>>, %arg31: memref<10x128xf32, #tpu.memory_space<vmem>>, %arg32: memref<6x64xf32, #tpu.memory_space<vmem>>, %arg33: memref<6x128xf32, #tpu.memory_space<vmem>>, %arg34: memref<4x64xf32, #tpu.memory_space<vmem>>, %arg35: memref<4x64xf32, #tpu.memory_space<vmem>>) attributes {dimension_semantics = [#tpu.dimension_semantics<parallel>], iteration_bounds = array<i64: 2>, scalar_prefetch = 0 : i64, scratch_operands = 8 : i64, tpu.core_type = #tpu.core_type<tc>, window_params = [{transform_indices = @transform_0, window_bounds = array<i64: 1, 16, 64>}, {pipeline_mode = #tpu.pipeline_mode<synchronous>, transform_indices = @transform_1, window_bounds = array<i64: 3, 64, 128>}, {pipeline_mode = #tpu.pipeline_mode<synchronous>, transform_indices = @transform_2, window_bounds = array<i64: 1, 128>}, {pipeline_mode = #tpu.pipeline_mode<synchronous>, transform_indices = @transform_3, window_bounds = array<i64: 3, 128, 128>}, {pipeline_mode = #tpu.pipeline_mode<synchronous>, transform_indices = @transform_4, window_bounds = array<i64: 1, 128>}, {pipeline_mode = #tpu.pipeline_mode<synchronous>, transform_indices = @transform_5, window_bounds = array<i64: 3, 64, 128>}, {pipeline_mode = #tpu.pipeline_mode<synchronous>, transform_indices = @transform_6, window_bounds = array<i64: 1, 128>}, {pipeline_mode = #tpu.pipeline_mode<synchronous>, transform_indices = @transform_7, window_bounds = array<i64: 3, 128, 128>}, {pipeline_mode = #tpu.pipeline_mode<synchronous>, transform_indices = @transform_8, window_bounds = array<i64: 1, 128>}, {pipeline_mode = #tpu.pipeline_mode<synchronous>, transform_indices = @transform_9, window_bounds = array<i64: 3, 64, 128>}, {pipeline_mode = #tpu.pipeline_mode<synchronous>, transform_indices = @transform_10, window_bounds = array<i64: 1, 128>}, {pipeline_mode = #tpu.pipeline_mode<synchronous>, transform_indices = @transform_11, window_bounds = array<i64: 3, 128, 128>}, {pipeline_mode = #tpu.pipeline_mode<synchronous>, transform_indices = @transform_12, window_bounds = array<i64: 1, 128>}, {pipeline_mode = #tpu.pipeline_mode<synchronous>, transform_indices = @transform_13, window_bounds = array<i64: 3, 64, 64>}, {pipeline_mode = #tpu.pipeline_mode<synchronous>, transform_indices = @transform_14, window_bounds = array<i64: 1, 64>}, {pipeline_mode = #tpu.pipeline_mode<synchronous>, transform_indices = @transform_15, window_bounds = array<i64: 3, 64, 64>}, {pipeline_mode = #tpu.pipeline_mode<synchronous>, transform_indices = @transform_16, window_bounds = array<i64: 1, 64>}, {pipeline_mode = #tpu.pipeline_mode<synchronous>, transform_indices = @transform_17, window_bounds = array<i64: 2, 8, 16>}, {pipeline_mode = #tpu.pipeline_mode<synchronous>, transform_indices = @transform_18, window_bounds = array<i64: 2, 128, 64>}, {pipeline_mode = #tpu.pipeline_mode<synchronous>, transform_indices = @transform_19, window_bounds = array<i64: 2, 4, 8>}, {pipeline_mode = #tpu.pipeline_mode<synchronous>, transform_indices = @transform_20, window_bounds = array<i64: 2, 128, 64>}, {pipeline_mode = #tpu.pipeline_mode<synchronous>, transform_indices = @transform_21, window_bounds = array<i64: 2, 2, 4>}, {pipeline_mode = #tpu.pipeline_mode<synchronous>, transform_indices = @transform_22, window_bounds = array<i64: 2, 128, 64>}, {transform_indices = @transform_23, window_bounds = array<i64: 1, 16, 128>}, {transform_indices = @transform_24, window_bounds = array<i64: 1, 8, 128>}, {transform_indices = @transform_25, window_bounds = array<i64: 1, 4, 128>}, {transform_indices = @transform_26, window_bounds = array<i64: 1, 2, 64>}]} {
    %c0 = arith.constant 0 : index
    %c0_0 = arith.constant 0 : index
    %c0_1 = arith.constant 0 : index
    %0 = vector.load %arg1[%c0, %c0_0, %c0_1] : memref<1x16x64xf32, #tpu.memory_space<vmem>>, vector<1x16x64xf32>
    %1 = vector.shape_cast %0 : vector<1x16x64xf32> to vector<16x64xf32>
    %cst = arith.constant 0.000000e+00 : f32
    %2 = vector.broadcast %cst : f32 to vector<18x64xf32>
    %c0_2 = arith.constant 0 : index
    %c0_3 = arith.constant 0 : index
    %3 = vector.load %arg28[%c0_2, %c0_3] : memref<18x64xf32, #tpu.memory_space<vmem>>, vector<18x64xf32>
    tpu.vector_store %arg28[%c0_2, %c0_3], %2 {strides = array<i32>} : memref<18x64xf32, #tpu.memory_space<vmem>>, vector<18x64xf32>,
    %c1 = arith.constant 1 : index
    %c0_4 = arith.constant 0 : index
    %4 = vector.load %arg28[%c1, %c0_4] : memref<18x64xf32, #tpu.memory_space<vmem>>, vector<16x64xf32>
    tpu.vector_store %arg28[%c1, %c0_4], %1 {strides = array<i32>} : memref<18x64xf32, #tpu.memory_space<vmem>>, vector<16x64xf32>,
    %c0_5 = arith.constant 0 : index
    %c0_6 = arith.constant 0 : index
    %5 = vector.load %arg28[%c0_5, %c0_6] : memref<18x64xf32, #tpu.memory_space<vmem>>, vector<16x64xf32>
    %c0_7 = arith.constant 0 : index
    %c0_8 = arith.constant 0 : index
    %c0_9 = arith.constant 0 : index
    %6 = vector.load %arg2[%c0_7, %c0_8, %c0_9] : memref<3x64x128xf32, #tpu.memory_space<vmem>>, vector<1x64x128xf32>
    %7 = vector.shape_cast %6 : vector<1x64x128xf32> to vector<64x128xf32>
    %cst_10 = arith.constant dense<0.000000e+00> : vector<16x128xf32>
    %8 = tpu.matmul %5, %7, %cst_10 {dimension_numbers = #tpu.dot_dimension_numbers<[1], [0], [0], [1], [0, 0, 1, 1], [], []>} : vector<16x64xf32>, vector<64x128xf32>, vector<16x128xf32> -> vector<16x128xf32>
    %c1_11 = arith.constant 1 : index
    %c0_12 = arith.constant 0 : index
    %9 = vector.load %arg28[%c1_11, %c0_12] : memref<18x64xf32, #tpu.memory_space<vmem>>, vector<16x64xf32>
    %c1_13 = arith.constant 1 : index
    %c0_14 = arith.constant 0 : index
    %c0_15 = arith.constant 0 : index
    %10 = vector.load %arg2[%c1_13, %c0_14, %c0_15] : memref<3x64x128xf32, #tpu.memory_space<vmem>>, vector<1x64x128xf32>
    %11 = vector.shape_cast %10 : vector<1x64x128xf32> to vector<64x128xf32>
    %cst_16 = arith.constant dense<0.000000e+00> : vector<16x128xf32>
    %12 = tpu.matmul %9, %11, %cst_16 {dimension_numbers = #tpu.dot_dimension_numbers<[1], [0], [0], [1], [0, 0, 1, 1], [], []>} : vector<16x64xf32>, vector<64x128xf32>, vector<16x128xf32> -> vector<16x128xf32>
    %13 = arith.addf %8, %12 : vector<16x128xf32>
    %c2 = arith.constant 2 : index
    %c0_17 = arith.constant 0 : index
    %14 = vector.load %arg28[%c2, %c0_17] : memref<18x64xf32, #tpu.memory_space<vmem>>, vector<16x64xf32>
    %c2_18 = arith.constant 2 : index
    %c0_19 = arith.constant 0 : index
    %c0_20 = arith.constant 0 : index
    %15 = vector.load %arg2[%c2_18, %c0_19, %c0_20] : memref<3x64x128xf32, #tpu.memory_space<vmem>>, vector<1x64x128xf32>
    %16 = vector.shape_cast %15 : vector<1x64x128xf32> to vector<64x128xf32>
    %cst_21 = arith.constant dense<0.000000e+00> : vector<16x128xf32>
    %17 = tpu.matmul %14, %16, %cst_21 {dimension_numbers = #tpu.dot_dimension_numbers<[1], [0], [0], [1], [0, 0, 1, 1], [], []>} : vector<16x64xf32>, vector<64x128xf32>, vector<16x128xf32> -> vector<16x128xf32>
    %18 = arith.addf %13, %17 : vector<16x128xf32>
    %c0_22 = arith.constant 0 : index
    %c0_23 = arith.constant 0 : index
    %19 = vector.load %arg3[%c0_22, %c0_23] : memref<1x128xf32, #tpu.memory_space<vmem>>, vector<1x128xf32>
    %20 = vector.broadcast %19 : vector<1x128xf32> to vector<16x128xf32>
    %21 = arith.addf %18, %20 : vector<16x128xf32>
    %cst_24 = arith.constant 0.000000e+00 : f32
    %22 = vector.broadcast %cst_24 : f32 to vector<16x128xf32>
    %23 = arith.maximumf %21, %22 : vector<16x128xf32>
    %cst_25 = arith.constant 0.000000e+00 : f32
    %24 = vector.broadcast %cst_25 : f32 to vector<18x128xf32>
    %c0_26 = arith.constant 0 : index
    %c0_27 = arith.constant 0 : index
    %25 = vector.load %arg29[%c0_26, %c0_27] : memref<18x128xf32, #tpu.memory_space<vmem>>, vector<18x128xf32>
    tpu.vector_store %arg29[%c0_26, %c0_27], %24 {strides = array<i32>} : memref<18x128xf32, #tpu.memory_space<vmem>>, vector<18x128xf32>,
    %c1_28 = arith.constant 1 : index
    %c0_29 = arith.constant 0 : index
    %26 = vector.load %arg29[%c1_28, %c0_29] : memref<18x128xf32, #tpu.memory_space<vmem>>, vector<16x128xf32>
    tpu.vector_store %arg29[%c1_28, %c0_29], %23 {strides = array<i32>} : memref<18x128xf32, #tpu.memory_space<vmem>>, vector<16x128xf32>,
    %c0_30 = arith.constant 0 : index
    %c0_31 = arith.constant 0 : index
    %27 = vector.load %arg29[%c0_30, %c0_31] : memref<18x128xf32, #tpu.memory_space<vmem>>, vector<16x128xf32>
    %c0_32 = arith.constant 0 : index
    %c0_33 = arith.constant 0 : index
    %c0_34 = arith.constant 0 : index
    %28 = vector.load %arg4[%c0_32, %c0_33, %c0_34] : memref<3x128x128xf32, #tpu.memory_space<vmem>>, vector<1x128x128xf32>
    %29 = vector.shape_cast %28 : vector<1x128x128xf32> to vector<128x128xf32>
    %cst_35 = arith.constant dense<0.000000e+00> : vector<16x128xf32>
    %30 = tpu.matmul %27, %29, %cst_35 {dimension_numbers = #tpu.dot_dimension_numbers<[1], [0], [0], [1], [0, 0, 1, 1], [], []>} : vector<16x128xf32>, vector<128x128xf32>, vector<16x128xf32> -> vector<16x128xf32>
    %c1_36 = arith.constant 1 : index
    %c0_37 = arith.constant 0 : index
    %31 = vector.load %arg29[%c1_36, %c0_37] : memref<18x128xf32, #tpu.memory_space<vmem>>, vector<16x128xf32>
    %c1_38 = arith.constant 1 : index
    %c0_39 = arith.constant 0 : index
    %c0_40 = arith.constant 0 : index
    %32 = vector.load %arg4[%c1_38, %c0_39, %c0_40] : memref<3x128x128xf32, #tpu.memory_space<vmem>>, vector<1x128x128xf32>
    %33 = vector.shape_cast %32 : vector<1x128x128xf32> to vector<128x128xf32>
    %cst_41 = arith.constant dense<0.000000e+00> : vector<16x128xf32>
    %34 = tpu.matmul %31, %33, %cst_41 {dimension_numbers = #tpu.dot_dimension_numbers<[1], [0], [0], [1], [0, 0, 1, 1], [], []>} : vector<16x128xf32>, vector<128x128xf32>, vector<16x128xf32> -> vector<16x128xf32>
    %35 = arith.addf %30, %34 : vector<16x128xf32>
    %c2_42 = arith.constant 2 : index
    %c0_43 = arith.constant 0 : index
    %36 = vector.load %arg29[%c2_42, %c0_43] : memref<18x128xf32, #tpu.memory_space<vmem>>, vector<16x128xf32>
    %c2_44 = arith.constant 2 : index
    %c0_45 = arith.constant 0 : index
    %c0_46 = arith.constant 0 : index
    %37 = vector.load %arg4[%c2_44, %c0_45, %c0_46] : memref<3x128x128xf32, #tpu.memory_space<vmem>>, vector<1x128x128xf32>
    %38 = vector.shape_cast %37 : vector<1x128x128xf32> to vector<128x128xf32>
    %cst_47 = arith.constant dense<0.000000e+00> : vector<16x128xf32>
    %39 = tpu.matmul %36, %38, %cst_47 {dimension_numbers = #tpu.dot_dimension_numbers<[1], [0], [0], [1], [0, 0, 1, 1], [], []>} : vector<16x128xf32>, vector<128x128xf32>, vector<16x128xf32> -> vector<16x128xf32>
    %40 = arith.addf %35, %39 : vector<16x128xf32>
    %c0_48 = arith.constant 0 : index
    %c0_49 = arith.constant 0 : index
    %41 = vector.load %arg5[%c0_48, %c0_49] : memref<1x128xf32, #tpu.memory_space<vmem>>, vector<1x128xf32>
    %42 = vector.broadcast %41 : vector<1x128xf32> to vector<16x128xf32>
    %43 = arith.addf %40, %42 : vector<16x128xf32>
    %cst_50 = arith.constant 0.000000e+00 : f32
    %44 = vector.broadcast %cst_50 : f32 to vector<16x128xf32>
    %45 = arith.maximumf %43, %44 : vector<16x128xf32>
    %c0_51 = arith.constant 0 : index
    %c0_52 = arith.constant 0 : index
    %c0_53 = arith.constant 0 : index
    %46 = vector.load %arg24[%c0_51, %c0_52, %c0_53] : memref<1x16x128xf32, #tpu.memory_space<vmem>>, vector<1x16x128xf32>
    %47 = vector.shape_cast %46 : vector<1x16x128xf32> to vector<16x128xf32>
    %48 = vector.shape_cast %45 : vector<16x128xf32> to vector<1x16x128xf32>
    tpu.vector_store %arg24[%c0_51, %c0_52, %c0_53], %48 {strides = array<i32>} : memref<1x16x128xf32, #tpu.memory_space<vmem>>, vector<1x16x128xf32>,
    %c0_54 = arith.constant 0 : index
    %c0_55 = arith.constant 0 : index
    %c0_56 = arith.constant 0 : index
    %49 = vector.load %arg18[%c0_54, %c0_55, %c0_56] : memref<2x8x16xf32, #tpu.memory_space<vmem>>, vector<1x8x16xf32>
    %50 = vector.shape_cast %49 : vector<1x8x16xf32> to vector<8x16xf32>
    %cst_57 = arith.constant dense<0.000000e+00> : vector<8x128xf32>
    %51 = tpu.matmul %50, %45, %cst_57 {dimension_numbers = #tpu.dot_dimension_numbers<[1], [0], [0], [1], [0, 0, 1, 1], [], []>} : vector<8x16xf32>, vector<16x128xf32>, vector<8x128xf32> -> vector<8x128xf32>
    %c1_58 = arith.constant 1 : index
    %c0_59 = arith.constant 0 : index
    %c0_60 = arith.constant 0 : index
    %52 = vector.load %arg18[%c1_58, %c0_59, %c0_60] : memref<2x8x16xf32, #tpu.memory_space<vmem>>, vector<1x8x16xf32>
    %53 = vector.shape_cast %52 : vector<1x8x16xf32> to vector<8x16xf32>
    %cst_61 = arith.constant dense<0.000000e+00> : vector<8x128xf32>
    %54 = tpu.matmul %53, %45, %cst_61 {dimension_numbers = #tpu.dot_dimension_numbers<[1], [0], [0], [1], [0, 0, 1, 1], [], []>} : vector<8x16xf32>, vector<16x128xf32>, vector<8x128xf32> -> vector<8x128xf32>
    %55 = arith.maximumf %51, %54 : vector<8x128xf32>
    %c0_62 = arith.constant 0 : index
    %c0_63 = arith.constant 0 : index
    %c0_64 = arith.constant 0 : index
    %56 = vector.load %arg19[%c0_62, %c0_63, %c0_64] : memref<2x128x64xf32, #tpu.memory_space<vmem>>, vector<1x128x64xf32>
    %57 = vector.shape_cast %56 : vector<1x128x64xf32> to vector<128x64xf32>
    %cst_65 = arith.constant dense<0.000000e+00> : vector<8x64xf32>
    %58 = tpu.matmul %55, %57, %cst_65 {dimension_numbers = #tpu.dot_dimension_numbers<[1], [0], [0], [1], [0, 0, 1, 1], [], []>} : vector<8x128xf32>, vector<128x64xf32>, vector<8x64xf32> -> vector<8x64xf32>
    %c1_66 = arith.constant 1 : index
    %c0_67 = arith.constant 0 : index
    %c0_68 = arith.constant 0 : index
    %59 = vector.load %arg19[%c1_66, %c0_67, %c0_68] : memref<2x128x64xf32, #tpu.memory_space<vmem>>, vector<1x128x64xf32>
    %60 = vector.shape_cast %59 : vector<1x128x64xf32> to vector<128x64xf32>
    %cst_69 = arith.constant dense<0.000000e+00> : vector<8x64xf32>
    %61 = tpu.matmul %55, %60, %cst_69 {dimension_numbers = #tpu.dot_dimension_numbers<[1], [0], [0], [1], [0, 0, 1, 1], [], []>} : vector<8x128xf32>, vector<128x64xf32>, vector<8x64xf32> -> vector<8x64xf32>
    %62 = arith.maximumf %58, %61 : vector<8x64xf32>
    %cst_70 = arith.constant 0.000000e+00 : f32
    %63 = vector.broadcast %cst_70 : f32 to vector<10x64xf32>
    %c0_71 = arith.constant 0 : index
    %c0_72 = arith.constant 0 : index
    %64 = vector.load %arg30[%c0_71, %c0_72] : memref<10x64xf32, #tpu.memory_space<vmem>>, vector<10x64xf32>
    tpu.vector_store %arg30[%c0_71, %c0_72], %63 {strides = array<i32>} : memref<10x64xf32, #tpu.memory_space<vmem>>, vector<10x64xf32>,
    %c1_73 = arith.constant 1 : index
    %c0_74 = arith.constant 0 : index
    %65 = vector.load %arg30[%c1_73, %c0_74] : memref<10x64xf32, #tpu.memory_space<vmem>>, vector<8x64xf32>
    tpu.vector_store %arg30[%c1_73, %c0_74], %62 {strides = array<i32>} : memref<10x64xf32, #tpu.memory_space<vmem>>, vector<8x64xf32>,
    %c0_75 = arith.constant 0 : index
    %c0_76 = arith.constant 0 : index
    %66 = vector.load %arg30[%c0_75, %c0_76] : memref<10x64xf32, #tpu.memory_space<vmem>>, vector<8x64xf32>
    %c0_77 = arith.constant 0 : index
    %c0_78 = arith.constant 0 : index
    %c0_79 = arith.constant 0 : index
    %67 = vector.load %arg6[%c0_77, %c0_78, %c0_79] : memref<3x64x128xf32, #tpu.memory_space<vmem>>, vector<1x64x128xf32>
    %68 = vector.shape_cast %67 : vector<1x64x128xf32> to vector<64x128xf32>
    %cst_80 = arith.constant dense<0.000000e+00> : vector<8x128xf32>
    %69 = tpu.matmul %66, %68, %cst_80 {dimension_numbers = #tpu.dot_dimension_numbers<[1], [0], [0], [1], [0, 0, 1, 1], [], []>} : vector<8x64xf32>, vector<64x128xf32>, vector<8x128xf32> -> vector<8x128xf32>
    %c1_81 = arith.constant 1 : index
    %c0_82 = arith.constant 0 : index
    %70 = vector.load %arg30[%c1_81, %c0_82] : memref<10x64xf32, #tpu.memory_space<vmem>>, vector<8x64xf32>
    %c1_83 = arith.constant 1 : index
    %c0_84 = arith.constant 0 : index
    %c0_85 = arith.constant 0 : index
    %71 = vector.load %arg6[%c1_83, %c0_84, %c0_85] : memref<3x64x128xf32, #tpu.memory_space<vmem>>, vector<1x64x128xf32>
    %72 = vector.shape_cast %71 : vector<1x64x128xf32> to vector<64x128xf32>
    %cst_86 = arith.constant dense<0.000000e+00> : vector<8x128xf32>
    %73 = tpu.matmul %70, %72, %cst_86 {dimension_numbers = #tpu.dot_dimension_numbers<[1], [0], [0], [1], [0, 0, 1, 1], [], []>} : vector<8x64xf32>, vector<64x128xf32>, vector<8x128xf32> -> vector<8x128xf32>
    %74 = arith.addf %69, %73 : vector<8x128xf32>
    %c2_87 = arith.constant 2 : index
    %c0_88 = arith.constant 0 : index
    %75 = vector.load %arg30[%c2_87, %c0_88] : memref<10x64xf32, #tpu.memory_space<vmem>>, vector<8x64xf32>
    %c2_89 = arith.constant 2 : index
    %c0_90 = arith.constant 0 : index
    %c0_91 = arith.constant 0 : index
    %76 = vector.load %arg6[%c2_89, %c0_90, %c0_91] : memref<3x64x128xf32, #tpu.memory_space<vmem>>, vector<1x64x128xf32>
    %77 = vector.shape_cast %76 : vector<1x64x128xf32> to vector<64x128xf32>
    %cst_92 = arith.constant dense<0.000000e+00> : vector<8x128xf32>
    %78 = tpu.matmul %75, %77, %cst_92 {dimension_numbers = #tpu.dot_dimension_numbers<[1], [0], [0], [1], [0, 0, 1, 1], [], []>} : vector<8x64xf32>, vector<64x128xf32>, vector<8x128xf32> -> vector<8x128xf32>
    %79 = arith.addf %74, %78 : vector<8x128xf32>
    %c0_93 = arith.constant 0 : index
    %c0_94 = arith.constant 0 : index
    %80 = vector.load %arg7[%c0_93, %c0_94] : memref<1x128xf32, #tpu.memory_space<vmem>>, vector<1x128xf32>
    %81 = vector.broadcast %80 : vector<1x128xf32> to vector<8x128xf32>
    %82 = arith.addf %79, %81 : vector<8x128xf32>
    %cst_95 = arith.constant 0.000000e+00 : f32
    %83 = vector.broadcast %cst_95 : f32 to vector<8x128xf32>
    %84 = arith.maximumf %82, %83 : vector<8x128xf32>
    %cst_96 = arith.constant 0.000000e+00 : f32
    %85 = vector.broadcast %cst_96 : f32 to vector<10x128xf32>
    %c0_97 = arith.constant 0 : index
    %c0_98 = arith.constant 0 : index
    %86 = vector.load %arg31[%c0_97, %c0_98] : memref<10x128xf32, #tpu.memory_space<vmem>>, vector<10x128xf32>
    tpu.vector_store %arg31[%c0_97, %c0_98], %85 {strides = array<i32>} : memref<10x128xf32, #tpu.memory_space<vmem>>, vector<10x128xf32>,
    %c1_99 = arith.constant 1 : index
    %c0_100 = arith.constant 0 : index
    %87 = vector.load %arg31[%c1_99, %c0_100] : memref<10x128xf32, #tpu.memory_space<vmem>>, vector<8x128xf32>
    tpu.vector_store %arg31[%c1_99, %c0_100], %84 {strides = array<i32>} : memref<10x128xf32, #tpu.memory_space<vmem>>, vector<8x128xf32>,
    %c0_101 = arith.constant 0 : index
    %c0_102 = arith.constant 0 : index
    %88 = vector.load %arg31[%c0_101, %c0_102] : memref<10x128xf32, #tpu.memory_space<vmem>>, vector<8x128xf32>
    %c0_103 = arith.constant 0 : index
    %c0_104 = arith.constant 0 : index
    %c0_105 = arith.constant 0 : index
    %89 = vector.load %arg8[%c0_103, %c0_104, %c0_105] : memref<3x128x128xf32, #tpu.memory_space<vmem>>, vector<1x128x128xf32>
    %90 = vector.shape_cast %89 : vector<1x128x128xf32> to vector<128x128xf32>
    %cst_106 = arith.constant dense<0.000000e+00> : vector<8x128xf32>
    %91 = tpu.matmul %88, %90, %cst_106 {dimension_numbers = #tpu.dot_dimension_numbers<[1], [0], [0], [1], [0, 0, 1, 1], [], []>} : vector<8x128xf32>, vector<128x128xf32>, vector<8x128xf32> -> vector<8x128xf32>
    %c1_107 = arith.constant 1 : index
    %c0_108 = arith.constant 0 : index
    %92 = vector.load %arg31[%c1_107, %c0_108] : memref<10x128xf32, #tpu.memory_space<vmem>>, vector<8x128xf32>
    %c1_109 = arith.constant 1 : index
    %c0_110 = arith.constant 0 : index
    %c0_111 = arith.constant 0 : index
    %93 = vector.load %arg8[%c1_109, %c0_110, %c0_111] : memref<3x128x128xf32, #tpu.memory_space<vmem>>, vector<1x128x128xf32>
    %94 = vector.shape_cast %93 : vector<1x128x128xf32> to vector<128x128xf32>
    %cst_112 = arith.constant dense<0.000000e+00> : vector<8x128xf32>
    %95 = tpu.matmul %92, %94, %cst_112 {dimension_numbers = #tpu.dot_dimension_numbers<[1], [0], [0], [1], [0, 0, 1, 1], [], []>} : vector<8x128xf32>, vector<128x128xf32>, vector<8x128xf32> -> vector<8x128xf32>
    %96 = arith.addf %91, %95 : vector<8x128xf32>
    %c2_113 = arith.constant 2 : index
    %c0_114 = arith.constant 0 : index
    %97 = vector.load %arg31[%c2_113, %c0_114] : memref<10x128xf32, #tpu.memory_space<vmem>>, vector<8x128xf32>
    %c2_115 = arith.constant 2 : index
    %c0_116 = arith.constant 0 : index
    %c0_117 = arith.constant 0 : index
    %98 = vector.load %arg8[%c2_115, %c0_116, %c0_117] : memref<3x128x128xf32, #tpu.memory_space<vmem>>, vector<1x128x128xf32>
    %99 = vector.shape_cast %98 : vector<1x128x128xf32> to vector<128x128xf32>
    %cst_118 = arith.constant dense<0.000000e+00> : vector<8x128xf32>
    %100 = tpu.matmul %97, %99, %cst_118 {dimension_numbers = #tpu.dot_dimension_numbers<[1], [0], [0], [1], [0, 0, 1, 1], [], []>} : vector<8x128xf32>, vector<128x128xf32>, vector<8x128xf32> -> vector<8x128xf32>
    %101 = arith.addf %96, %100 : vector<8x128xf32>
    %c0_119 = arith.constant 0 : index
    %c0_120 = arith.constant 0 : index
    %102 = vector.load %arg9[%c0_119, %c0_120] : memref<1x128xf32, #tpu.memory_space<vmem>>, vector<1x128xf32>
    %103 = vector.broadcast %102 : vector<1x128xf32> to vector<8x128xf32>
    %104 = arith.addf %101, %103 : vector<8x128xf32>
    %cst_121 = arith.constant 0.000000e+00 : f32
    %105 = vector.broadcast %cst_121 : f32 to vector<8x128xf32>
    %106 = arith.maximumf %104, %105 : vector<8x128xf32>
    %c0_122 = arith.constant 0 : index
    %c0_123 = arith.constant 0 : index
    %c0_124 = arith.constant 0 : index
    %107 = vector.load %arg25[%c0_122, %c0_123, %c0_124] : memref<1x8x128xf32, #tpu.memory_space<vmem>>, vector<1x8x128xf32>
    %108 = vector.shape_cast %107 : vector<1x8x128xf32> to vector<8x128xf32>
    %109 = vector.shape_cast %106 : vector<8x128xf32> to vector<1x8x128xf32>
    tpu.vector_store %arg25[%c0_122, %c0_123, %c0_124], %109 {strides = array<i32>} : memref<1x8x128xf32, #tpu.memory_space<vmem>>, vector<1x8x128xf32>,
    %c0_125 = arith.constant 0 : index
    %c0_126 = arith.constant 0 : index
    %c0_127 = arith.constant 0 : index
    %110 = vector.load %arg20[%c0_125, %c0_126, %c0_127] : memref<2x4x8xf32, #tpu.memory_space<vmem>>, vector<1x4x8xf32>
    %111 = vector.shape_cast %110 : vector<1x4x8xf32> to vector<4x8xf32>
    %cst_128 = arith.constant dense<0.000000e+00> : vector<4x128xf32>
    %112 = tpu.matmul %111, %106, %cst_128 {dimension_numbers = #tpu.dot_dimension_numbers<[1], [0], [0], [1], [0, 0, 1, 1], [], []>} : vector<4x8xf32>, vector<8x128xf32>, vector<4x128xf32> -> vector<4x128xf32>
    %c1_129 = arith.constant 1 : index
    %c0_130 = arith.constant 0 : index
    %c0_131 = arith.constant 0 : index
    %113 = vector.load %arg20[%c1_129, %c0_130, %c0_131] : memref<2x4x8xf32, #tpu.memory_space<vmem>>, vector<1x4x8xf32>
    %114 = vector.shape_cast %113 : vector<1x4x8xf32> to vector<4x8xf32>
    %cst_132 = arith.constant dense<0.000000e+00> : vector<4x128xf32>
    %115 = tpu.matmul %114, %106, %cst_132 {dimension_numbers = #tpu.dot_dimension_numbers<[1], [0], [0], [1], [0, 0, 1, 1], [], []>} : vector<4x8xf32>, vector<8x128xf32>, vector<4x128xf32> -> vector<4x128xf32>
    %116 = arith.maximumf %112, %115 : vector<4x128xf32>
    %c0_133 = arith.constant 0 : index
    %c0_134 = arith.constant 0 : index
    %c0_135 = arith.constant 0 : index
    %117 = vector.load %arg21[%c0_133, %c0_134, %c0_135] : memref<2x128x64xf32, #tpu.memory_space<vmem>>, vector<1x128x64xf32>
    %118 = vector.shape_cast %117 : vector<1x128x64xf32> to vector<128x64xf32>
    %cst_136 = arith.constant dense<0.000000e+00> : vector<4x64xf32>
    %119 = tpu.matmul %116, %118, %cst_136 {dimension_numbers = #tpu.dot_dimension_numbers<[1], [0], [0], [1], [0, 0, 1, 1], [], []>} : vector<4x128xf32>, vector<128x64xf32>, vector<4x64xf32> -> vector<4x64xf32>
    %c1_137 = arith.constant 1 : index
    %c0_138 = arith.constant 0 : index
    %c0_139 = arith.constant 0 : index
    %120 = vector.load %arg21[%c1_137, %c0_138, %c0_139] : memref<2x128x64xf32, #tpu.memory_space<vmem>>, vector<1x128x64xf32>
    %121 = vector.shape_cast %120 : vector<1x128x64xf32> to vector<128x64xf32>
    %cst_140 = arith.constant dense<0.000000e+00> : vector<4x64xf32>
    %122 = tpu.matmul %116, %121, %cst_140 {dimension_numbers = #tpu.dot_dimension_numbers<[1], [0], [0], [1], [0, 0, 1, 1], [], []>} : vector<4x128xf32>, vector<128x64xf32>, vector<4x64xf32> -> vector<4x64xf32>
    %123 = arith.maximumf %119, %122 : vector<4x64xf32>
    %cst_141 = arith.constant 0.000000e+00 : f32
    %124 = vector.broadcast %cst_141 : f32 to vector<6x64xf32>
    %c0_142 = arith.constant 0 : index
    %c0_143 = arith.constant 0 : index
    %125 = vector.load %arg32[%c0_142, %c0_143] : memref<6x64xf32, #tpu.memory_space<vmem>>, vector<6x64xf32>
    tpu.vector_store %arg32[%c0_142, %c0_143], %124 {strides = array<i32>} : memref<6x64xf32, #tpu.memory_space<vmem>>, vector<6x64xf32>,
    %c1_144 = arith.constant 1 : index
    %c0_145 = arith.constant 0 : index
    %126 = vector.load %arg32[%c1_144, %c0_145] : memref<6x64xf32, #tpu.memory_space<vmem>>, vector<4x64xf32>
    tpu.vector_store %arg32[%c1_144, %c0_145], %123 {strides = array<i32>} : memref<6x64xf32, #tpu.memory_space<vmem>>, vector<4x64xf32>,
    %c0_146 = arith.constant 0 : index
    %c0_147 = arith.constant 0 : index
    %127 = vector.load %arg32[%c0_146, %c0_147] : memref<6x64xf32, #tpu.memory_space<vmem>>, vector<4x64xf32>
    %c0_148 = arith.constant 0 : index
    %c0_149 = arith.constant 0 : index
    %c0_150 = arith.constant 0 : index
    %128 = vector.load %arg10[%c0_148, %c0_149, %c0_150] : memref<3x64x128xf32, #tpu.memory_space<vmem>>, vector<1x64x128xf32>
    %129 = vector.shape_cast %128 : vector<1x64x128xf32> to vector<64x128xf32>
    %cst_151 = arith.constant dense<0.000000e+00> : vector<4x128xf32>
    %130 = tpu.matmul %127, %129, %cst_151 {dimension_numbers = #tpu.dot_dimension_numbers<[1], [0], [0], [1], [0, 0, 1, 1], [], []>} : vector<4x64xf32>, vector<64x128xf32>, vector<4x128xf32> -> vector<4x128xf32>
    %c1_152 = arith.constant 1 : index
    %c0_153 = arith.constant 0 : index
    %131 = vector.load %arg32[%c1_152, %c0_153] : memref<6x64xf32, #tpu.memory_space<vmem>>, vector<4x64xf32>
    %c1_154 = arith.constant 1 : index
    %c0_155 = arith.constant 0 : index
    %c0_156 = arith.constant 0 : index
    %132 = vector.load %arg10[%c1_154, %c0_155, %c0_156] : memref<3x64x128xf32, #tpu.memory_space<vmem>>, vector<1x64x128xf32>
    %133 = vector.shape_cast %132 : vector<1x64x128xf32> to vector<64x128xf32>
    %cst_157 = arith.constant dense<0.000000e+00> : vector<4x128xf32>
    %134 = tpu.matmul %131, %133, %cst_157 {dimension_numbers = #tpu.dot_dimension_numbers<[1], [0], [0], [1], [0, 0, 1, 1], [], []>} : vector<4x64xf32>, vector<64x128xf32>, vector<4x128xf32> -> vector<4x128xf32>
    %135 = arith.addf %130, %134 : vector<4x128xf32>
    %c2_158 = arith.constant 2 : index
    %c0_159 = arith.constant 0 : index
    %136 = vector.load %arg32[%c2_158, %c0_159] : memref<6x64xf32, #tpu.memory_space<vmem>>, vector<4x64xf32>
    %c2_160 = arith.constant 2 : index
    %c0_161 = arith.constant 0 : index
    %c0_162 = arith.constant 0 : index
    %137 = vector.load %arg10[%c2_160, %c0_161, %c0_162] : memref<3x64x128xf32, #tpu.memory_space<vmem>>, vector<1x64x128xf32>
    %138 = vector.shape_cast %137 : vector<1x64x128xf32> to vector<64x128xf32>
    %cst_163 = arith.constant dense<0.000000e+00> : vector<4x128xf32>
    %139 = tpu.matmul %136, %138, %cst_163 {dimension_numbers = #tpu.dot_dimension_numbers<[1], [0], [0], [1], [0, 0, 1, 1], [], []>} : vector<4x64xf32>, vector<64x128xf32>, vector<4x128xf32> -> vector<4x128xf32>
    %140 = arith.addf %135, %139 : vector<4x128xf32>
    %c0_164 = arith.constant 0 : index
    %c0_165 = arith.constant 0 : index
    %141 = vector.load %arg11[%c0_164, %c0_165] : memref<1x128xf32, #tpu.memory_space<vmem>>, vector<1x128xf32>
    %142 = vector.broadcast %141 : vector<1x128xf32> to vector<4x128xf32>
    %143 = arith.addf %140, %142 : vector<4x128xf32>
    %cst_166 = arith.constant 0.000000e+00 : f32
    %144 = vector.broadcast %cst_166 : f32 to vector<4x128xf32>
    %145 = arith.maximumf %143, %144 : vector<4x128xf32>
    %cst_167 = arith.constant 0.000000e+00 : f32
    %146 = vector.broadcast %cst_167 : f32 to vector<6x128xf32>
    %c0_168 = arith.constant 0 : index
    %c0_169 = arith.constant 0 : index
    %147 = vector.load %arg33[%c0_168, %c0_169] : memref<6x128xf32, #tpu.memory_space<vmem>>, vector<6x128xf32>
    tpu.vector_store %arg33[%c0_168, %c0_169], %146 {strides = array<i32>} : memref<6x128xf32, #tpu.memory_space<vmem>>, vector<6x128xf32>,
    %c1_170 = arith.constant 1 : index
    %c0_171 = arith.constant 0 : index
    %148 = vector.load %arg33[%c1_170, %c0_171] : memref<6x128xf32, #tpu.memory_space<vmem>>, vector<4x128xf32>
    tpu.vector_store %arg33[%c1_170, %c0_171], %145 {strides = array<i32>} : memref<6x128xf32, #tpu.memory_space<vmem>>, vector<4x128xf32>,
    %c0_172 = arith.constant 0 : index
    %c0_173 = arith.constant 0 : index
    %149 = vector.load %arg33[%c0_172, %c0_173] : memref<6x128xf32, #tpu.memory_space<vmem>>, vector<4x128xf32>
    %c0_174 = arith.constant 0 : index
    %c0_175 = arith.constant 0 : index
    %c0_176 = arith.constant 0 : index
    %150 = vector.load %arg12[%c0_174, %c0_175, %c0_176] : memref<3x128x128xf32, #tpu.memory_space<vmem>>, vector<1x128x128xf32>
    %151 = vector.shape_cast %150 : vector<1x128x128xf32> to vector<128x128xf32>
    %cst_177 = arith.constant dense<0.000000e+00> : vector<4x128xf32>
    %152 = tpu.matmul %149, %151, %cst_177 {dimension_numbers = #tpu.dot_dimension_numbers<[1], [0], [0], [1], [0, 0, 1, 1], [], []>} : vector<4x128xf32>, vector<128x128xf32>, vector<4x128xf32> -> vector<4x128xf32>
    %c1_178 = arith.constant 1 : index
    %c0_179 = arith.constant 0 : index
    %153 = vector.load %arg33[%c1_178, %c0_179] : memref<6x128xf32, #tpu.memory_space<vmem>>, vector<4x128xf32>
    %c1_180 = arith.constant 1 : index
    %c0_181 = arith.constant 0 : index
    %c0_182 = arith.constant 0 : index
    %154 = vector.load %arg12[%c1_180, %c0_181, %c0_182] : memref<3x128x128xf32, #tpu.memory_space<vmem>>, vector<1x128x128xf32>
    %155 = vector.shape_cast %154 : vector<1x128x128xf32> to vector<128x128xf32>
    %cst_183 = arith.constant dense<0.000000e+00> : vector<4x128xf32>
    %156 = tpu.matmul %153, %155, %cst_183 {dimension_numbers = #tpu.dot_dimension_numbers<[1], [0], [0], [1], [0, 0, 1, 1], [], []>} : vector<4x128xf32>, vector<128x128xf32>, vector<4x128xf32> -> vector<4x128xf32>
    %157 = arith.addf %152, %156 : vector<4x128xf32>
    %c2_184 = arith.constant 2 : index
    %c0_185 = arith.constant 0 : index
    %158 = vector.load %arg33[%c2_184, %c0_185] : memref<6x128xf32, #tpu.memory_space<vmem>>, vector<4x128xf32>
    %c2_186 = arith.constant 2 : index
    %c0_187 = arith.constant 0 : index
    %c0_188 = arith.constant 0 : index
    %159 = vector.load %arg12[%c2_186, %c0_187, %c0_188] : memref<3x128x128xf32, #tpu.memory_space<vmem>>, vector<1x128x128xf32>
    %160 = vector.shape_cast %159 : vector<1x128x128xf32> to vector<128x128xf32>
    %cst_189 = arith.constant dense<0.000000e+00> : vector<4x128xf32>
    %161 = tpu.matmul %158, %160, %cst_189 {dimension_numbers = #tpu.dot_dimension_numbers<[1], [0], [0], [1], [0, 0, 1, 1], [], []>} : vector<4x128xf32>, vector<128x128xf32>, vector<4x128xf32> -> vector<4x128xf32>
    %162 = arith.addf %157, %161 : vector<4x128xf32>
    %c0_190 = arith.constant 0 : index
    %c0_191 = arith.constant 0 : index
    %163 = vector.load %arg13[%c0_190, %c0_191] : memref<1x128xf32, #tpu.memory_space<vmem>>, vector<1x128xf32>
    %164 = vector.broadcast %163 : vector<1x128xf32> to vector<4x128xf32>
    %165 = arith.addf %162, %164 : vector<4x128xf32>
    %cst_192 = arith.constant 0.000000e+00 : f32
    %166 = vector.broadcast %cst_192 : f32 to vector<4x128xf32>
    %167 = arith.maximumf %165, %166 : vector<4x128xf32>
    %c0_193 = arith.constant 0 : index
    %c0_194 = arith.constant 0 : index
    %c0_195 = arith.constant 0 : index
    %168 = vector.load %arg26[%c0_193, %c0_194, %c0_195] : memref<1x4x128xf32, #tpu.memory_space<vmem>>, vector<1x4x128xf32>
    %169 = vector.shape_cast %168 : vector<1x4x128xf32> to vector<4x128xf32>
    %170 = vector.shape_cast %167 : vector<4x128xf32> to vector<1x4x128xf32>
    tpu.vector_store %arg26[%c0_193, %c0_194, %c0_195], %170 {strides = array<i32>} : memref<1x4x128xf32, #tpu.memory_space<vmem>>, vector<1x4x128xf32>,
    %c0_196 = arith.constant 0 : index
    %c0_197 = arith.constant 0 : index
    %c0_198 = arith.constant 0 : index
    %171 = vector.load %arg22[%c0_196, %c0_197, %c0_198] : memref<2x2x4xf32, #tpu.memory_space<vmem>>, vector<1x2x4xf32>
    %172 = vector.shape_cast %171 : vector<1x2x4xf32> to vector<2x4xf32>
    %cst_199 = arith.constant dense<0.000000e+00> : vector<2x128xf32>
    %173 = tpu.matmul %172, %167, %cst_199 {dimension_numbers = #tpu.dot_dimension_numbers<[1], [0], [0], [1], [0, 0, 1, 1], [], []>} : vector<2x4xf32>, vector<4x128xf32>, vector<2x128xf32> -> vector<2x128xf32>
    %c1_200 = arith.constant 1 : index
    %c0_201 = arith.constant 0 : index
    %c0_202 = arith.constant 0 : index
    %174 = vector.load %arg22[%c1_200, %c0_201, %c0_202] : memref<2x2x4xf32, #tpu.memory_space<vmem>>, vector<1x2x4xf32>
    %175 = vector.shape_cast %174 : vector<1x2x4xf32> to vector<2x4xf32>
    %cst_203 = arith.constant dense<0.000000e+00> : vector<2x128xf32>
    %176 = tpu.matmul %175, %167, %cst_203 {dimension_numbers = #tpu.dot_dimension_numbers<[1], [0], [0], [1], [0, 0, 1, 1], [], []>} : vector<2x4xf32>, vector<4x128xf32>, vector<2x128xf32> -> vector<2x128xf32>
    %177 = arith.maximumf %173, %176 : vector<2x128xf32>
    %c0_204 = arith.constant 0 : index
    %c0_205 = arith.constant 0 : index
    %c0_206 = arith.constant 0 : index
    %178 = vector.load %arg23[%c0_204, %c0_205, %c0_206] : memref<2x128x64xf32, #tpu.memory_space<vmem>>, vector<1x128x64xf32>
    %179 = vector.shape_cast %178 : vector<1x128x64xf32> to vector<128x64xf32>
    %cst_207 = arith.constant dense<0.000000e+00> : vector<2x64xf32>
    %180 = tpu.matmul %177, %179, %cst_207 {dimension_numbers = #tpu.dot_dimension_numbers<[1], [0], [0], [1], [0, 0, 1, 1], [], []>} : vector<2x128xf32>, vector<128x64xf32>, vector<2x64xf32> -> vector<2x64xf32>
    %c1_208 = arith.constant 1 : index
    %c0_209 = arith.constant 0 : index
    %c0_210 = arith.constant 0 : index
    %181 = vector.load %arg23[%c1_208, %c0_209, %c0_210] : memref<2x128x64xf32, #tpu.memory_space<vmem>>, vector<1x128x64xf32>
    %182 = vector.shape_cast %181 : vector<1x128x64xf32> to vector<128x64xf32>
    %cst_211 = arith.constant dense<0.000000e+00> : vector<2x64xf32>
    %183 = tpu.matmul %177, %182, %cst_211 {dimension_numbers = #tpu.dot_dimension_numbers<[1], [0], [0], [1], [0, 0, 1, 1], [], []>} : vector<2x128xf32>, vector<128x64xf32>, vector<2x64xf32> -> vector<2x64xf32>
    %184 = arith.maximumf %180, %183 : vector<2x64xf32>
    %cst_212 = arith.constant 0.000000e+00 : f32
    %185 = vector.broadcast %cst_212 : f32 to vector<4x64xf32>
    %c0_213 = arith.constant 0 : index
    %c0_214 = arith.constant 0 : index
    %186 = vector.load %arg34[%c0_213, %c0_214] : memref<4x64xf32, #tpu.memory_space<vmem>>, vector<4x64xf32>
    tpu.vector_store %arg34[%c0_213, %c0_214], %185 {strides = array<i32>} : memref<4x64xf32, #tpu.memory_space<vmem>>, vector<4x64xf32>,
    %c1_215 = arith.constant 1 : index
    %c0_216 = arith.constant 0 : index
    %187 = vector.load %arg34[%c1_215, %c0_216] : memref<4x64xf32, #tpu.memory_space<vmem>>, vector<2x64xf32>
    tpu.vector_store %arg34[%c1_215, %c0_216], %184 {strides = array<i32>} : memref<4x64xf32, #tpu.memory_space<vmem>>, vector<2x64xf32>,
    %c0_217 = arith.constant 0 : index
    %c0_218 = arith.constant 0 : index
    %188 = vector.load %arg34[%c0_217, %c0_218] : memref<4x64xf32, #tpu.memory_space<vmem>>, vector<2x64xf32>
    %c0_219 = arith.constant 0 : index
    %c0_220 = arith.constant 0 : index
    %c0_221 = arith.constant 0 : index
    %189 = vector.load %arg14[%c0_219, %c0_220, %c0_221] : memref<3x64x64xf32, #tpu.memory_space<vmem>>, vector<1x64x64xf32>
    %190 = vector.shape_cast %189 : vector<1x64x64xf32> to vector<64x64xf32>
    %cst_222 = arith.constant dense<0.000000e+00> : vector<2x64xf32>
    %191 = tpu.matmul %188, %190, %cst_222 {dimension_numbers = #tpu.dot_dimension_numbers<[1], [0], [0], [1], [0, 0, 1, 1], [], []>} : vector<2x64xf32>, vector<64x64xf32>, vector<2x64xf32> -> vector<2x64xf32>
    %c1_223 = arith.constant 1 : index
    %c0_224 = arith.constant 0 : index
    %192 = vector.load %arg34[%c1_223, %c0_224] : memref<4x64xf32, #tpu.memory_space<vmem>>, vector<2x64xf32>
    %c1_225 = arith.constant 1 : index
    %c0_226 = arith.constant 0 : index
    %c0_227 = arith.constant 0 : index
    %193 = vector.load %arg14[%c1_225, %c0_226, %c0_227] : memref<3x64x64xf32, #tpu.memory_space<vmem>>, vector<1x64x64xf32>
    %194 = vector.shape_cast %193 : vector<1x64x64xf32> to vector<64x64xf32>
    %cst_228 = arith.constant dense<0.000000e+00> : vector<2x64xf32>
    %195 = tpu.matmul %192, %194, %cst_228 {dimension_numbers = #tpu.dot_dimension_numbers<[1], [0], [0], [1], [0, 0, 1, 1], [], []>} : vector<2x64xf32>, vector<64x64xf32>, vector<2x64xf32> -> vector<2x64xf32>
    %196 = arith.addf %191, %195 : vector<2x64xf32>
    %c2_229 = arith.constant 2 : index
    %c0_230 = arith.constant 0 : index
    %197 = vector.load %arg34[%c2_229, %c0_230] : memref<4x64xf32, #tpu.memory_space<vmem>>, vector<2x64xf32>
    %c2_231 = arith.constant 2 : index
    %c0_232 = arith.constant 0 : index
    %c0_233 = arith.constant 0 : index
    %198 = vector.load %arg14[%c2_231, %c0_232, %c0_233] : memref<3x64x64xf32, #tpu.memory_space<vmem>>, vector<1x64x64xf32>
    %199 = vector.shape_cast %198 : vector<1x64x64xf32> to vector<64x64xf32>
    %cst_234 = arith.constant dense<0.000000e+00> : vector<2x64xf32>
    %200 = tpu.matmul %197, %199, %cst_234 {dimension_numbers = #tpu.dot_dimension_numbers<[1], [0], [0], [1], [0, 0, 1, 1], [], []>} : vector<2x64xf32>, vector<64x64xf32>, vector<2x64xf32> -> vector<2x64xf32>
    %201 = arith.addf %196, %200 : vector<2x64xf32>
    %c0_235 = arith.constant 0 : index
    %c0_236 = arith.constant 0 : index
    %202 = vector.load %arg15[%c0_235, %c0_236] : memref<1x64xf32, #tpu.memory_space<vmem>>, vector<1x64xf32>
    %203 = vector.broadcast %202 : vector<1x64xf32> to vector<2x64xf32>
    %204 = arith.addf %201, %203 : vector<2x64xf32>
    %cst_237 = arith.constant 0.000000e+00 : f32
    %205 = vector.broadcast %cst_237 : f32 to vector<2x64xf32>
    %206 = arith.maximumf %204, %205 : vector<2x64xf32>
    %cst_238 = arith.constant 0.000000e+00 : f32
    %207 = vector.broadcast %cst_238 : f32 to vector<4x64xf32>
    %c0_239 = arith.constant 0 : index
    %c0_240 = arith.constant 0 : index
    %208 = vector.load %arg35[%c0_239, %c0_240] : memref<4x64xf32, #tpu.memory_space<vmem>>, vector<4x64xf32>
    tpu.vector_store %arg35[%c0_239, %c0_240], %207 {strides = array<i32>} : memref<4x64xf32, #tpu.memory_space<vmem>>, vector<4x64xf32>,
    %c1_241 = arith.constant 1 : index
    %c0_242 = arith.constant 0 : index
    %209 = vector.load %arg35[%c1_241, %c0_242] : memref<4x64xf32, #tpu.memory_space<vmem>>, vector<2x64xf32>
    tpu.vector_store %arg35[%c1_241, %c0_242], %206 {strides = array<i32>} : memref<4x64xf32, #tpu.memory_space<vmem>>, vector<2x64xf32>,
    %c0_243 = arith.constant 0 : index
    %c0_244 = arith.constant 0 : index
    %210 = vector.load %arg35[%c0_243, %c0_244] : memref<4x64xf32, #tpu.memory_space<vmem>>, vector<2x64xf32>
    %c0_245 = arith.constant 0 : index
    %c0_246 = arith.constant 0 : index
    %c0_247 = arith.constant 0 : index
    %211 = vector.load %arg16[%c0_245, %c0_246, %c0_247] : memref<3x64x64xf32, #tpu.memory_space<vmem>>, vector<1x64x64xf32>
    %212 = vector.shape_cast %211 : vector<1x64x64xf32> to vector<64x64xf32>
    %cst_248 = arith.constant dense<0.000000e+00> : vector<2x64xf32>
    %213 = tpu.matmul %210, %212, %cst_248 {dimension_numbers = #tpu.dot_dimension_numbers<[1], [0], [0], [1], [0, 0, 1, 1], [], []>} : vector<2x64xf32>, vector<64x64xf32>, vector<2x64xf32> -> vector<2x64xf32>
    %c1_249 = arith.constant 1 : index
    %c0_250 = arith.constant 0 : index
    %214 = vector.load %arg35[%c1_249, %c0_250] : memref<4x64xf32, #tpu.memory_space<vmem>>, vector<2x64xf32>
    %c1_251 = arith.constant 1 : index
    %c0_252 = arith.constant 0 : index
    %c0_253 = arith.constant 0 : index
    %215 = vector.load %arg16[%c1_251, %c0_252, %c0_253] : memref<3x64x64xf32, #tpu.memory_space<vmem>>, vector<1x64x64xf32>
    %216 = vector.shape_cast %215 : vector<1x64x64xf32> to vector<64x64xf32>
    %cst_254 = arith.constant dense<0.000000e+00> : vector<2x64xf32>
    %217 = tpu.matmul %214, %216, %cst_254 {dimension_numbers = #tpu.dot_dimension_numbers<[1], [0], [0], [1], [0, 0, 1, 1], [], []>} : vector<2x64xf32>, vector<64x64xf32>, vector<2x64xf32> -> vector<2x64xf32>
    %218 = arith.addf %213, %217 : vector<2x64xf32>
    %c2_255 = arith.constant 2 : index
    %c0_256 = arith.constant 0 : index
    %219 = vector.load %arg35[%c2_255, %c0_256] : memref<4x64xf32, #tpu.memory_space<vmem>>, vector<2x64xf32>
    %c2_257 = arith.constant 2 : index
    %c0_258 = arith.constant 0 : index
    %c0_259 = arith.constant 0 : index
    %220 = vector.load %arg16[%c2_257, %c0_258, %c0_259] : memref<3x64x64xf32, #tpu.memory_space<vmem>>, vector<1x64x64xf32>
    %221 = vector.shape_cast %220 : vector<1x64x64xf32> to vector<64x64xf32>
    %cst_260 = arith.constant dense<0.000000e+00> : vector<2x64xf32>
    %222 = tpu.matmul %219, %221, %cst_260 {dimension_numbers = #tpu.dot_dimension_numbers<[1], [0], [0], [1], [0, 0, 1, 1], [], []>} : vector<2x64xf32>, vector<64x64xf32>, vector<2x64xf32> -> vector<2x64xf32>
    %223 = arith.addf %218, %222 : vector<2x64xf32>
    %c0_261 = arith.constant 0 : index
    %c0_262 = arith.constant 0 : index
    %224 = vector.load %arg17[%c0_261, %c0_262] : memref<1x64xf32, #tpu.memory_space<vmem>>, vector<1x64xf32>
    %225 = vector.broadcast %224 : vector<1x64xf32> to vector<2x64xf32>
    %226 = arith.addf %223, %225 : vector<2x64xf32>
    %cst_263 = arith.constant 0.000000e+00 : f32
    %227 = vector.broadcast %cst_263 : f32 to vector<2x64xf32>
    %228 = arith.maximumf %226, %227 : vector<2x64xf32>
    %c0_264 = arith.constant 0 : index
    %c0_265 = arith.constant 0 : index
    %c0_266 = arith.constant 0 : index
    %229 = vector.load %arg27[%c0_264, %c0_265, %c0_266] : memref<1x2x64xf32, #tpu.memory_space<vmem>>, vector<1x2x64xf32>
    %230 = vector.shape_cast %229 : vector<1x2x64xf32> to vector<2x64xf32>
    %231 = vector.shape_cast %228 : vector<2x64xf32> to vector<1x2x64xf32>
    tpu.vector_store %arg27[%c0_264, %c0_265, %c0_266], %231 {strides = array<i32>} : memref<1x2x64xf32, #tpu.memory_space<vmem>>, vector<1x2x64xf32>,
    return
  }
  func.func @transform_0(%arg0: i32) -> (i32, i32, i32) {
    %c0_i32 = arith.constant 0 : i32
    %c0_i32_0 = arith.constant 0 : i32
    %c0_i32_1 = arith.constant 0 : i32
    return %arg0, %c0_i32, %c0_i32_0 : i32, i32, i32
  }
  func.func @transform_1(%arg0: i32) -> (i32, i32, i32) {
    %c0_i32 = arith.constant 0 : i32
    %c0_i32_0 = arith.constant 0 : i32
    %c0_i32_1 = arith.constant 0 : i32
    %c0_i32_2 = arith.constant 0 : i32
    return %c0_i32, %c0_i32_0, %c0_i32_1 : i32, i32, i32
  }
  func.func @transform_2(%arg0: i32) -> (i32, i32) {
    %c0_i32 = arith.constant 0 : i32
    %c0_i32_0 = arith.constant 0 : i32
    %c0_i32_1 = arith.constant 0 : i32
    return %c0_i32, %c0_i32_0 : i32, i32
  }
  func.func @transform_3(%arg0: i32) -> (i32, i32, i32) {
    %c0_i32 = arith.constant 0 : i32
    %c0_i32_0 = arith.constant 0 : i32
    %c0_i32_1 = arith.constant 0 : i32
    %c0_i32_2 = arith.constant 0 : i32
    return %c0_i32, %c0_i32_0, %c0_i32_1 : i32, i32, i32
  }
  func.func @transform_4(%arg0: i32) -> (i32, i32) {
    %c0_i32 = arith.constant 0 : i32
    %c0_i32_0 = arith.constant 0 : i32
    %c0_i32_1 = arith.constant 0 : i32
    return %c0_i32, %c0_i32_0 : i32, i32
  }
  func.func @transform_5(%arg0: i32) -> (i32, i32, i32) {
    %c0_i32 = arith.constant 0 : i32
    %c0_i32_0 = arith.constant 0 : i32
    %c0_i32_1 = arith.constant 0 : i32
    %c0_i32_2 = arith.constant 0 : i32
    return %c0_i32, %c0_i32_0, %c0_i32_1 : i32, i32, i32
  }
  func.func @transform_6(%arg0: i32) -> (i32, i32) {
    %c0_i32 = arith.constant 0 : i32
    %c0_i32_0 = arith.constant 0 : i32
    %c0_i32_1 = arith.constant 0 : i32
    return %c0_i32, %c0_i32_0 : i32, i32
  }
  func.func @transform_7(%arg0: i32) -> (i32, i32, i32) {
    %c0_i32 = arith.constant 0 : i32
    %c0_i32_0 = arith.constant 0 : i32
    %c0_i32_1 = arith.constant 0 : i32
    %c0_i32_2 = arith.constant 0 : i32
    return %c0_i32, %c0_i32_0, %c0_i32_1 : i32, i32, i32
  }
  func.func @transform_8(%arg0: i32) -> (i32, i32) {
    %c0_i32 = arith.constant 0 : i32
    %c0_i32_0 = arith.constant 0 : i32
    %c0_i32_1 = arith.constant 0 : i32
    return %c0_i32, %c0_i32_0 : i32, i32
  }
  func.func @transform_9(%arg0: i32) -> (i32, i32, i32) {
    %c0_i32 = arith.constant 0 : i32
    %c0_i32_0 = arith.constant 0 : i32
    %c0_i32_1 = arith.constant 0 : i32
    %c0_i32_2 = arith.constant 0 : i32
    return %c0_i32, %c0_i32_0, %c0_i32_1 : i32, i32, i32
  }
  func.func @transform_10(%arg0: i32) -> (i32, i32) {
    %c0_i32 = arith.constant 0 : i32
    %c0_i32_0 = arith.constant 0 : i32
    %c0_i32_1 = arith.constant 0 : i32
    return %c0_i32, %c0_i32_0 : i32, i32
  }
  func.func @transform_11(%arg0: i32) -> (i32, i32, i32) {
    %c0_i32 = arith.constant 0 : i32
    %c0_i32_0 = arith.constant 0 : i32
    %c0_i32_1 = arith.constant 0 : i32
    %c0_i32_2 = arith.constant 0 : i32
    return %c0_i32, %c0_i32_0, %c0_i32_1 : i32, i32, i32
  }
  func.func @transform_12(%arg0: i32) -> (i32, i32) {
    %c0_i32 = arith.constant 0 : i32
    %c0_i32_0 = arith.constant 0 : i32
    %c0_i32_1 = arith.constant 0 : i32
    return %c0_i32, %c0_i32_0 : i32, i32
  }
  func.func @transform_13(%arg0: i32) -> (i32, i32, i32) {
    %c0_i32 = arith.constant 0 : i32
    %c0_i32_0 = arith.constant 0 : i32
    %c0_i32_1 = arith.constant 0 : i32
    %c0_i32_2 = arith.constant 0 : i32
    return %c0_i32, %c0_i32_0, %c0_i32_1 : i32, i32, i32
  }
  func.func @transform_14(%arg0: i32) -> (i32, i32) {
    %c0_i32 = arith.constant 0 : i32
    %c0_i32_0 = arith.constant 0 : i32
    %c0_i32_1 = arith.constant 0 : i32
    return %c0_i32, %c0_i32_0 : i32, i32
  }
  func.func @transform_15(%arg0: i32) -> (i32, i32, i32) {
    %c0_i32 = arith.constant 0 : i32
    %c0_i32_0 = arith.constant 0 : i32
    %c0_i32_1 = arith.constant 0 : i32
    %c0_i32_2 = arith.constant 0 : i32
    return %c0_i32, %c0_i32_0, %c0_i32_1 : i32, i32, i32
  }
  func.func @transform_16(%arg0: i32) -> (i32, i32) {
    %c0_i32 = arith.constant 0 : i32
    %c0_i32_0 = arith.constant 0 : i32
    %c0_i32_1 = arith.constant 0 : i32
    return %c0_i32, %c0_i32_0 : i32, i32
  }
  func.func @transform_17(%arg0: i32) -> (i32, i32, i32) {
    %c0_i32 = arith.constant 0 : i32
    %c0_i32_0 = arith.constant 0 : i32
    %c0_i32_1 = arith.constant 0 : i32
    %c0_i32_2 = arith.constant 0 : i32
    return %c0_i32, %c0_i32_0, %c0_i32_1 : i32, i32, i32
  }
  func.func @transform_18(%arg0: i32) -> (i32, i32, i32) {
    %c0_i32 = arith.constant 0 : i32
    %c0_i32_0 = arith.constant 0 : i32
    %c0_i32_1 = arith.constant 0 : i32
    %c0_i32_2 = arith.constant 0 : i32
    return %c0_i32, %c0_i32_0, %c0_i32_1 : i32, i32, i32
  }
  func.func @transform_19(%arg0: i32) -> (i32, i32, i32) {
    %c0_i32 = arith.constant 0 : i32
    %c0_i32_0 = arith.constant 0 : i32
    %c0_i32_1 = arith.constant 0 : i32
    %c0_i32_2 = arith.constant 0 : i32
    return %c0_i32, %c0_i32_0, %c0_i32_1 : i32, i32, i32
  }
  func.func @transform_20(%arg0: i32) -> (i32, i32, i32) {
    %c0_i32 = arith.constant 0 : i32
    %c0_i32_0 = arith.constant 0 : i32
    %c0_i32_1 = arith.constant 0 : i32
    %c0_i32_2 = arith.constant 0 : i32
    return %c0_i32, %c0_i32_0, %c0_i32_1 : i32, i32, i32
  }
  func.func @transform_21(%arg0: i32) -> (i32, i32, i32) {
    %c0_i32 = arith.constant 0 : i32
    %c0_i32_0 = arith.constant 0 : i32
    %c0_i32_1 = arith.constant 0 : i32
    %c0_i32_2 = arith.constant 0 : i32
    return %c0_i32, %c0_i32_0, %c0_i32_1 : i32, i32, i32
  }
  func.func @transform_22(%arg0: i32) -> (i32, i32, i32) {
    %c0_i32 = arith.constant 0 : i32
    %c0_i32_0 = arith.constant 0 : i32
    %c0_i32_1 = arith.constant 0 : i32
    %c0_i32_2 = arith.constant 0 : i32
    return %c0_i32, %c0_i32_0, %c0_i32_1 : i32, i32, i32
  }
  func.func @transform_23(%arg0: i32) -> (i32, i32, i32) {
    %c0_i32 = arith.constant 0 : i32
    %c0_i32_0 = arith.constant 0 : i32
    %c0_i32_1 = arith.constant 0 : i32
    return %arg0, %c0_i32, %c0_i32_0 : i32, i32, i32
  }
  func.func @transform_24(%arg0: i32) -> (i32, i32, i32) {
    %c0_i32 = arith.constant 0 : i32
    %c0_i32_0 = arith.constant 0 : i32
    %c0_i32_1 = arith.constant 0 : i32
    return %arg0, %c0_i32, %c0_i32_0 : i32, i32, i32
  }
  func.func @transform_25(%arg0: i32) -> (i32, i32, i32) {
    %c0_i32 = arith.constant 0 : i32
    %c0_i32_0 = arith.constant 0 : i32
    %c0_i32_1 = arith.constant 0 : i32
    return %arg0, %c0_i32, %c0_i32_0 : i32, i32, i32
  }
  func.func @transform_26(%arg0: i32) -> (i32, i32, i32) {
    %c0_i32 = arith.constant 0 : i32
    %c0_i32_0 = arith.constant 0 : i32
    %c0_i32_1 = arith.constant 0 : i32
    return %arg0, %c0_i32, %c0_i32_0 : i32, i32, i32
  }
}

</mosaic_0001>

<bundles_post_ra>
// kernel: _forward_jit.1
= control target key start
LH: loop header
LB: loop body
LE: loop exit
PB: predicated region body
PF: predicated region fallthrough
CT: control target
= control target key end

     0   :  { %s7397_s0 = inlined_call_operand.vmem [shape: f32[2,16,64], index: 0, kind: input, shape index: {}]   ;;  %s7398_s1 = inlined_call_operand.vmem [shape: f32[3,64,128], index: 1, kind: input, shape index: {}]   ;;  %s7399_s2 = inlined_call_operand.vmem [shape: f32[1,128], index: 2, kind: input, shape index: {}]   ;;  %s7400_s3 = inlined_call_operand.vmem [shape: f32[3,128,128], index: 3, kind: input, shape index: {}]   ;;  %s7401_s4 = inlined_call_operand.vmem [shape: f32[1,128], index: 4, kind: input, shape index: {}]   ;;  %s7402_s5 = inlined_call_operand.vmem [shape: f32[3,64,128], index: 5, kind: input, shape index: {}]   ;;  %s7403_s6 = inlined_call_operand.vmem [shape: f32[1,128], index: 6, kind: input, shape index: {}]   ;;  %s7404_s7 = inlined_call_operand.vmem [shape: f32[3,128,128], index: 7, kind: input, shape index: {}]   ;;  %s7405_s8 = inlined_call_operand.vmem [shape: f32[1,128], index: 8, kind: input, shape index: {}]   ;;  %s7406_s9 = inlined_call_operand.hbm [shape: f32[3,64,128], index: 9, kind: input, shape index: {}]   ;;  %s7407_s10 = inlined_call_operand.vmem [shape: f32[1,128], index: 10, kind: input, shape index: {}]   ;;  %s7408_s11 = inlined_call_operand.vmem [shape: f32[3,128,128], index: 11, kind: input, shape index: {}]   ;;  %s7409_s12 = inlined_call_operand.vmem [shape: f32[1,128], index: 12, kind: input, shape index: {}]   ;;  %s7410_s13 = inlined_call_operand.hbm [shape: f32[3,64,64], index: 13, kind: input, shape index: {}]   ;;  %s7411_s14 = inlined_call_operand.vmem [shape: f32[1,64], index: 14, kind: input, shape index: {}]   ;;  %s7412_s15 = inlined_call_operand.hbm [shape: f32[3,64,64], index: 15, kind: input, shape index: {}]   ;;  %s7413_s16 = inlined_call_operand.vmem [shape: f32[1,64], index: 16, kind: input, shape index: {}]   ;;  %s7414_s17 = inlined_call_operand.vmem [shape: f32[2,8,16], index: 17, kind: input, shape index: {}]   ;;  %s7415_s18 = inlined_call_operand.vmem [shape: f32[2,128,64], index: 18, kind: input, shape index: {}]   ;;  %s7416_s19 = inlined_call_operand.vmem [shape: f32[2,4,8], index: 19, kind: input, shape index: {}]   ;;  %s7417_s20 = inlined_call_operand.vmem [shape: f32[2,128,64], index: 20, kind: input, shape index: {}]   ;;  %s7418_s21 = inlined_call_operand.vmem [shape: f32[2,2,4], index: 21, kind: input, shape index: {}]   ;;  %s7419_s22 = inlined_call_operand.vmem [shape: f32[2,128,64], index: 22, kind: input, shape index: {}]   ;;  %s7420_s23 = inlined_call_operand.vmem [shape: f32[2,16,128], index: 23, kind: output, shape index: {0}]   ;;  %s7421_s24 = inlined_call_operand.vmem [shape: f32[2,8,128], index: 24, kind: output, shape index: {1}]   ;;  %s7422_s25 = inlined_call_operand.vmem [shape: f32[2,4,128], index: 25, kind: output, shape index: {2}]   ;;  %s7423_s26 = inlined_call_operand.vmem [shape: f32[2,2,64], index: 26, kind: output, shape index: {3}]  }
   0x1   :  { %7429 = sst [smem:[#allocation17_spill]] %s7397_s0 }
   0x2   :  { %7430 = sst [smem:[#allocation18_spill]] %s7398_s1 }
   0x3   :  { %7431 = sst [smem:[#allocation19_spill]] %s7399_s2 }
   0x4   :  { %7432 = sst [smem:[#allocation20_spill]] %s7400_s3 }
   0x5   :  { %7433 = sst [smem:[#allocation21_spill]] %s7401_s4 }
   0x6   :  { %7434 = sst [smem:[#allocation22_spill]] %s7402_s5 }
   0x7   :  { %7435 = sst [smem:[#allocation23_spill]] %s7403_s6 }
   0x8   :  { %7436 = sst [smem:[#allocation24_spill]] %s7404_s7 }
   0x9   :  { %7437 = sst [smem:[#allocation25_spill]] %s7405_s8 }
   0xa   :  { %7438 = sst [smem:[#allocation26_spill]] %s7406_s9 }
   0xb   :  { %7439 = sst [smem:[#allocation27_spill]] %s7407_s10 }
   0xc   :  { %32 = vsyncpa [#allocation11], 0 }
   0xd   :  { %33 = vsyncpa [#allocation13], 0  ;;  %s5989_s27 = smov 0  }
   0xe LB: > { %s5995_s3 = sadd.s32 4294967295, %s5845_s27   ;;  %p4222_p0 = scmp.ge.s32.totalorder %s5845_s27, 1  ;;  %s5845_s27 = sphi %s5989_s27, %s39_s27  }
   0xf   : > { %p636_p1 = scmp.lt.s32.totalorder %s5845_s27, 3  ;;  %p5731_p2 = scmp.eq.s32.totalorder %s5995_s3, 0 }
  0x10   : > { %s5847_s28 = smov [#allocation12]   ;;  %s5848_s4 = smov [#allocation10]  }
  0x11   : > { %p6000_p3 = pnand %p4222_p0, %p636_p1  ;;  %s694_s8 = sshll.u32 %s5847_s28, 4  ;;  %s695_s8 = int_to_ptr.vmem [resolvable:$true] %s694_s8 }
  0x12   : > { %s672_s29 = sshll.u32 %s5848_s4, 4  ;;  %s5849_s9 = smov [#allocation14]   ;;  %s673_s29 = int_to_ptr.vmem [resolvable:$true] %s672_s29 }
  0x13   : > { %p5721_p4 = pneg %p6000_p3  ;;  %s710_s30 = sshll.u32 %s5849_s9, 4  ;;  %s6012_s30 = int_to_ptr.vmem [resolvable:$true] %s710_s30 }
  0x14   : > { %s5764_s2 = scalar_lea.vmem %s695_s8, 3072  ;;  %p5772_p10 = scmp.lt.s32.totalorder %s695_s8, %s695_s8 }
  0x15   : > { %p6008_p5 = pnand %p5731_p2, %p5721_p4  ;;  %p5765_p7 = scmp.ne.s32.totalorder %s695_s8, %s5764_s2 }
  0x16   : > { %p5773_p11 = scmp.lt.s32.totalorder %s5764_s2, %s5764_s2 }
  0x17   : > { %p5755_p6 = pneg %p6008_p5 }
  0x18   : > { %p5774_p12 = por %p5773_p11, %p5772_p10 }
  0x19   : > { %p5767_p8 = pnand %p5765_p7, %p5755_p6 }
  0x1b   : > { %p5768_p9 = pneg %p5767_p8 }
  0x1d   : > { %p5775_p13 = pnand %p5774_p12, %p5768_p9 }
  0x1f   : > { %5778 = shalt.err (!%p5775_p13)
}
  0x20   : > { %s5850_s5 = smov 128   ;;  %s5851_s10 = smov 8  }
  0x21   : > { %5727 = dma.hbm_to_vmem [thread:$0]  (!%p6008_p5), %s7410_s13, 3072, %s695_s8, [#allocation13], %s5850_s5, %s5850_s5, %s5851_s10  }
  0x22   : > { %s5790_s28 = scalar_lea.vmem %s673_s29, 3072  ;;  %p5798_p7 = scmp.lt.s32.totalorder %s673_s29, %s673_s29 }
  0x23   : > { %p5791_p0 = scmp.ne.s32.totalorder %s673_s29, %s5790_s28  ;;  %p5799_p8 = scmp.lt.s32.totalorder %s5790_s28, %s5790_s28 }
  0x25   : > { %p5793_p1 = pnand %p5791_p0, %p5755_p6  ;;  %p5800_p10 = por %p5799_p8, %p5798_p7 }
  0x27   : > { %p5794_p4 = pneg %p5793_p1 }
  0x29   : > { %p5801_p9 = pnand %p5800_p10, %p5794_p4 }
  0x2b   : > { %5804 = shalt.err (!%p5801_p9)
}
  0x2c   : > { %s7442_s2 = sld [smem:[#allocation26_spill]]  ;;  %s5816_s8 = scalar_lea.vmem %s6012_s30, 3072 }
  0x2d   : > { %p5817_p11 = scmp.ne.s32.totalorder %s6012_s30, %s5816_s8  ;;  %p5824_p0 = scmp.lt.s32.totalorder %s6012_s30, %s6012_s30 }
  0x2e   : > { %p5825_p1 = scmp.lt.s32.totalorder %s5816_s8, %s5816_s8 }
  0x2f   : > { %p5819_p12 = pnand %p5817_p11, %p5755_p6 }
  0x30   : > { %p5826_p4 = por %p5825_p1, %p5824_p0 }
  0x31   : > { %p5820_p13 = pneg %p5819_p12 }
  0x32   : > { %5724 = dma.hbm_to_vmem [thread:$0]  (!%p6008_p5), %s7442_s2, 3072, %s673_s29, [#allocation11], %s5850_s5, %s5850_s5, %s5851_s10  }
  0x33   : > { %p5827_p7 = pnand %p5826_p4, %p5820_p13 }
  0x35   : > { %5830 = shalt.err (!%p5827_p7)
}
  0x36   : > { %5730 = dma.hbm_to_vmem [thread:$0]  (!%p6008_p5), %s7412_s15, 3072, %s6012_s30, [#allocation13], %s5850_s5, %s5850_s5, %s5851_s10  }
  0x37   : > { %755 = sbr.rel (%p6000_p3) target bundleno = 3089 (0xc11), region = 112 }
  0x3c   : > { %5836 = dma.done.wait (%p5731_p2), [#allocation11], 3072  }
  0x3d   : > { %5838 = vsyncadd (%p5731_p2), [#allocation11], 4294964224 }
  0x3e   : > { %5840 = dma.done.wait (%p5731_p2), [#allocation13], 6144  }
  0x3f   : > { %5842 = vsyncadd (%p5731_p2), [#allocation13], 4294961152  ;;  %p845_p6 = scmp.lt.s32.totalorder %s5995_s3, 1  ;;  %vm869_vm0 = vcmask 523264   ;;  %vm872_vm1 = vcmask 517120   ;;  %v5852_v0 = vmov 0.0  }
  0x40   : > { %870 = vst.msk [vmem:[#allocation2] sm:$0xff] %vm869_vm0, %v5852_v0  ;;  %871 = vst.msk [vmem:[#allocation2 + $0x8] sm:$0xff] %vm869_vm0, %v5852_v0  ;;  %s7443_s30 = sld [smem:[#allocation18_spill]]  ;;  %vm5853_vm2 = vmmov 0   ;;  %vm1466_vm3 = vcmask 130048   ;;  %vm2329_vm4 = vcmask 64512  }
  0x41   : > { %1164 = vst [vmem:[#allocation3] sm:$0xff] %v5852_v0  ;;  %1165 = vst [vmem:[#allocation3 + $0x8] sm:$0xff] %v5852_v0  ;;  %s7454_s3 = smov (!%p845_p6, %s5995_s3), 1  ;;  %s7444_s10 = sld [smem:[#allocation17_spill]]  ;;  %vm2653_vm5 = vcmask 521216   ;;  %vm2655_vm6 = vcmask 519168  }
  0x42   : > { %1166 = vst [vmem:[#allocation3 + $0x10] sm:$0x3] %v5852_v0  ;;  %1790 = vst.msk [vmem:[#allocation4] sm:$0xff] %vm869_vm0, %v5852_v0  ;;  %s4453_s7 = sshll.u32 %s7454_s3, 4  ;;  %s7445_s1 = sld [smem:[#allocation20_spill]]  ;;  %vm3196_vm7 = vcmask 1043456  }
  0x43   : > { %2051 = vst [vmem:[#allocation5] sm:$0xff] %v5852_v0  ;;  %2052 = vst [vmem:[#allocation5 + $0x8] sm:$0x3] %v5852_v0  ;;  %s7446_s9 = sld [smem:[#allocation19_spill]]  ;;  %s4235_s2 = sshll.u32 %s7454_s3, 3  ;;  %vm3192_vm8 = vcmask 31744  }
  0x44   : > { %2915 = vst [vmem:[#allocation7] sm:$0x3f] %v5852_v0  ;;  %873 = vst.msk [vmem:[#allocation2 + $0x10] sm:$0x3] %vm872_vm1, %v5852_v0  ;;  %s7450_s29 = sld [smem:[#allocation23_spill]]  ;;  %s4236_s5 = sshll.u32 %s7454_s3, 2 }
  0x45   : > { %1791 = vst.msk [vmem:[#allocation4 + $0x8] sm:$0x3] %vm872_vm1, %v5852_v0  ;;  %s4237_s8 = sshll.u32 %s7454_s3, 1 }
  0x46   : > { %v4245_v1 = vld [vmem:[%s7443_s30 + $0x78] sm:$0xff]  ;;  %v4244_v3 = vld [vmem:[%s7443_s30 + $0x70] sm:$0xff]  ;;  %v4243_v5 = vld [vmem:[%s7443_s30 + $0x68] sm:$0xff]  ;;  %s866_s0 = scalar_lea.vmem %s7423_s26, %s4237_s8 }
  0x47   : > { %v885_v2 = vld [vmem:[%s7443_s30 + $0x38] sm:$0xff]  ;;  %4865 = vmatprep.subr.mxu0 %v4245_v1  ;;  %v884_v4 = vld [vmem:[%s7443_s30 + $0x30] sm:$0xff]  ;;  %v883_v6 = vld [vmem:[%s7443_s30 + $0x28] sm:$0xff]  ;;  %s849_s28 = scalar_lea.vmem %s7444_s10, %s4453_s7  ;;  %s7447_s10 = sld [smem:[#allocation21_spill]] }
  0x48   : > { %4884 = vmatprep.subr.mxu1 %v885_v2  ;;  %4866 = vmatpush3.msra.mxu0 %v4245_v1  ;;  %v4242_v7 = vld [vmem:[%s7443_s30 + $0x60] sm:$0xff]  ;;  %v868_v10 = vld [vmem:[%s849_s28 + $0x8] sm:$0xff]  ;;  %v4241_v11 = vld [vmem:[%s7443_s30 + $0x58] sm:$0xff] }
  0x49   : > { %4885 = vmatpush3.msra.mxu1 %v885_v2  ;;  %4867 = vmatprep.subr.mxu0 %v4244_v3  ;;  %v882_v8 = vld [vmem:[%s7443_s30 + $0x20] sm:$0xff]  ;;  %v881_v12 = vld [vmem:[%s7443_s30 + $0x18] sm:$0xff]  ;;  %875 = vst.msk [vmem:[#allocation2 + $0x9] sm:$0xff] %vm869_vm0, %v868_v10  ;;  %v4240_v13 = vld [vmem:[%s7443_s30 + $0x50] sm:$0xff] }
  0x4a   : > { %4886 = vmatprep.subr.mxu1 %v884_v4  ;;  %4868 = vmatpush3.msra.mxu0 %v4244_v3  ;;  %v867_v9 = vld [vmem:[%s849_s28] sm:$0xff]  ;;  %v880_v14 = vld [vmem:[%s7443_s30 + $0x10] sm:$0xff]  ;;  %v4239_v15 = vld [vmem:[%s7443_s30 + $0x48] sm:$0xff]  ;;  %s7452_s28 = sld [smem:[#allocation27_spill]] }
  0x4b   : > { %4887 = vmatpush3.msra.mxu1 %v884_v4  ;;  %4869 = vmatprep.subr.mxu0 %v4243_v5  ;;  %874 = vst.msk [vmem:[#allocation2 + $0x1] sm:$0xff] %vm869_vm0, %v867_v9  ;;  %v879_v16 = vld [vmem:[%s7443_s30 + $0x8] sm:$0xff]  ;;  %v4238_v17 = vld [vmem:[%s7443_s30 + $0x40] sm:$0xff]  ;;  %v4257_v23 = vld [vmem:[%s7443_s30 + $0xb8] sm:$0xff] }
  0x4c   : > { %4888 = vmatprep.subr.mxu1 %v883_v6  ;;  %4870 = vmatpush3.msra.mxu0 %v4243_v5  ;;  %v878_v18 = vld [vmem:[%s7443_s30] sm:$0xff]  ;;  %v4256_v25 = vld [vmem:[%s7443_s30 + $0xb0] sm:$0xff]  ;;  %v4255_v26 = vld [vmem:[%s7443_s30 + $0xa8] sm:$0xff] }
  0x4d   : > { %4889 = vmatpush3.msra.mxu1 %v883_v6  ;;  %4871 = vmatprep.subr.mxu0 %v4242_v7  ;;  %v4254_v27 = vld [vmem:[%s7443_s30 + $0xa0] sm:$0xff]  ;;  %v4253_v28 = vld [vmem:[%s7443_s30 + $0x98] sm:$0xff]  ;;  %v4252_v29 = vld [vmem:[%s7443_s30 + $0x90] sm:$0xff] }
  0x4e   : > { %4890 = vmatprep.subr.mxu1 %v882_v8  ;;  %4872 = vmatpush3.msra.mxu0 %v4242_v7  ;;  %v4251_v30 = vld [vmem:[%s7443_s30 + $0x88] sm:$0xff]  ;;  %v4250_v31 = vld [vmem:[%s7443_s30 + $0x80] sm:$0xff]  ;;  %v4276_v33 = vld [vmem:[%s7445_s1 + $0xf8] sm:$0xff] }
  0x4f   : > { %4891 = vmatpush3.msra.mxu1 %v882_v8  ;;  %4873 = vmatprep.subr.mxu0 %v4241_v11  ;;  %v4275_v34 = vld [vmem:[%s7445_s1 + $0xf0] sm:$0xff]  ;;  %v4274_v35 = vld [vmem:[%s7445_s1 + $0xe8] sm:$0xff]  ;;  %v4273_v36 = vld [vmem:[%s7445_s1 + $0xe0] sm:$0xff] }
  0x50   : > { %4892 = vmatprep.subr.mxu1 %v881_v12  ;;  %4874 = vmatpush3.msra.mxu0 %v4241_v11  ;;  %v887_v21 = vld [vmem:[#allocation2 + $0x9] sm:$0xff]  ;;  %v4272_v37 = vld [vmem:[%s7445_s1 + $0xd8] sm:$0xff]  ;;  %v1183_v43 = vld [vmem:[%s7445_s1 + $0x60] sm:$0xff] }
  0x51   : > { %4893 = vmatpush3.msra.mxu1 %v881_v12  ;;  %4875 = vmatprep.subr.mxu0 %v4240_v13  ;;  %v1060_v32 = vld [vmem:[#allocation2 + $0xa] sm:$0xff]  ;;  %v1186_v38 = vld [vmem:[%s7445_s1 + $0x78] sm:$0xff]  ;;  %v4269_v44 = vld [vmem:[%s7445_s1 + $0xc0] sm:$0xff] }
  0x52   : > { %4894 = vmatprep.subr.mxu1 %v880_v14  ;;  %4876 = vmatpush3.msra.mxu0 %v4240_v13  ;;  %v886_v19 = vld [vmem:[#allocation2 + $0x1] sm:$0xff]  ;;  %v1185_v39 = vld [vmem:[%s7445_s1 + $0x70] sm:$0xff]  ;;  %v1182_v45 = vld [vmem:[%s7445_s1 + $0x58] sm:$0xff] }
  0x53   : > { %4895 = vmatpush3.msra.mxu1 %v880_v14  ;;  %4877 = vmatprep.subr.mxu0 %v4239_v15  ;;  %v876_v20 = vld [vmem:[#allocation2] sm:$0xff]  ;;  %v877_v22 = vld [vmem:[#allocation2 + $0x8] sm:$0xff]  ;;  %v4271_v41 = vld [vmem:[%s7445_s1 + $0xd0] sm:$0xff] }
  0x54   : > { %4896 = vmatprep.subr.mxu1 %v879_v16  ;;  %4878 = vmatpush3.msra.mxu0 %v4239_v15  ;;  %v1059_v24 = vld [vmem:[#allocation2 + $0x2] sm:$0xff]  ;;  %v4268_v46 = vld [vmem:[%s7445_s1 + $0xb8] sm:$0xff]  ;;  %v1181_v47 = vld [vmem:[%s7445_s1 + $0x50] sm:$0xff] }
  0x55   : > { %4897 = vmatpush3.msra.mxu1 %v879_v16  ;;  %4879 = vmatprep.subr.mxu0 %v4238_v17  ;;  %v1184_v40 = vld [vmem:[%s7445_s1 + $0x68] sm:$0xff]  ;;  %v4267_v48 = vld [vmem:[%s7445_s1 + $0xb0] sm:$0xff]  ;;  %v4265_v51 = vld [vmem:[%s7445_s1 + $0xa0] sm:$0xff] }
  0x56   : > { %4898 = vmatprep.subr.mxu1 %v878_v18  ;;  %4880 = vmatpush3.msra.mxu0 %v4238_v17  ;;  %v4270_v42 = vld [vmem:[%s7445_s1 + $0xc8] sm:$0xff]  ;;  %v1179_v52 = vld [vmem:[%s7445_s1 + $0x40] sm:$0xff]  ;;  %v4264_v53 = vld [vmem:[%s7445_s1 + $0x98] sm:$0xff] }
  0x57   : > { %4881 = vmatprep.mubr.msk.f32.mxu0 %vm869_vm0, %v886_v19  ;;  %4899 = vmatpush3.msra.mxu1 %v878_v18  ;;  %v1180_v49 = vld [vmem:[%s7445_s1 + $0x48] sm:$0xff]  ;;  %v1178_v54 = vld [vmem:[%s7445_s1 + $0x38] sm:$0xff]  ;;  %v4263_v55 = vld [vmem:[%s7445_s1 + $0x90] sm:$0xff] }
  0x58   : > { %4900 = vmatprep.mubr.msk.f32.mxu1 %vm869_vm0, %v876_v20  ;;  %4882 = vmatmul.mubr.msk.f32.vlgmr.msra.gmra.mxu0 %vm869_vm0, %v887_v21  ;;  %v4266_v50 = vld [vmem:[%s7445_s1 + $0xa8] sm:$0xff]  ;;  %v1177_v56 = vld [vmem:[%s7445_s1 + $0x30] sm:$0xff]  ;;  %v4261_v59 = vld [vmem:[%s7445_s1 + $0x80] sm:$0xff] }
  0x59   : > { %4901 = vmatmul.mubr.msk.f32.vlgmr.msra.gmra.mxu1 %vm869_vm0, %v877_v22  ;;  %4903 = vmatprep.subr.mxu0 %v4257_v23  ;;  %v4262_v57 = vld [vmem:[%s7445_s1 + $0x88] sm:$0xff]  ;;  %v1175_v60 = vld [vmem:[%s7445_s1 + $0x20] sm:$0xff]  ;;  %v4292_v61 = vld [vmem:[%s7445_s1 + $0x178] sm:$0xff] }
  0x5a   : > { %4919 = vmatprep.mubr.msk.f32.mxu0 %vm869_vm0, %v1059_v24  ;;  %4904 = vmatpush3.msra.mxu0 %v4257_v23  ;;  %v1176_v58 = vld [vmem:[%s7445_s1 + $0x28] sm:$0xff]  ;;  %v1174_v62 = vld [vmem:[%s7445_s1 + $0x18] sm:$0xff]  ;;  %v1173_v63 = vld [vmem:[%s7445_s1 + $0x10] sm:$0xff] }
  0x5b   : > { %4905 = vmatprep.subr.mxu0 %v4256_v25  ;;  %4922 = vmatprep.subr.mxu1 %v4276_v33  ;;  %v1172_v1 = vld [vmem:[%s7445_s1 + $0x8] sm:$0xff]  ;;  %v1171_v2 = vld [vmem:[%s7445_s1] sm:$0xff]  ;;  %v4291_v18 = vld [vmem:[%s7445_s1 + $0x170] sm:$0xff] }
  0x5c   : > { %4906 = vmatpush3.msra.mxu0 %v4256_v25  ;;  %4923 = vmatpush3.msra.mxu1 %v4276_v33  ;;  %v4260_v9 = vld [vmem:[%s7446_s9] ss:$0 sm:$0xff]  ;;  %v4290_v19 = vld [vmem:[%s7445_s1 + $0x168] sm:$0xff]  ;;  %v4288_v21 = vld [vmem:[%s7445_s1 + $0x158] sm:$0xff]  ;;  %s854_s9 = scalar_lea.vmem %s7420_s23, %s4453_s7  ;;  %s7448_s7 = sld [smem:[#allocation22_spill]] }
  0x5d   : > { %4907 = vmatprep.subr.mxu0 %v4255_v26  ;;  %4924 = vmatprep.subr.mxu1 %v4275_v34  ;;  %v4289_v20 = vld [vmem:[%s7445_s1 + $0x160] sm:$0xff]  ;;  %v4287_v25 = vld [vmem:[%s7445_s1 + $0x150] sm:$0xff] }
  0x5e   : > { %4908 = vmatpush3.msra.mxu0 %v4255_v26  ;;  %4925 = vmatpush3.msra.mxu1 %v4275_v34  ;;  %v4286_v26 = vld [vmem:[%s7445_s1 + $0x148] sm:$0xff]  ;;  %v4279_v33 = vld [vmem:[%s7445_s1 + $0x110] sm:$0xff] }
  0x5f   : > { %4909 = vmatprep.subr.mxu0 %v4254_v27  ;;  %4926 = vmatprep.subr.mxu1 %v4274_v35  ;;  %v4278_v34 = vld [vmem:[%s7445_s1 + $0x108] sm:$0xff] }
  0x60   : > { %4910 = vmatpush3.msra.mxu0 %v4254_v27  ;;  %4927 = vmatpush3.msra.mxu1 %v4274_v35  ;;  %v4285_v27 = vld [vmem:[%s7445_s1 + $0x140] sm:$0xff] }
  0x61   : > { %4911 = vmatprep.subr.mxu0 %v4253_v28  ;;  %4928 = vmatprep.subr.mxu1 %v4273_v36  ;;  %v4277_v35 = vld [vmem:[%s7445_s1 + $0x100] sm:$0xff] }
  0x62   : > { %4912 = vmatpush3.msra.mxu0 %v4253_v28  ;;  %4929 = vmatpush3.msra.mxu1 %v4273_v36  ;;  %v4284_v28 = vld [vmem:[%s7445_s1 + $0x138] sm:$0xff] }
  0x63   : > { %4913 = vmatprep.subr.mxu0 %v4252_v29  ;;  %4930 = vmatprep.subr.mxu1 %v4272_v37 }
  0x64   : > { %4914 = vmatpush3.msra.mxu0 %v4252_v29  ;;  %4931 = vmatpush3.msra.mxu1 %v4272_v37  ;;  %v4283_v29 = vld [vmem:[%s7445_s1 + $0x130] sm:$0xff]  ;;  %v4312_v37 = vld [vmem:[%s7415_s18 + $0xf8] sm:$0xff] }
  0x65   : > { %4915 = vmatprep.subr.mxu0 %v4251_v30  ;;  %4932 = vmatprep.subr.mxu1 %v4271_v41 }
  0x66   : > { %4916 = vmatpush3.msra.mxu0 %v4251_v30  ;;  %4933 = vmatpush3.msra.mxu1 %v4271_v41  ;;  %v4282_v30 = vld [vmem:[%s7445_s1 + $0x128] sm:$0xff]  ;;  %v4308_v41 = vld [vmem:[%s7415_s18 + $0xd8] sm:$0xff] }
  0x67   : > { %4917 = vmatprep.subr.mxu0 %v4250_v31  ;;  %4934 = vmatprep.subr.mxu1 %v4270_v42 }
  0x68   : > { %4918 = vmatpush3.msra.mxu0 %v4250_v31  ;;  %4935 = vmatpush3.msra.mxu1 %v4270_v42  ;;  %v4281_v31 = vld [vmem:[%s7445_s1 + $0x120] sm:$0xff]  ;;  %v4307_v42 = vld [vmem:[%s7415_s18 + $0xd0] sm:$0xff] }
  0x69   : > { %4920 = vmatmul.mubr.msk.f32.vlgmr.msra.gmra.mxu0 %vm869_vm0, %v1060_v32  ;;  %4957 = vmatprep.subr.mxu0 %v1186_v38  ;;  %v4280_v32 = vld [vmem:[%s7445_s1 + $0x118] sm:$0xff] }
  0x6a   : > { %4958 = vmatpush3.msra.mxu0 %v1186_v38  ;;  %4936 = vmatprep.subr.mxu1 %v4269_v44  ;;  %v4311_v38 = vld [vmem:[%s7415_s18 + $0xf0] sm:$0xff] }
  0x6b   : > { %4959 = vmatprep.subr.mxu0 %v1185_v39  ;;  %4937 = vmatpush3.msra.mxu1 %v4269_v44  ;;  %v4305_v44 = vld [vmem:[%s7415_s18 + $0xc0] sm:$0xff] }
  0x6c   : > { %4960 = vmatpush3.msra.mxu0 %v1185_v39  ;;  %4938 = vmatprep.subr.mxu1 %v4268_v46  ;;  %v4310_v39 = vld [vmem:[%s7415_s18 + $0xe8] sm:$0xff] }
  0x6d   : > { %4961 = vmatprep.subr.mxu0 %v1184_v40  ;;  %4939 = vmatpush3.msra.mxu1 %v4268_v46  ;;  %v4303_v46 = vld [vmem:[%s7415_s18 + $0xb0] sm:$0xff] }
  0x6e   : > { %4962 = vmatpush3.msra.mxu0 %v1184_v40  ;;  %4940 = vmatprep.subr.mxu1 %v4267_v48  ;;  %v4309_v40 = vld [vmem:[%s7415_s18 + $0xe0] sm:$0xff] }
  0x6f   : > { %4963 = vmatprep.subr.mxu0 %v1183_v43  ;;  %4941 = vmatpush3.msra.mxu1 %v4267_v48  ;;  %v4301_v48 = vld [vmem:[%s7415_s18 + $0xa0] sm:$0xff] }
  0x70   : > { %4964 = vmatpush3.msra.mxu0 %v1183_v43  ;;  %4942 = vmatprep.subr.mxu1 %v4266_v50  ;;  %v4306_v43 = vld [vmem:[%s7415_s18 + $0xc8] sm:$0xff] }
  0x71   : > { %4965 = vmatprep.subr.mxu0 %v1182_v45  ;;  %4943 = vmatpush3.msra.mxu1 %v4266_v50 }
  0x72   : > { %4966 = vmatpush3.msra.mxu0 %v1182_v45  ;;  %4944 = vmatprep.subr.mxu1 %v4265_v51  ;;  %v4304_v45 = vld [vmem:[%s7415_s18 + $0xb8] sm:$0xff] }
  0x73   : > { %4967 = vmatprep.subr.mxu0 %v1181_v47  ;;  %4945 = vmatpush3.msra.mxu1 %v4265_v51 }
  0x74   : > { %4968 = vmatpush3.msra.mxu0 %v1181_v47  ;;  %4946 = vmatprep.subr.mxu1 %v4264_v53  ;;  %v4302_v47 = vld [vmem:[%s7415_s18 + $0xa8] sm:$0xff] }
  0x75   : > { %4969 = vmatprep.subr.mxu0 %v1180_v49  ;;  %4947 = vmatpush3.msra.mxu1 %v4264_v53 }
  0x76   : > { %4970 = vmatpush3.msra.mxu0 %v1180_v49  ;;  %4948 = vmatprep.subr.mxu1 %v4263_v55 }
  0x77   : > { %4971 = vmatprep.subr.mxu0 %v1179_v52  ;;  %4949 = vmatpush3.msra.mxu1 %v4263_v55  ;;  %v4293_v55 = vld [vmem:[%s7447_s10] ss:$0 sm:$0xff]  ;;  %s7449_s10 = sld [smem:[#allocation24_spill]] }
  0x78   : > { %4972 = vmatpush3.msra.mxu0 %v1179_v52  ;;  %4950 = vmatprep.subr.mxu1 %v4262_v57 }
  0x79   : > { %4973 = vmatprep.subr.mxu0 %v1178_v54  ;;  %4951 = vmatpush3.msra.mxu1 %v4262_v57 }
  0x7a   : > { %4974 = vmatpush3.msra.mxu0 %v1178_v54  ;;  %4952 = vmatprep.subr.mxu1 %v4261_v59 }
  0x7b   : > { %4975 = vmatprep.subr.mxu0 %v1177_v56  ;;  %4953 = vmatpush3.msra.mxu1 %v4261_v59 }
  0x7c   : > { %4976 = vmatpush3.msra.mxu0 %v1177_v56  ;;  %4992 = vmatprep.subr.mxu1 %v4292_v61 }
  0x7d   : > { %4977 = vmatprep.subr.mxu0 %v1176_v58 }
  0x7e   : > { %4978 = vmatpush3.msra.mxu0 %v1176_v58 }
  0x7f   : > { %4979 = vmatprep.subr.mxu0 %v1175_v60 }
  0x80   : > { %4980 = vmatpush3.msra.mxu0 %v1175_v60 }
  0x81   : > { %4981 = vmatprep.subr.mxu0 %v1174_v62 }
  0x82   : > { %4982 = vmatpush3.msra.mxu0 %v1174_v62 }
  0x83   : > { %4983 = vmatprep.subr.mxu0 %v1173_v63 }
  0x84   : > { %4984 = vmatpush3.msra.mxu0 %v1173_v63 }
  0x85   : > { %4985 = vmatprep.subr.mxu0 %v1172_v1 }
  0x86   : > { %4986 = vmatpush3.msra.mxu0 %v1172_v1  ;;  %v1465_v1 = vld [vmem:[%s7414_s17] sm:$0xff] }
  0x87   : > { %4987 = vmatprep.subr.mxu0 %v1171_v2 }
  0x88   : > { %4988 = vmatpush3.msra.mxu0 %v1171_v2  ;;  %v4295_v2 = vld [vmem:[%s7414_s17 + $0x8] sm:$0xff] }
  0x89   : > { %5027 = vmatprep.subr.mxu0 %v5852_v0 }
 0x118   : > { %v4883_v3 = vpop.f32.mrf.mxu0 }
 0x119   : > { %v4902_v4 = vpop.f32.mrf.mxu1 }
 0x11a   : > { %v969_v5 = vpop.f32.mrf.mxu0  ;;  %v1056_v7 = vadd.f32 %v4902_v4, %v4883_v3  ;;  %v1631_v3 = vld [vmem:[%s7415_s18 + $0x78] sm:$0xff]  ;;  %v1630_v4 = vld [vmem:[%s7415_s18 + $0x70] sm:$0xff] }
 0x11b   : > { %v1050_v6 = vpop.f32.mrf.mxu1 }
 0x11c   : > { %v1051_v10 = vadd.f32 %v1050_v6, %v969_v5  ;;  %v1629_v5 = vld [vmem:[%s7415_s18 + $0x68] sm:$0xff]  ;;  %v1628_v6 = vld [vmem:[%s7415_s18 + $0x60] sm:$0xff] }
 0x129   : > { %v4921_v8 = vpop.f32.mrf.mxu0 }
 0x12a   : > { %v1152_v11 = vadd.f32 %v4921_v8, %v1056_v7  ;;  %v1627_v7 = vld [vmem:[%s7415_s18 + $0x58] sm:$0xff]  ;;  %v1626_v8 = vld [vmem:[%s7415_s18 + $0x50] sm:$0xff] }
 0x12b   : > { %v1142_v12 = vpop.f32.mrf.mxu0 }
 0x12c   : > { %v1161_v13 = vadd.f32 %v4260_v9, %v1152_v11  ;;  %v1151_v14 = vadd.f32 %v1142_v12, %v1051_v10  ;;  %v1624_v10 = vld [vmem:[%s7415_s18 + $0x40] sm:$0xff]  ;;  %v1623_v11 = vld [vmem:[%s7415_s18 + $0x38] sm:$0xff]  ;;  %v1622_v12 = vld [vmem:[%s7415_s18 + $0x30] sm:$0xff] }
 0x12e   : > { %v1163_v15 = vmax.f32 %v1161_v13, 0.0  ;;  %v1160_v16 = vadd.f32 %v4260_v9, %v1151_v14  ;;  %v1625_v9 = vld [vmem:[%s7415_s18 + $0x48] sm:$0xff]  ;;  %v1620_v14 = vld [vmem:[%s7415_s18 + $0x20] sm:$0xff] }
 0x12f   : > { %v1621_v13 = vld [vmem:[%s7415_s18 + $0x28] sm:$0xff] }
 0x130   : > { %1168 = vst [vmem:[#allocation3 + $0x9] sm:$0xff] %v1163_v15  ;;  %v1162_v17 = vmax.f32 %v1160_v16, 0.0  ;;  %v4300_v16 = vld [vmem:[%s7415_s18 + $0x98] sm:$0xff] }
 0x132   : > { %1167 = vst [vmem:[#allocation3 + $0x1] sm:$0xff] %v1162_v17  ;;  %4954 = vmatprep.mubr.f32.mxu1 %v1162_v17  ;;  %v1618_v17 = vld [vmem:[%s7415_s18 + $0x10] sm:$0xff] }
 0x133   : > { %4955 = vmatmul.mubr.f32.vlgmr.msra.gmra.mxu1 %v1163_v15  ;;  %v1619_v15 = vld [vmem:[%s7415_s18 + $0x18] sm:$0xff] }
 0x134   : > { %4993 = vmatpush3.msra.mxu1 %v4292_v61 }
 0x135   : > { %4994 = vmatprep.subr.mxu1 %v4291_v18 }
 0x136   : > { %4995 = vmatpush3.msra.mxu1 %v4291_v18  ;;  %v4299_v18 = vld [vmem:[%s7415_s18 + $0x90] sm:$0xff] }
 0x137   : > { %4996 = vmatprep.subr.mxu1 %v4290_v19  ;;  %v1357_v36 = vld [vmem:[#allocation3 + $0xa] sm:$0xff] }
 0x138   : > { %4997 = vmatpush3.msra.mxu1 %v4290_v19  ;;  %v1617_v19 = vld [vmem:[%s7415_s18 + $0x8] sm:$0xff] }
 0x139   : > { %v1169_v22 = vld [vmem:[#allocation3] sm:$0xff]  ;;  %v1170_v23 = vld [vmem:[#allocation3 + $0x8] sm:$0xff]  ;;  %4998 = vmatprep.subr.mxu1 %v4289_v20 }
 0x13a   : > { %v1356_v24 = vld [vmem:[#allocation3 + $0x2] sm:$0xff]  ;;  %4989 = vmatprep.mubr.f32.mxu0 %v1169_v22  ;;  %4999 = vmatpush3.msra.mxu1 %v4289_v20  ;;  %v4298_v20 = vld [vmem:[%s7415_s18 + $0x88] sm:$0xff] }
 0x13b   : > { %5024 = vmatprep.mubr.f32.mxu1 %v1356_v24  ;;  %4990 = vmatmul.mubr.f32.vlgmr.msra.gmra.mxu0 %v1170_v23  ;;  %v4297_v22 = vld [vmem:[%s7415_s18 + $0x80] sm:$0xff] }
 0x13c   : > { %5000 = vmatprep.subr.mxu1 %v4288_v21  ;;  %5031 = vmatprep.mubr.msk.f32.mxu0 %vm5853_vm2, %v5852_v0 }
 0x13d   : > { %5001 = vmatpush3.msra.mxu1 %v4288_v21  ;;  %v1616_v21 = vld [vmem:[%s7415_s18] sm:$0xff] }
 0x13e   : > { %5002 = vmatprep.subr.mxu1 %v4287_v25 }
 0x13f   : > { %5003 = vmatpush3.msra.mxu1 %v4287_v25 }
 0x140   : > { %5004 = vmatprep.subr.mxu1 %v4286_v26 }
 0x141   : > { %5005 = vmatpush3.msra.mxu1 %v4286_v26 }
 0x142   : > { %5006 = vmatprep.subr.mxu1 %v4285_v27 }
 0x143   : > { %5007 = vmatpush3.msra.mxu1 %v4285_v27  ;;  %v4320_v27 = vld [vmem:[%s7448_s7 + $0x78] sm:$0xff] }
 0x144   : > { %5008 = vmatprep.subr.mxu1 %v4284_v28 }
 0x145   : > { %5009 = vmatpush3.msra.mxu1 %v4284_v28  ;;  %v1801_v28 = vld [vmem:[%s7448_s7 + $0x38] sm:$0xff] }
 0x146   : > { %5010 = vmatprep.subr.mxu1 %v4283_v29 }
 0x147   : > { %5011 = vmatpush3.msra.mxu1 %v4283_v29 }
 0x148   : > { %5012 = vmatprep.subr.mxu1 %v4282_v30 }
 0x149   : > { %5013 = vmatpush3.msra.mxu1 %v4282_v30  ;;  %v4319_v30 = vld [vmem:[%s7448_s7 + $0x70] sm:$0xff] }
 0x14a   : > { %5014 = vmatprep.subr.mxu1 %v4281_v31 }
 0x14b   : > { %5015 = vmatpush3.msra.mxu1 %v4281_v31  ;;  %v1800_v31 = vld [vmem:[%s7448_s7 + $0x30] sm:$0xff] }
 0x14c   : > { %5016 = vmatprep.subr.mxu1 %v4280_v32 }
 0x14d   : > { %5017 = vmatpush3.msra.mxu1 %v4280_v32  ;;  %v4318_v32 = vld [vmem:[%s7448_s7 + $0x68] sm:$0xff] }
 0x14e   : > { %5018 = vmatprep.subr.mxu1 %v4279_v33 }
 0x14f   : > { %5019 = vmatpush3.msra.mxu1 %v4279_v33  ;;  %v1799_v33 = vld [vmem:[%s7448_s7 + $0x28] sm:$0xff] }
 0x150   : > { %5020 = vmatprep.subr.mxu1 %v4278_v34 }
 0x151   : > { %5021 = vmatpush3.msra.mxu1 %v4278_v34  ;;  %v4317_v34 = vld [vmem:[%s7448_s7 + $0x60] sm:$0xff] }
 0x152   : > { %5022 = vmatprep.subr.mxu1 %v4277_v35 }
 0x153   : > { %5023 = vmatpush3.msra.mxu1 %v4277_v35  ;;  %v1798_v35 = vld [vmem:[%s7448_s7 + $0x20] sm:$0xff] }
 0x154   : > { %5025 = vmatmul.mubr.f32.vlgmr.msra.gmra.mxu1 %v1357_v36  ;;  %5076 = vmatprep.subr.mxu1 %v5852_v0  ;;  %v4316_v36 = vld [vmem:[%s7448_s7 + $0x58] sm:$0xff] }
 0x155   : > { %5108 = vmatprep.mubr.msk.f32.mxu1 %vm5853_vm2, %v5852_v0  ;;  %5077 = vmatpush3.msra.mxu1 %v4312_v37  ;;  %v1797_v37 = vld [vmem:[%s7448_s7 + $0x18] sm:$0xff] }
 0x156   : > { %5078 = vmatprep.subr.mxu1 %v5852_v0 }
 0x157   : > { %5079 = vmatpush3.msra.mxu1 %v4311_v38  ;;  %v4315_v38 = vld [vmem:[%s7448_s7 + $0x50] sm:$0xff] }
 0x158   : > { %5080 = vmatprep.subr.mxu1 %v5852_v0 }
 0x159   : > { %5081 = vmatpush3.msra.mxu1 %v4310_v39  ;;  %v1796_v39 = vld [vmem:[%s7448_s7 + $0x10] sm:$0xff] }
 0x15a   : > { %5082 = vmatprep.subr.mxu1 %v5852_v0 }
 0x15b   : > { %5083 = vmatpush3.msra.mxu1 %v4309_v40  ;;  %v4314_v40 = vld [vmem:[%s7448_s7 + $0x48] sm:$0xff] }
 0x15c   : > { %5084 = vmatprep.subr.mxu1 %v5852_v0 }
 0x15d   : > { %5085 = vmatpush3.msra.mxu1 %v4308_v41  ;;  %v1795_v41 = vld [vmem:[%s7448_s7 + $0x8] sm:$0xff] }
 0x15e   : > { %5086 = vmatprep.subr.mxu1 %v5852_v0 }
 0x15f   : > { %5087 = vmatpush3.msra.mxu1 %v4307_v42  ;;  %v4313_v42 = vld [vmem:[%s7448_s7 + $0x40] sm:$0xff] }
 0x160   : > { %5088 = vmatprep.subr.mxu1 %v5852_v0 }
 0x161   : > { %5089 = vmatpush3.msra.mxu1 %v4306_v43  ;;  %v1794_v43 = vld [vmem:[%s7448_s7] sm:$0xff] }
 0x162   : > { %5090 = vmatprep.subr.mxu1 %v5852_v0 }
 0x163   : > { %5091 = vmatpush3.msra.mxu1 %v4305_v44 }
 0x164   : > { %5092 = vmatprep.subr.mxu1 %v5852_v0 }
 0x165   : > { %5093 = vmatpush3.msra.mxu1 %v4304_v45 }
 0x166   : > { %5094 = vmatprep.subr.mxu1 %v5852_v0 }
 0x167   : > { %5095 = vmatpush3.msra.mxu1 %v4303_v46 }
 0x168   : > { %5096 = vmatprep.subr.mxu1 %v5852_v0 }
 0x169   : > { %5097 = vmatpush3.msra.mxu1 %v4302_v47 }
 0x16a   : > { %5098 = vmatprep.subr.mxu1 %v5852_v0 }
 0x16b   : > { %5099 = vmatpush3.msra.mxu1 %v4301_v48 }
 0x16c   : > { %5100 = vmatprep.subr.mxu1 %v5852_v0 }
 0x16d   : > { %5101 = vmatpush3.msra.mxu1 %v4300_v16  ;;  %v4337_v16 = vld [vmem:[%s7449_s10 + $0xa0] sm:$0xff] }
 0x16e   : > { %5102 = vmatprep.subr.mxu1 %v5852_v0 }
 0x16f   : > { %5103 = vmatpush3.msra.mxu1 %v4299_v18  ;;  %v2062_v18 = vld [vmem:[%s7449_s10 + $0x38] sm:$0xff] }
 0x170   : > { %5104 = vmatprep.subr.mxu1 %v5852_v0 }
 0x171   : > { %5105 = vmatpush3.msra.mxu1 %v4298_v20  ;;  %v2061_v20 = vld [vmem:[%s7449_s10 + $0x30] sm:$0xff] }
 0x172   : > { %5106 = vmatprep.subr.mxu1 %v5852_v0 }
 0x173   : > { %5107 = vmatpush3.msra.mxu1 %v4297_v22  ;;  %v2060_v22 = vld [vmem:[%s7449_s10 + $0x28] sm:$0xff] }
 0x174   : > { %5130 = vmatprep.subr.mxu1 %v5852_v0 }
 0x1f3   : > { %v4956_v49 = vpop.f32.mrf.mxu1 }
 0x1f5   : > { %v1272_v51 = vpop.f32.mrf.mxu1 }
 0x1fb   : > { %v4991_v50 = vpop.f32.mrf.mxu0 }
 0x1fc   : > { %v1353_v53 = vadd.f32 %v4991_v50, %v4956_v49  ;;  %v4330_v49 = vld [vmem:[%s7448_s7 + $0xb8] sm:$0xff] }
 0x1fd   : > { %v1347_v52 = vpop.f32.mrf.mxu0 }
 0x1fe   : > { %v1348_v56 = vadd.f32 %v1347_v52, %v1272_v51  ;;  %v4348_v52 = vld [vmem:[%s7449_s10 + $0xf8] sm:$0xff] }
 0x214   : > { %v5026_v54 = vpop.f32.mrf.mxu1 }
 0x215   : > { %v1451_v57 = vadd.f32 %v5026_v54, %v1353_v53  ;;  %v4329_v53 = vld [vmem:[%s7448_s7 + $0xb0] sm:$0xff]  ;;  %v4328_v54 = vld [vmem:[%s7448_s7 + $0xa8] sm:$0xff] }
 0x216   : > { %v1441_v58 = vpop.f32.mrf.mxu1 }
 0x217   : > { %v1460_v59 = vadd.f32 %v4293_v55, %v1451_v57  ;;  %v1450_v60 = vadd.f32 %v1441_v58, %v1348_v56  ;;  %v4326_v56 = vld [vmem:[%s7448_s7 + $0x98] sm:$0xff]  ;;  %v4325_v57 = vld [vmem:[%s7448_s7 + $0x90] sm:$0xff]  ;;  %v4324_v58 = vld [vmem:[%s7448_s7 + $0x88] sm:$0xff] }
 0x219   : > { %v1462_v61 = vmax.f32 %v1460_v59, 0.0  ;;  %v1459_v62 = vadd.f32 %v4293_v55, %v1450_v60  ;;  %v4327_v55 = vld [vmem:[%s7448_s7 + $0xa0] sm:$0xff]  ;;  %v2070_v60 = vld [vmem:[%s7449_s10 + $0x78] sm:$0xff] }
 0x21a   : > { %v4323_v59 = vld [vmem:[%s7448_s7 + $0x80] sm:$0xff] }
 0x21b   : > { %1464 = vst [vmem:[%s854_s9 + $0x8] sm:$0xff] %v1462_v61  ;;  %v1461_v63 = vmax.f32 %v1459_v62, 0.0  ;;  %5028 = vmatpush3.msra.mxu0 %v1462_v61  ;;  %v4347_v62 = vld [vmem:[%s7449_s10 + $0xf0] sm:$0xff] }
 0x21c   : > { %5029 = vmatprep.subr.mxu0 %v5852_v0 }
 0x21d   : > { %1463 = vst [vmem:[%s854_s9] sm:$0xff] %v1461_v63  ;;  %5030 = vmatpush3.msra.mxu0 %v1461_v63  ;;  %s7451_s9 = sld [smem:[#allocation25_spill]] }
 0x21e   : > { %5032 = vmatmul.mubr.msk.f32.vlgmr.msra.gmra.mxu0 %vm1466_vm3, %v1465_v1  ;;  %5034 = vmatprep.subr.mxu0 %v5852_v0  ;;  %v4345_v1 = vld [vmem:[%s7449_s10 + $0xe0] sm:$0xff] }
 0x21f   : > { %5035 = vmatpush3.msra.mxu0 %v1462_v61  ;;  %5038 = vmatprep.mubr.msk.f32.mxu0 %vm5853_vm2, %v5852_v0 }
 0x220   : > { %5036 = vmatprep.subr.mxu0 %v5852_v0 }
 0x221   : > { %5037 = vmatpush3.msra.mxu0 %v1461_v63  ;;  %v4346_v63 = vld [vmem:[%s7449_s10 + $0xe8] sm:$0xff] }
 0x222   : > { %5039 = vmatmul.mubr.msk.f32.vlgmr.msra.gmra.mxu0 %vm1466_vm3, %v4295_v2  ;;  %5041 = vmatprep.subr.mxu0 %v5852_v0  ;;  %v4344_v2 = vld [vmem:[%s7449_s10 + $0xd8] sm:$0xff] }
 0x223   : > { %5042 = vmatpush3.msra.mxu0 %v1631_v3  ;;  %5073 = vmatprep.mubr.msk.f32.mxu0 %vm5853_vm2, %v5852_v0  ;;  %v6599_v3 = vld [vmem:[#allocation5] sm:$0xff] }
 0x224   : > { %5043 = vmatprep.subr.mxu0 %v5852_v0  ;;  %2654 = vst.msk [vmem:[#allocation6] sm:$0x3f] %vm2653_vm5, %v6599_v3 }
 0x225   : > { %5044 = vmatpush3.msra.mxu0 %v1630_v4  ;;  %v4343_v4 = vld [vmem:[%s7449_s10 + $0xd0] sm:$0xff]  ;;  %3780 = vst.msk [vmem:[#allocation9] sm:$0xf] %vm2655_vm6, %v6599_v3  ;;  %3520 = vst.msk [vmem:[#allocation8] sm:$0xf] %vm2655_vm6, %v6599_v3 }
 0x226   : > { %5045 = vmatprep.subr.mxu0 %v5852_v0 }
 0x227   : > { %5046 = vmatpush3.msra.mxu0 %v1629_v5  ;;  %v2069_v5 = vld [vmem:[%s7449_s10 + $0x70] sm:$0xff] }
 0x228   : > { %5047 = vmatprep.subr.mxu0 %v5852_v0 }
 0x229   : > { %5048 = vmatpush3.msra.mxu0 %v1628_v6  ;;  %v2067_v6 = vld [vmem:[%s7449_s10 + $0x60] sm:$0xff] }
 0x22a   : > { %5049 = vmatprep.subr.mxu0 %v5852_v0 }
 0x22b   : > { %5050 = vmatpush3.msra.mxu0 %v1627_v7  ;;  %v4342_v7 = vld [vmem:[%s7449_s10 + $0xc8] sm:$0xff] }
 0x22c   : > { %5051 = vmatprep.subr.mxu0 %v5852_v0 }
 0x22d   : > { %5052 = vmatpush3.msra.mxu0 %v1626_v8  ;;  %v4341_v8 = vld [vmem:[%s7449_s10 + $0xc0] sm:$0xff] }
 0x22e   : > { %5053 = vmatprep.subr.mxu0 %v5852_v0 }
 0x22f   : > { %5054 = vmatpush3.msra.mxu0 %v1625_v9  ;;  %v2066_v9 = vld [vmem:[%s7449_s10 + $0x58] sm:$0xff] }
 0x230   : > { %5055 = vmatprep.subr.mxu0 %v5852_v0 }
 0x231   : > { %5056 = vmatpush3.msra.mxu0 %v1624_v10  ;;  %v4340_v10 = vld [vmem:[%s7449_s10 + $0xb8] sm:$0xff] }
 0x232   : > { %5057 = vmatprep.subr.mxu0 %v5852_v0 }
 0x233   : > { %5058 = vmatpush3.msra.mxu0 %v1623_v11  ;;  %v2065_v11 = vld [vmem:[%s7449_s10 + $0x50] sm:$0xff] }
 0x234   : > { %5059 = vmatprep.subr.mxu0 %v5852_v0 }
 0x235   : > { %5060 = vmatpush3.msra.mxu0 %v1622_v12  ;;  %v4339_v12 = vld [vmem:[%s7449_s10 + $0xb0] sm:$0xff] }
 0x236   : > { %5061 = vmatprep.subr.mxu0 %v5852_v0 }
 0x237   : > { %5062 = vmatpush3.msra.mxu0 %v1621_v13  ;;  %v2064_v13 = vld [vmem:[%s7449_s10 + $0x48] sm:$0xff] }
 0x238   : > { %5063 = vmatprep.subr.mxu0 %v5852_v0 }
 0x239   : > { %5064 = vmatpush3.msra.mxu0 %v1620_v14  ;;  %v4338_v14 = vld [vmem:[%s7449_s10 + $0xa8] sm:$0xff] }
 0x23a   : > { %5065 = vmatprep.subr.mxu0 %v5852_v0 }
 0x23b   : > { %5066 = vmatpush3.msra.mxu0 %v1619_v15  ;;  %v2063_v15 = vld [vmem:[%s7449_s10 + $0x40] sm:$0xff] }
 0x23c   : > { %5067 = vmatprep.subr.mxu0 %v5852_v0 }
 0x23d   : > { %5068 = vmatpush3.msra.mxu0 %v1618_v17  ;;  %v4336_v17 = vld [vmem:[%s7449_s10 + $0x98] sm:$0xff] }
 0x23e   : > { %5069 = vmatprep.subr.mxu0 %v5852_v0 }
 0x23f   : > { %5070 = vmatpush3.msra.mxu0 %v1617_v19  ;;  %v4335_v19 = vld [vmem:[%s7449_s10 + $0x90] sm:$0xff] }
 0x240   : > { %5071 = vmatprep.subr.mxu0 %v5852_v0 }
 0x241   : > { %5072 = vmatpush3.msra.mxu0 %v1616_v21  ;;  %v4334_v21 = vld [vmem:[%s7449_s10 + $0x88] sm:$0xff] }
 0x242   : > { %5111 = vmatprep.subr.mxu0 %v5852_v0 }
 0x2de   : > { %v1536_v23 = vpop.f32.mrf.mxu0 }
 0x2e0   : > { %v5033_v24 = vpop.f32.mrf.mxu0 }
 0x2e1   : > { %v2059_v24 = vld [vmem:[%s7449_s10 + $0x20] sm:$0xff] }
 0x2e2   : > { %v1611_v25 = vpop.f32.mrf.mxu0 }
 0x2e3   : > { %v1615_v26 = vmax.f32 %v1536_v23, %v1611_v25  ;;  %v4333_v23 = vld [vmem:[%s7449_s10 + $0x80] sm:$0xff]  ;;  %v2058_v25 = vld [vmem:[%s7449_s10 + $0x18] sm:$0xff] }
 0x2e4   : > { %v5040_v29 = vpop.f32.mrf.mxu0 }
 0x2e5   : > { %5074 = vmatmul.mubr.f32.vlgmr.msra.gmra.mxu0 %v1615_v26  ;;  %5109 = vmatmul.mubr.f32.vlgmr.msra.gmra.mxu1 %v1615_v26  ;;  %v2057_v26 = vld [vmem:[%s7449_s10 + $0x10] sm:$0xff] }
 0x2e6   : > { %5112 = vmatpush3.msra.mxu0 %v4320_v27  ;;  %5131 = vmatpush3.msra.mxu1 %v1801_v28  ;;  %v2056_v27 = vld [vmem:[%s7449_s10 + $0x8] sm:$0xff]  ;;  %v2055_v28 = vld [vmem:[%s7449_s10] sm:$0xff] }
 0x2e7   : > { %5113 = vmatprep.subr.mxu0 %v5852_v0  ;;  %5132 = vmatprep.subr.mxu1 %v5852_v0 }
 0x2e8   : > { %5114 = vmatpush3.msra.mxu0 %v4319_v30  ;;  %5133 = vmatpush3.msra.mxu1 %v1800_v31 }
 0x2e9   : > { %5115 = vmatprep.subr.mxu0 %v5852_v0  ;;  %5134 = vmatprep.subr.mxu1 %v5852_v0 }
 0x2ea   : > { %5116 = vmatpush3.msra.mxu0 %v4318_v32  ;;  %5127 = vmatprep.mubr.msk.f32.mxu0 %vm5853_vm2, %v5852_v0 }
 0x2eb   : > { %5117 = vmatprep.subr.mxu0 %v5852_v0  ;;  %5146 = vmatprep.mubr.msk.f32.mxu1 %vm5853_vm2, %v5852_v0 }
 0x2ec   : > { %5135 = vmatpush3.msra.mxu1 %v1799_v33  ;;  %5118 = vmatpush3.msra.mxu0 %v4317_v34 }
 0x2ed   : > { %5136 = vmatprep.subr.mxu1 %v5852_v0  ;;  %5119 = vmatprep.subr.mxu0 %v5852_v0 }
 0x2ee   : > { %5137 = vmatpush3.msra.mxu1 %v1798_v35  ;;  %5120 = vmatpush3.msra.mxu0 %v4316_v36  ;;  %v4332_v35 = vld [vmem:[%s7450_s29] ss:$0 sm:$0xff]  ;;  %s858_s29 = scalar_lea.vmem %s7421_s24, %s4235_s2 }
 0x2ef   : > { %5138 = vmatprep.subr.mxu1 %v5852_v0  ;;  %5121 = vmatprep.subr.mxu0 %v5852_v0 }
 0x2f0   : > { %5139 = vmatpush3.msra.mxu1 %v1797_v37  ;;  %5122 = vmatpush3.msra.mxu0 %v4315_v38 }
 0x2f1   : > { %5140 = vmatprep.subr.mxu1 %v5852_v0  ;;  %5123 = vmatprep.subr.mxu0 %v5852_v0 }
 0x2f2   : > { %5141 = vmatpush3.msra.mxu1 %v1796_v39  ;;  %5124 = vmatpush3.msra.mxu0 %v4314_v40  ;;  %v4364_v40 = vld [vmem:[%s7449_s10 + $0x178] sm:$0xff] }
 0x2f3   : > { %5142 = vmatprep.subr.mxu1 %v5852_v0  ;;  %5125 = vmatprep.subr.mxu0 %v5852_v0 }
 0x2f4   : > { %5143 = vmatpush3.msra.mxu1 %v1795_v41  ;;  %5126 = vmatpush3.msra.mxu0 %v4313_v42  ;;  %v4363_v41 = vld [vmem:[%s7449_s10 + $0x170] sm:$0xff]  ;;  %v4362_v42 = vld [vmem:[%s7449_s10 + $0x168] sm:$0xff] }
 0x2f5   : > { %5144 = vmatprep.subr.mxu1 %v5852_v0  ;;  %5149 = vmatprep.subr.mxu0 %v5852_v0 }
 0x2f6   : > { %5145 = vmatpush3.msra.mxu1 %v1794_v43  ;;  %v4361_v43 = vld [vmem:[%s7449_s10 + $0x160] sm:$0xff] }
 0x2f7   : > { %5168 = vmatprep.subr.mxu1 %v5852_v0 }
 0x3a5   : > { %v1698_v44 = vpop.f32.mrf.mxu0  ;;  %v1785_v45 = vpop.f32.mrf.mxu1 }
 0x3a6   : > { %v1789_v46 = vmax.f32 %v1698_v44, %v1785_v45  ;;  %v4360_v44 = vld [vmem:[%s7449_s10 + $0x158] sm:$0xff] }
 0x3a7   : > { %v5075_v47 = vpop.f32.mrf.mxu0  ;;  %v5110_v48 = vpop.f32.mrf.mxu1 }
 0x3a8   : > { %1792 = vst.msk [vmem:[#allocation4 + $0x1] sm:$0xff] %vm869_vm0, %v1789_v46  ;;  %v4359_v46 = vld [vmem:[%s7449_s10 + $0x150] sm:$0xff]  ;;  %v4358_v47 = vld [vmem:[%s7449_s10 + $0x148] sm:$0xff]  ;;  %v4357_v48 = vld [vmem:[%s7449_s10 + $0x140] sm:$0xff] }
 0x3af   : > { %v1802_v50 = vld [vmem:[#allocation4 + $0x1] sm:$0xff] }
 0x3b0   : > { %v1793_v51 = vld [vmem:[#allocation4] sm:$0xff]  ;;  %5128 = vmatmul.mubr.msk.f32.vlgmr.msra.gmra.mxu0 %vm869_vm0, %v1802_v50 }
 0x3b1   : > { %5147 = vmatmul.mubr.msk.f32.vlgmr.msra.gmra.mxu1 %vm869_vm0, %v1793_v51  ;;  %5150 = vmatpush3.msra.mxu0 %v4330_v49  ;;  %v1958_v61 = vld [vmem:[#allocation4 + $0x2] sm:$0xff]  ;;  %v4354_v51 = vld [vmem:[%s7449_s10 + $0x128] sm:$0xff] }
 0x3b2   : > { %5165 = vmatprep.mubr.msk.f32.mxu0 %vm5853_vm2, %v5852_v0  ;;  %5151 = vmatprep.subr.mxu0 %v5852_v0  ;;  %v4356_v49 = vld [vmem:[%s7449_s10 + $0x138] sm:$0xff]  ;;  %v4355_v50 = vld [vmem:[%s7449_s10 + $0x130] sm:$0xff] }
 0x3b3   : > { %5169 = vmatpush3.msra.mxu1 %v4348_v52  ;;  %5152 = vmatpush3.msra.mxu0 %v4329_v53  ;;  %v4353_v52 = vld [vmem:[%s7449_s10 + $0x120] sm:$0xff]  ;;  %v4352_v53 = vld [vmem:[%s7449_s10 + $0x118] sm:$0xff] }
 0x3b4   : > { %5170 = vmatprep.subr.mxu1 %v5852_v0  ;;  %5153 = vmatprep.subr.mxu0 %v5852_v0 }
 0x3b5   : > { %5200 = vmatprep.mubr.msk.f32.mxu1 %vm5853_vm2, %v5852_v0  ;;  %5154 = vmatpush3.msra.mxu0 %v4328_v54  ;;  %v4351_v54 = vld [vmem:[%s7449_s10 + $0x110] sm:$0xff] }
 0x3b6   : > { %5155 = vmatprep.subr.mxu0 %v5852_v0  ;;  %5171 = vmatpush3.msra.mxu1 %v4347_v62  ;;  %v4380_v62 = vld [vmem:[%s7417_s20 + $0xd8] sm:$0xff] }
 0x3b7   : > { %5156 = vmatpush3.msra.mxu0 %v4327_v55  ;;  %5172 = vmatprep.subr.mxu1 %v5852_v0  ;;  %v4350_v55 = vld [vmem:[%s7449_s10 + $0x108] sm:$0xff] }
 0x3b8   : > { %5157 = vmatprep.subr.mxu0 %v5852_v0  ;;  %5173 = vmatpush3.msra.mxu1 %v4346_v63  ;;  %v4379_v63 = vld [vmem:[%s7417_s20 + $0xd0] sm:$0xff] }
 0x3b9   : > { %5158 = vmatpush3.msra.mxu0 %v4326_v56  ;;  %5174 = vmatprep.subr.mxu1 %v5852_v0  ;;  %v4349_v56 = vld [vmem:[%s7449_s10 + $0x100] sm:$0xff] }
 0x3ba   : > { %5159 = vmatprep.subr.mxu0 %v5852_v0  ;;  %5175 = vmatpush3.msra.mxu1 %v4345_v1  ;;  %v4378_v1 = vld [vmem:[%s7417_s20 + $0xc8] sm:$0xff] }
 0x3bb   : > { %5160 = vmatpush3.msra.mxu0 %v4325_v57  ;;  %5176 = vmatprep.subr.mxu1 %v5852_v0 }
 0x3bc   : > { %5161 = vmatprep.subr.mxu0 %v5852_v0  ;;  %5177 = vmatpush3.msra.mxu1 %v4344_v2  ;;  %v4377_v2 = vld [vmem:[%s7417_s20 + $0xc0] sm:$0xff] }
 0x3bd   : > { %5162 = vmatpush3.msra.mxu0 %v4324_v58  ;;  %5178 = vmatprep.subr.mxu1 %v6599_v3  ;;  %v4384_v58 = vld [vmem:[%s7417_s20 + $0xf8] sm:$0xff] }
 0x3be   : > { %5163 = vmatprep.subr.mxu0 %v5852_v0  ;;  %5179 = vmatpush3.msra.mxu1 %v4343_v4  ;;  %v4376_v4 = vld [vmem:[%s7417_s20 + $0xb8] sm:$0xff] }
 0x3bf   : > { %5164 = vmatpush3.msra.mxu0 %v4323_v59  ;;  %5180 = vmatprep.subr.mxu1 %v6599_v3  ;;  %v4383_v59 = vld [vmem:[%s7417_s20 + $0xf0] sm:$0xff] }
 0x3c0   : > { %5166 = vmatmul.mubr.msk.f32.vlgmr.msra.gmra.mxu0 %vm869_vm0, %v1958_v61  ;;  %5203 = vmatprep.subr.mxu0 %v5852_v0  ;;  %v4381_v61 = vld [vmem:[%s7417_s20 + $0xe0] sm:$0xff] }
 0x3c1   : > { %5204 = vmatpush3.msra.mxu0 %v2070_v60  ;;  %5235 = vmatprep.mubr.msk.f32.mxu0 %vm5853_vm2, %v5852_v0  ;;  %v4382_v60 = vld [vmem:[%s7417_s20 + $0xe8] sm:$0xff] }
 0x3c2   : > { %5205 = vmatprep.subr.mxu0 %v5852_v0  ;;  %v2068_v0 = vld [vmem:[%s7449_s10 + $0x68] sm:$0xff]  ;;  %5181 = vmatpush3.msra.mxu1 %v4342_v7 }
 0x3c3   : > { %5206 = vmatpush3.msra.mxu0 %v2069_v5  ;;  %5182 = vmatprep.subr.mxu1 %v6599_v3  ;;  %v4375_v5 = vld [vmem:[%s7417_s20 + $0xb0] sm:$0xff] }
 0x3c4   : > { %5207 = vmatprep.subr.mxu0 %v6599_v3  ;;  %5183 = vmatpush3.msra.mxu1 %v4341_v8 }
 0x3c5   : > { %5208 = vmatpush3.msra.mxu0 %v2068_v0  ;;  %5184 = vmatprep.subr.mxu1 %v6599_v3  ;;  %v4374_v0 = vld [vmem:[%s7417_s20 + $0xa8] sm:$0xff] }
 0x3c6   : > { %5209 = vmatprep.subr.mxu0 %v6599_v3  ;;  %5185 = vmatpush3.msra.mxu1 %v4340_v10 }
 0x3c7   : > { %5210 = vmatpush3.msra.mxu0 %v2067_v6  ;;  %5186 = vmatprep.subr.mxu1 %v6599_v3  ;;  %v4373_v6 = vld [vmem:[%s7417_s20 + $0xa0] sm:$0xff] }
 0x3c8   : > { %5211 = vmatprep.subr.mxu0 %v6599_v3  ;;  %5187 = vmatpush3.msra.mxu1 %v4339_v12 }
 0x3c9   : > { %5212 = vmatpush3.msra.mxu0 %v2066_v9  ;;  %5188 = vmatprep.subr.mxu1 %v6599_v3 }
 0x3ca   : > { %5213 = vmatprep.subr.mxu0 %v6599_v3  ;;  %5189 = vmatpush3.msra.mxu1 %v4338_v14 }
 0x3cb   : > { %5214 = vmatpush3.msra.mxu0 %v2065_v11  ;;  %5190 = vmatprep.subr.mxu1 %v6599_v3 }
 0x3cc   : > { %5215 = vmatprep.subr.mxu0 %v6599_v3  ;;  %5191 = vmatpush3.msra.mxu1 %v4337_v16 }
 0x3cd   : > { %5216 = vmatpush3.msra.mxu0 %v2064_v13  ;;  %5192 = vmatprep.subr.mxu1 %v6599_v3  ;;  %v4365_v13 = vld [vmem:[%s7451_s9] ss:$0 sm:$0xff]  ;;  %s862_s9 = scalar_lea.vmem %s7422_s25, %s4236_s5 }
 0x3ce   : > { %5217 = vmatprep.subr.mxu0 %v6599_v3  ;;  %5193 = vmatpush3.msra.mxu1 %v4336_v17 }
 0x3cf   : > { %5218 = vmatpush3.msra.mxu0 %v2063_v15  ;;  %5194 = vmatprep.subr.mxu1 %v6599_v3 }
 0x3d0   : > { %5219 = vmatprep.subr.mxu0 %v6599_v3  ;;  %5195 = vmatpush3.msra.mxu1 %v4335_v19  ;;  %v4367_v19 = vld [vmem:[%s7416_s19 + $0x4] sm:$0xf] }
 0x3d1   : > { %5220 = vmatpush3.msra.mxu0 %v2062_v18  ;;  %5196 = vmatprep.subr.mxu1 %v6599_v3  ;;  %v2328_v18 = vld [vmem:[%s7416_s19] sm:$0xf] }
 0x3d2   : > { %5221 = vmatprep.subr.mxu0 %v6599_v3  ;;  %5197 = vmatpush3.msra.mxu1 %v4334_v21  ;;  %v2493_v21 = vld [vmem:[%s7417_s20 + $0x70] sm:$0xff] }
 0x3d3   : > { %5222 = vmatpush3.msra.mxu0 %v2061_v20  ;;  %5198 = vmatprep.subr.mxu1 %v6599_v3  ;;  %v2494_v20 = vld [vmem:[%s7417_s20 + $0x78] sm:$0xff] }
 0x3d4   : > { %5223 = vmatprep.subr.mxu0 %v6599_v3  ;;  %5199 = vmatpush3.msra.mxu1 %v4333_v23  ;;  %v2491_v23 = vld [vmem:[%s7417_s20 + $0x60] sm:$0xff] }
 0x3d5   : > { %5224 = vmatpush3.msra.mxu0 %v2060_v22  ;;  %5238 = vmatprep.subr.mxu1 %v6599_v3  ;;  %v2492_v22 = vld [vmem:[%s7417_s20 + $0x68] sm:$0xff] }
 0x3d6   : > { %5225 = vmatprep.subr.mxu0 %v6599_v3 }
 0x3d7   : > { %5226 = vmatpush3.msra.mxu0 %v2059_v24  ;;  %v2490_v24 = vld [vmem:[%s7417_s20 + $0x58] sm:$0xff] }
 0x3d8   : > { %5227 = vmatprep.subr.mxu0 %v6599_v3 }
 0x3d9   : > { %5228 = vmatpush3.msra.mxu0 %v2058_v25  ;;  %v2489_v25 = vld [vmem:[%s7417_s20 + $0x50] sm:$0xff] }
 0x3da   : > { %5229 = vmatprep.subr.mxu0 %v6599_v3 }
 0x3db   : > { %5230 = vmatpush3.msra.mxu0 %v2057_v26  ;;  %v2488_v26 = vld [vmem:[%s7417_s20 + $0x48] sm:$0xff] }
 0x3dc   : > { %5231 = vmatprep.subr.mxu0 %v6599_v3 }
 0x3dd   : > { %5232 = vmatpush3.msra.mxu0 %v2056_v27  ;;  %v2487_v27 = vld [vmem:[%s7417_s20 + $0x40] sm:$0xff] }
 0x3de   : > { %5233 = vmatprep.subr.mxu0 %v6599_v3 }
 0x3df   : > { %5234 = vmatpush3.msra.mxu0 %v2055_v28  ;;  %v2486_v28 = vld [vmem:[%s7417_s20 + $0x38] sm:$0xff] }
 0x3e0   : > { %5273 = vmatprep.subr.mxu0 %v6599_v3 }
 0x470   : > { %v1881_v29 = vpop.f32.mrf.mxu0 }
 0x471   : > { %v1954_v30 = vpop.f32.mrf.mxu1 }
 0x472   : > { %v5129_v31 = vpop.f32.mrf.mxu0  ;;  %v1955_v33 = vadd.f32 %v1954_v30, %v1881_v29  ;;  %v2485_v29 = vld [vmem:[%s7417_s20 + $0x30] sm:$0xff]  ;;  %v2484_v30 = vld [vmem:[%s7417_s20 + $0x28] sm:$0xff] }
 0x473   : > { %v5148_v32 = vpop.f32.mrf.mxu1  ;;  %v2483_v31 = vld [vmem:[%s7417_s20 + $0x20] sm:$0xff] }
 0x474   : > { %v2482_v32 = vld [vmem:[%s7417_s20 + $0x18] sm:$0xff] }
 0x480   : > { %v2037_v34 = vpop.f32.mrf.mxu0 }
 0x481   : > { %v2041_v36 = vadd.f32 %v2037_v34, %v1955_v33  ;;  %v4372_v33 = vld [vmem:[%s7417_s20 + $0x98] sm:$0xff]  ;;  %v2481_v34 = vld [vmem:[%s7417_s20 + $0x10] sm:$0xff] }
 0x482   : > { %v5167_v37 = vpop.f32.mrf.mxu0 }
 0x483   : > { %v2049_v38 = vadd.f32 %v4332_v35, %v2041_v36  ;;  %v4371_v35 = vld [vmem:[%s7417_s20 + $0x90] sm:$0xff]  ;;  %v2480_v36 = vld [vmem:[%s7417_s20 + $0x8] sm:$0xff] }
 0x484   : > { %v4370_v37 = vld [vmem:[%s7417_s20 + $0x88] sm:$0xff] }
 0x485   : > { %v2050_v39 = vmax.f32 %v2049_v38, 0.0  ;;  %v2479_v38 = vld [vmem:[%s7417_s20] sm:$0xff] }
 0x487   : > { %2053 = vst [vmem:[#allocation5 + $0x1] sm:$0xff] %v2050_v39  ;;  %5201 = vmatmul.mubr.f32.vlgmr.msra.gmra.mxu1 %v2050_v39  ;;  %v4369_v39 = vld [vmem:[%s7417_s20 + $0x80] sm:$0xff] }
 0x488   : > { %5239 = vmatpush3.msra.mxu1 %v4364_v40  ;;  %5270 = vmatprep.mubr.msk.f32.mxu1 %vm5853_vm2, %v6599_v3 }
 0x489   : > { %5240 = vmatprep.subr.mxu1 %v6599_v3 }
 0x48a   : > { %5241 = vmatpush3.msra.mxu1 %v4363_v41 }
 0x48b   : > { %5242 = vmatprep.subr.mxu1 %v6599_v3 }
 0x48c   : > { %5243 = vmatpush3.msra.mxu1 %v4362_v42 }
 0x48d   : > { %5244 = vmatprep.subr.mxu1 %v6599_v3 }
 0x48e   : > { %v2054_v45 = vld [vmem:[#allocation5] sm:$0xff]  ;;  %5245 = vmatpush3.msra.mxu1 %v4361_v43 }
 0x48f   : > { %5236 = vmatmul.mubr.f32.vlgmr.msra.gmra.mxu0 %v2054_v45  ;;  %5246 = vmatprep.subr.mxu1 %v6599_v3  ;;  %v2229_v57 = vld [vmem:[#allocation5 + $0x2] sm:$0xff] }
 0x490   : > { %5247 = vmatpush3.msra.mxu1 %v4360_v44  ;;  %5275 = vmatprep.mubr.msk.f32.mxu0 %vm5853_vm2, %v6599_v3  ;;  %v2675_v44 = vld [vmem:[#allocation10 + $0x78] sm:$0xff] }
 0x491   : > { %5248 = vmatprep.subr.mxu1 %v6599_v3  ;;  %v2831_v45 = vld [vmem:[#allocation10 + $0xb8] sm:$0xff] }
 0x492   : > { %5249 = vmatpush3.msra.mxu1 %v4359_v46 }
 0x493   : > { %5250 = vmatprep.subr.mxu1 %v6599_v3 }
 0x494   : > { %5251 = vmatpush3.msra.mxu1 %v4358_v47  ;;  %v2674_v47 = vld [vmem:[#allocation10 + $0x70] sm:$0xff] }
 0x495   : > { %5252 = vmatprep.subr.mxu1 %v6599_v3 }
 0x496   : > { %5253 = vmatpush3.msra.mxu1 %v4357_v48  ;;  %v2830_v48 = vld [vmem:[#allocation10 + $0xb0] sm:$0xff] }
 0x497   : > { %5254 = vmatprep.subr.mxu1 %v6599_v3 }
 0x498   : > { %5255 = vmatpush3.msra.mxu1 %v4356_v49  ;;  %v2673_v49 = vld [vmem:[#allocation10 + $0x68] sm:$0xff] }
 0x499   : > { %5256 = vmatprep.subr.mxu1 %v6599_v3 }
 0x49a   : > { %5257 = vmatpush3.msra.mxu1 %v4355_v50  ;;  %v2829_v50 = vld [vmem:[#allocation10 + $0xa8] sm:$0xff] }
 0x49b   : > { %5258 = vmatprep.subr.mxu1 %v6599_v3 }
 0x49c   : > { %5259 = vmatpush3.msra.mxu1 %v4354_v51  ;;  %v2672_v51 = vld [vmem:[#allocation10 + $0x60] sm:$0xff] }
 0x49d   : > { %5260 = vmatprep.subr.mxu1 %v6599_v3 }
 0x49e   : > { %5261 = vmatpush3.msra.mxu1 %v4353_v52  ;;  %v2828_v52 = vld [vmem:[#allocation10 + $0xa0] sm:$0xff] }
 0x49f   : > { %5262 = vmatprep.subr.mxu1 %v6599_v3 }
 0x4a0   : > { %5263 = vmatpush3.msra.mxu1 %v4352_v53  ;;  %v2671_v53 = vld [vmem:[#allocation10 + $0x58] sm:$0xff] }
 0x4a1   : > { %5264 = vmatprep.subr.mxu1 %v6599_v3 }
 0x4a2   : > { %5265 = vmatpush3.msra.mxu1 %v4351_v54  ;;  %v2827_v54 = vld [vmem:[#allocation10 + $0x98] sm:$0xff] }
 0x4a3   : > { %5266 = vmatprep.subr.mxu1 %v6599_v3 }
 0x4a4   : > { %5267 = vmatpush3.msra.mxu1 %v4350_v55  ;;  %v2670_v55 = vld [vmem:[#allocation10 + $0x50] sm:$0xff] }
 0x4a5   : > { %5268 = vmatprep.subr.mxu1 %v6599_v3 }
 0x4a6   : > { %5269 = vmatpush3.msra.mxu1 %v4349_v56  ;;  %v2826_v56 = vld [vmem:[#allocation10 + $0x90] sm:$0xff] }
 0x4a7   : > { %5271 = vmatmul.mubr.f32.vlgmr.msra.gmra.mxu1 %v2229_v57  ;;  %5318 = vmatprep.subr.mxu1 %v6599_v3  ;;  %v2669_v57 = vld [vmem:[#allocation10 + $0x48] sm:$0xff] }
 0x4a8   : > { %5350 = vmatprep.mubr.msk.f32.mxu1 %vm5853_vm2, %v6599_v3  ;;  %5319 = vmatpush3.msra.mxu1 %v4384_v58  ;;  %v2825_v58 = vld [vmem:[#allocation10 + $0x88] sm:$0xff] }
 0x4a9   : > { %5320 = vmatprep.subr.mxu1 %v6599_v3 }
 0x4aa   : > { %5321 = vmatpush3.msra.mxu1 %v4383_v59  ;;  %v2668_v59 = vld [vmem:[#allocation10 + $0x40] sm:$0xff] }
 0x4ab   : > { %5322 = vmatprep.subr.mxu1 %v6599_v3 }
 0x4ac   : > { %5323 = vmatpush3.msra.mxu1 %v4382_v60  ;;  %v2824_v60 = vld [vmem:[#allocation10 + $0x80] sm:$0xff] }
 0x4ad   : > { %5324 = vmatprep.subr.mxu1 %v6599_v3 }
 0x4ae   : > { %5325 = vmatpush3.msra.mxu1 %v4381_v61 }
 0x4af   : > { %5326 = vmatprep.subr.mxu1 %v6599_v3 }
 0x4b0   : > { %5327 = vmatpush3.msra.mxu1 %v4380_v62 }
 0x4b1   : > { %5328 = vmatprep.subr.mxu1 %v6599_v3 }
 0x4b2   : > { %5329 = vmatpush3.msra.mxu1 %v4379_v63 }
 0x4b3   : > { %5330 = vmatprep.subr.mxu1 %v6599_v3 }
 0x4b4   : > { %5331 = vmatpush3.msra.mxu1 %v4378_v1 }
 0x4b5   : > { %5332 = vmatprep.subr.mxu1 %v6599_v3 }
 0x4b6   : > { %5333 = vmatpush3.msra.mxu1 %v4377_v2 }
 0x4b7   : > { %5334 = vmatprep.subr.mxu1 %v6599_v3 }
 0x4b8   : > { %5335 = vmatpush3.msra.mxu1 %v4376_v4  ;;  %v2665_v4 = vld [vmem:[#allocation10 + $0x38] sm:$0xff] }
 0x4b9   : > { %5336 = vmatprep.subr.mxu1 %v6599_v3 }
 0x4ba   : > { %5337 = vmatpush3.msra.mxu1 %v4375_v5 }
 0x4bb   : > { %5338 = vmatprep.subr.mxu1 %v6599_v3 }
 0x4bc   : > { %5339 = vmatpush3.msra.mxu1 %v4374_v0 }
 0x4bd   : > { %5340 = vmatprep.subr.mxu1 %v6599_v3 }
 0x4be   : > { %5341 = vmatpush3.msra.mxu1 %v4373_v6  ;;  %v2664_v6 = vld [vmem:[#allocation10 + $0x30] sm:$0xff] }
 0x4bf   : > { %5342 = vmatprep.subr.mxu1 %v6599_v3 }
 0x4c0   : > { %5343 = vmatpush3.msra.mxu1 %v4372_v33  ;;  %v2924_v33 = vld [vmem:[%s7408_s11 + $0x30] sm:$0xff] }
 0x4c1   : > { %5344 = vmatprep.subr.mxu1 %v6599_v3 }
 0x4c2   : > { %5345 = vmatpush3.msra.mxu1 %v4371_v35  ;;  %v2923_v35 = vld [vmem:[%s7408_s11 + $0x28] sm:$0xff] }
 0x4c3   : > { %5346 = vmatprep.subr.mxu1 %v6599_v3 }
 0x4c4   : > { %5347 = vmatpush3.msra.mxu1 %v4370_v37  ;;  %v2922_v37 = vld [vmem:[%s7408_s11 + $0x20] sm:$0xff] }
 0x4c5   : > { %5348 = vmatprep.subr.mxu1 %v6599_v3 }
 0x4c6   : > { %5349 = vmatpush3.msra.mxu1 %v4369_v39  ;;  %v2921_v39 = vld [vmem:[%s7408_s11 + $0x18] sm:$0xff] }
 0x4c7   : > { %5391 = vmatprep.subr.mxu1 %v6599_v3 }
 0x547   : > { %v2155_v7 = vpop.f32.mrf.mxu1 }
 0x549   : > { %v5202_v8 = vpop.f32.mrf.mxu1 }
 0x54a   : > { %v2662_v8 = vld [vmem:[#allocation10 + $0x20] sm:$0xff] }
 0x54f   : > { %v2225_v9 = vpop.f32.mrf.mxu0 }
 0x550   : > { %v2226_v11 = vadd.f32 %v2225_v9, %v2155_v7  ;;  %v2663_v7 = vld [vmem:[#allocation10 + $0x28] sm:$0xff]  ;;  %v2661_v9 = vld [vmem:[#allocation10 + $0x18] sm:$0xff] }
 0x551   : > { %v5237_v10 = vpop.f32.mrf.mxu0 }
 0x552   : > { %v2660_v10 = vld [vmem:[#allocation10 + $0x10] sm:$0xff] }
 0x567   : > { %v2313_v12 = vpop.f32.mrf.mxu1 }
 0x568   : > { %v2317_v14 = vadd.f32 %v2313_v12, %v2226_v11  ;;  %v2659_v11 = vld [vmem:[#allocation10 + $0x8] sm:$0xff]  ;;  %v2658_v12 = vld [vmem:[#allocation10] sm:$0xff] }
 0x569   : > { %v5272_v15 = vpop.f32.mrf.mxu1 }
 0x56a   : > { %v2325_v16 = vadd.f32 %v4365_v13, %v2317_v14  ;;  %v4404_v14 = vld [vmem:[%s7408_s11 + $0xf8] sm:$0xff] }
 0x56b   : > { %v2933_v15 = vld [vmem:[%s7408_s11 + $0x78] sm:$0xff] }
 0x56c   : > { %v2326_v17 = vmax.f32 %v2325_v16, 0.0  ;;  %v4403_v16 = vld [vmem:[%s7408_s11 + $0xf0] sm:$0xff] }
 0x56e   : > { %2327 = vst [vmem:[%s858_s29] sm:$0xff] %v2326_v17  ;;  %5274 = vmatpush3.msra.mxu0 %v2326_v17 }
 0x56f   : > { %5276 = vmatmul.mubr.msk.f32.vlgmr.msra.gmra.mxu0 %vm2329_vm4, %v2328_v18  ;;  %5278 = vmatprep.subr.mxu0 %v6599_v3  ;;  %v4402_v18 = vld [vmem:[%s7408_s11 + $0xe8] sm:$0xff] }
 0x570   : > { %5279 = vmatpush3.msra.mxu0 %v2326_v17  ;;  %5280 = vmatprep.mubr.msk.f32.mxu0 %vm5853_vm2, %v6599_v3  ;;  %v2932_v17 = vld [vmem:[%s7408_s11 + $0x70] sm:$0xff] }
 0x571   : > { %5283 = vmatprep.subr.mxu0 %v6599_v3 }
 0x573   : > { %5281 = vmatmul.mubr.msk.f32.vlgmr.msra.gmra.mxu0 %vm2329_vm4, %v4367_v19  ;;  %v2931_v19 = vld [vmem:[%s7408_s11 + $0x68] sm:$0xff] }
 0x574   : > { %5284 = vmatpush3.msra.mxu0 %v2494_v20  ;;  %5315 = vmatprep.mubr.msk.f32.mxu0 %vm5853_vm2, %v6599_v3  ;;  %v4401_v20 = vld [vmem:[%s7408_s11 + $0xe0] sm:$0xff] }
 0x575   : > { %5285 = vmatprep.subr.mxu0 %v6599_v3 }
 0x576   : > { %5286 = vmatpush3.msra.mxu0 %v2493_v21  ;;  %v2930_v21 = vld [vmem:[%s7408_s11 + $0x60] sm:$0xff] }
 0x577   : > { %5287 = vmatprep.subr.mxu0 %v6599_v3 }
 0x578   : > { %5288 = vmatpush3.msra.mxu0 %v2492_v22  ;;  %v4400_v22 = vld [vmem:[%s7408_s11 + $0xd8] sm:$0xff] }
 0x579   : > { %5289 = vmatprep.subr.mxu0 %v6599_v3 }
 0x57a   : > { %5290 = vmatpush3.msra.mxu0 %v2491_v23  ;;  %v2929_v23 = vld [vmem:[%s7408_s11 + $0x58] sm:$0xff] }
 0x57b   : > { %5291 = vmatprep.subr.mxu0 %v6599_v3 }
 0x57c   : > { %5292 = vmatpush3.msra.mxu0 %v2490_v24  ;;  %v4399_v24 = vld [vmem:[%s7408_s11 + $0xd0] sm:$0xff] }
 0x57d   : > { %5293 = vmatprep.subr.mxu0 %v6599_v3 }
 0x57e   : > { %5294 = vmatpush3.msra.mxu0 %v2489_v25  ;;  %v2928_v25 = vld [vmem:[%s7408_s11 + $0x50] sm:$0xff] }
 0x57f   : > { %5295 = vmatprep.subr.mxu0 %v6599_v3 }
 0x580   : > { %5296 = vmatpush3.msra.mxu0 %v2488_v26  ;;  %v4398_v26 = vld [vmem:[%s7408_s11 + $0xc8] sm:$0xff] }
 0x581   : > { %5297 = vmatprep.subr.mxu0 %v6599_v3 }
 0x582   : > { %5298 = vmatpush3.msra.mxu0 %v2487_v27  ;;  %v2927_v27 = vld [vmem:[%s7408_s11 + $0x48] sm:$0xff] }
 0x583   : > { %5299 = vmatprep.subr.mxu0 %v6599_v3 }
 0x584   : > { %5300 = vmatpush3.msra.mxu0 %v2486_v28  ;;  %v4397_v28 = vld [vmem:[%s7408_s11 + $0xc0] sm:$0xff] }
 0x585   : > { %5301 = vmatprep.subr.mxu0 %v6599_v3 }
 0x586   : > { %5302 = vmatpush3.msra.mxu0 %v2485_v29  ;;  %v2926_v29 = vld [vmem:[%s7408_s11 + $0x40] sm:$0xff] }
 0x587   : > { %5303 = vmatprep.subr.mxu0 %v6599_v3 }
 0x588   : > { %5304 = vmatpush3.msra.mxu0 %v2484_v30  ;;  %v4396_v30 = vld [vmem:[%s7408_s11 + $0xb8] sm:$0xff] }
 0x589   : > { %5305 = vmatprep.subr.mxu0 %v6599_v3 }
 0x58a   : > { %5306 = vmatpush3.msra.mxu0 %v2483_v31  ;;  %v2925_v31 = vld [vmem:[%s7408_s11 + $0x38] sm:$0xff] }
 0x58b   : > { %5307 = vmatprep.subr.mxu0 %v6599_v3 }
 0x58c   : > { %5308 = vmatpush3.msra.mxu0 %v2482_v32  ;;  %v4395_v32 = vld [vmem:[%s7408_s11 + $0xb0] sm:$0xff] }
 0x58d   : > { %5309 = vmatprep.subr.mxu0 %v6599_v3 }
 0x58e   : > { %5310 = vmatpush3.msra.mxu0 %v2481_v34  ;;  %v4394_v34 = vld [vmem:[%s7408_s11 + $0xa8] sm:$0xff] }
 0x58f   : > { %5311 = vmatprep.subr.mxu0 %v6599_v3 }
 0x590   : > { %5312 = vmatpush3.msra.mxu0 %v2480_v36  ;;  %v4393_v36 = vld [vmem:[%s7408_s11 + $0xa0] sm:$0xff] }
 0x591   : > { %5313 = vmatprep.subr.mxu0 %v6599_v3 }
 0x592   : > { %5314 = vmatpush3.msra.mxu0 %v2479_v38  ;;  %v4392_v38 = vld [vmem:[%s7408_s11 + $0x98] sm:$0xff] }
 0x593   : > { %5353 = vmatprep.subr.mxu0 %v6599_v3 }
 0x62f   : > { %v2399_v40 = vpop.f32.mrf.mxu0 }
 0x631   : > { %v5277_v41 = vpop.f32.mrf.mxu0 }
 0x632   : > { %v2920_v41 = vld [vmem:[%s7408_s11 + $0x10] sm:$0xff] }
 0x633   : > { %v2474_v42 = vpop.f32.mrf.mxu0 }
 0x634   : > { %v2478_v43 = vmax.f32 %v2399_v40, %v2474_v42  ;;  %v4391_v40 = vld [vmem:[%s7408_s11 + $0x90] sm:$0xff]  ;;  %v4390_v42 = vld [vmem:[%s7408_s11 + $0x88] sm:$0xff] }
 0x635   : > { %v5282_v46 = vpop.f32.mrf.mxu0 }
 0x636   : > { %5316 = vmatmul.mubr.f32.vlgmr.msra.gmra.mxu0 %v2478_v43  ;;  %5351 = vmatmul.mubr.f32.vlgmr.msra.gmra.mxu1 %v2478_v43  ;;  %v2919_v43 = vld [vmem:[%s7408_s11 + $0x8] sm:$0xff] }
 0x637   : > { %5354 = vmatpush3.msra.mxu0 %v2675_v44  ;;  %5392 = vmatpush3.msra.mxu1 %v2831_v45  ;;  %v4389_v44 = vld [vmem:[%s7408_s11 + $0x80] sm:$0xff] }
 0x638   : > { %5355 = vmatprep.subr.mxu0 %v6599_v3  ;;  %5393 = vmatprep.subr.mxu1 %v6599_v3  ;;  %v2918_v45 = vld [vmem:[%s7408_s11] sm:$0xff] }
 0x639   : > { %5356 = vmatpush3.msra.mxu0 %v2674_v47  ;;  %5394 = vmatpush3.msra.mxu1 %v2830_v48 }
 0x63a   : > { %5357 = vmatprep.subr.mxu0 %v6599_v3  ;;  %5395 = vmatprep.subr.mxu1 %v6599_v3 }
 0x63b   : > { %5358 = vmatpush3.msra.mxu0 %v2673_v49  ;;  %5369 = vmatprep.mubr.msk.f32.mxu0 %vm5853_vm2, %v6599_v3 }
 0x63c   : > { %5359 = vmatprep.subr.mxu0 %v6599_v3  ;;  %5407 = vmatprep.mubr.msk.f32.mxu1 %vm5853_vm2, %v6599_v3 }
 0x63d   : > { %5396 = vmatpush3.msra.mxu1 %v2829_v50  ;;  %5360 = vmatpush3.msra.mxu0 %v2672_v51 }
 0x63e   : > { %5397 = vmatprep.subr.mxu1 %v6599_v3  ;;  %5361 = vmatprep.subr.mxu0 %v6599_v3 }
 0x63f   : > { %5398 = vmatpush3.msra.mxu1 %v2828_v52  ;;  %5362 = vmatpush3.msra.mxu0 %v2671_v53  ;;  %v4388_v52 = vld [vmem:[%s7452_s28] ss:$0 sm:$0xff] }
 0x640   : > { %5399 = vmatprep.subr.mxu1 %v6599_v3  ;;  %5363 = vmatprep.subr.mxu0 %v6599_v3 }
 0x641   : > { %5400 = vmatpush3.msra.mxu1 %v2827_v54  ;;  %5364 = vmatpush3.msra.mxu0 %v2670_v55 }
 0x642   : > { %5401 = vmatprep.subr.mxu1 %v6599_v3  ;;  %5365 = vmatprep.subr.mxu0 %v6599_v3 }
 0x643   : > { %5402 = vmatpush3.msra.mxu1 %v2826_v56  ;;  %5366 = vmatpush3.msra.mxu0 %v2669_v57  ;;  %v4420_v57 = vld [vmem:[%s7408_s11 + $0x178] sm:$0xff] }
 0x644   : > { %5403 = vmatprep.subr.mxu1 %v6599_v3  ;;  %5367 = vmatprep.subr.mxu0 %v6599_v3 }
 0x645   : > { %5404 = vmatpush3.msra.mxu1 %v2825_v58  ;;  %5368 = vmatpush3.msra.mxu0 %v2668_v59 }
 0x646   : > { %5405 = vmatprep.subr.mxu1 %v6599_v3  ;;  %5372 = vmatprep.subr.mxu0 %v6599_v3 }
 0x647   : > { %5406 = vmatpush3.msra.mxu1 %v2824_v60  ;;  %v4419_v60 = vld [vmem:[%s7408_s11 + $0x170] sm:$0xff] }
 0x648   : > { %5445 = vmatprep.subr.mxu1 %v6599_v3 }
 0x6f6   : > { %v2561_v61 = vpop.f32.mrf.mxu0  ;;  %v2648_v62 = vpop.f32.mrf.mxu1 }
 0x6f7   : > { %v2652_v63 = vmax.f32 %v2561_v61, %v2648_v62  ;;  %v4418_v61 = vld [vmem:[%s7408_s11 + $0x168] sm:$0xff]  ;;  %v4417_v62 = vld [vmem:[%s7408_s11 + $0x160] sm:$0xff] }
 0x6f8   : > { %v5317_v1 = vpop.f32.mrf.mxu0  ;;  %v5352_v2 = vpop.f32.mrf.mxu1 }
 0x6f9   : > { %2656 = vst.msk [vmem:[#allocation6 + $0x1] sm:$0xf] %vm2655_vm6, %v2652_v63  ;;  %v4416_v63 = vld [vmem:[%s7408_s11 + $0x158] sm:$0xff]  ;;  %v4415_v1 = vld [vmem:[%s7408_s11 + $0x150] sm:$0xff]  ;;  %v4414_v2 = vld [vmem:[%s7408_s11 + $0x148] sm:$0xff] }
 0x700   : > { %v2666_v5 = vld [vmem:[#allocation6 + $0x1] sm:$0xf] }
 0x701   : > { %v2822_v0 = vld [vmem:[#allocation6 + $0x2] sm:$0xf]  ;;  %5370 = vmatmul.mubr.msk.f32.vlgmr.msra.gmra.mxu0 %vm869_vm0, %v2666_v5  ;;  %v4412_v5 = vld [vmem:[%s7408_s11 + $0x138] sm:$0xff] }
 0x702   : > { %5408 = vmatmul.mubr.msk.f32.vlgmr.msra.gmra.mxu1 %vm869_vm0, %v2822_v0  ;;  %5373 = vmatpush3.msra.mxu0 %v2665_v4  ;;  %v2657_v13 = vld [vmem:[#allocation6] sm:$0xf]  ;;  %v4413_v4 = vld [vmem:[%s7408_s11 + $0x140] sm:$0xff] }
 0x703   : > { %5388 = vmatprep.mubr.msk.f32.mxu0 %vm5853_vm2, %v6599_v3  ;;  %5374 = vmatprep.subr.mxu0 %v6599_v3  ;;  %v4411_v0 = vld [vmem:[%s7408_s11 + $0x130] sm:$0xff] }
 0x704   : > { %5477 = vmatprep.mubr.msk.f32.mxu1 %vm5853_vm2, %v6599_v3  ;;  %5375 = vmatpush3.msra.mxu0 %v2664_v6  ;;  %v4410_v6 = vld [vmem:[%s7408_s11 + $0x128] sm:$0xff] }
 0x705   : > { %5376 = vmatprep.subr.mxu0 %v6599_v3  ;;  %5446 = vmatpush3.msra.mxu1 %v2933_v15 }
 0x706   : > { %5377 = vmatpush3.msra.mxu0 %v2663_v7  ;;  %5447 = vmatprep.subr.mxu1 %v6599_v3  ;;  %v4409_v7 = vld [vmem:[%s7408_s11 + $0x120] sm:$0xff] }
 0x707   : > { %5378 = vmatprep.subr.mxu0 %v6599_v3  ;;  %5448 = vmatpush3.msra.mxu1 %v2932_v17 }
 0x708   : > { %5379 = vmatpush3.msra.mxu0 %v2662_v8  ;;  %5449 = vmatprep.subr.mxu1 %v6599_v3  ;;  %v4408_v8 = vld [vmem:[%s7408_s11 + $0x118] sm:$0xff] }
 0x709   : > { %5380 = vmatprep.subr.mxu0 %v6599_v3  ;;  %5450 = vmatpush3.msra.mxu1 %v2931_v19  ;;  %v4421_v19 = vld [vmem:[%s7409_s12] ss:$0 sm:$0xff] }
 0x70a   : > { %5381 = vmatpush3.msra.mxu0 %v2661_v9  ;;  %5451 = vmatprep.subr.mxu1 %v6599_v3  ;;  %v4407_v9 = vld [vmem:[%s7408_s11 + $0x110] sm:$0xff] }
 0x70b   : > { %5382 = vmatprep.subr.mxu0 %v6599_v3  ;;  %5452 = vmatpush3.msra.mxu1 %v2930_v21 }
 0x70c   : > { %5383 = vmatpush3.msra.mxu0 %v2660_v10  ;;  %5453 = vmatprep.subr.mxu1 %v6599_v3  ;;  %v4406_v10 = vld [vmem:[%s7408_s11 + $0x108] sm:$0xff] }
 0x70d   : > { %5384 = vmatprep.subr.mxu0 %v6599_v3  ;;  %5454 = vmatpush3.msra.mxu1 %v2929_v23 }
 0x70e   : > { %5385 = vmatpush3.msra.mxu0 %v2659_v11  ;;  %5455 = vmatprep.subr.mxu1 %v6599_v3  ;;  %v4405_v11 = vld [vmem:[%s7408_s11 + $0x100] sm:$0xff] }
 0x70f   : > { %5386 = vmatprep.subr.mxu0 %v6599_v3  ;;  %5456 = vmatpush3.msra.mxu1 %v2928_v25  ;;  %v4424_v25 = vld [vmem:[%s7418_s21 + $0x2] sm:$0x3] }
 0x710   : > { %5387 = vmatpush3.msra.mxu0 %v2658_v12  ;;  %5457 = vmatprep.subr.mxu1 %v6599_v3 }
 0x711   : > { %5389 = vmatmul.mubr.msk.f32.vlgmr.msra.gmra.mxu0 %vm869_vm0, %v2657_v13  ;;  %5410 = vmatprep.subr.mxu0 %v6599_v3 }
 0x712   : > { %5442 = vmatprep.mubr.msk.f32.mxu0 %vm5853_vm2, %v6599_v3  ;;  %5411 = vmatpush3.msra.mxu0 %v4404_v14 }
 0x713   : > { %5412 = vmatprep.subr.mxu0 %v6599_v3  ;;  %5458 = vmatpush3.msra.mxu1 %v2927_v27  ;;  %v4442_v27 = vld [vmem:[%s7419_s22 + $0xf8] sm:$0xff] }
 0x714   : > { %5413 = vmatpush3.msra.mxu0 %v4403_v16  ;;  %5459 = vmatprep.subr.mxu1 %v6599_v3 }
 0x715   : > { %5414 = vmatprep.subr.mxu0 %v6599_v3  ;;  %5460 = vmatpush3.msra.mxu1 %v2926_v29  ;;  %v4441_v29 = vld [vmem:[%s7419_s22 + $0xf0] sm:$0xff] }
 0x716   : > { %5415 = vmatpush3.msra.mxu0 %v4402_v18  ;;  %5461 = vmatprep.subr.mxu1 %v6599_v3 }
 0x717   : > { %5416 = vmatprep.subr.mxu0 %v6599_v3  ;;  %5462 = vmatpush3.msra.mxu1 %v2925_v31  ;;  %v4440_v31 = vld [vmem:[%s7419_s22 + $0xe8] sm:$0xff] }
 0x718   : > { %5417 = vmatpush3.msra.mxu0 %v4401_v20  ;;  %5463 = vmatprep.subr.mxu1 %v6599_v3 }
 0x719   : > { %5418 = vmatprep.subr.mxu0 %v6599_v3  ;;  %5464 = vmatpush3.msra.mxu1 %v2924_v33  ;;  %v4439_v33 = vld [vmem:[%s7419_s22 + $0xe0] sm:$0xff] }
 0x71a   : > { %5419 = vmatpush3.msra.mxu0 %v4400_v22  ;;  %5465 = vmatprep.subr.mxu1 %v6599_v3 }
 0x71b   : > { %5420 = vmatprep.subr.mxu0 %v6599_v3  ;;  %5466 = vmatpush3.msra.mxu1 %v2923_v35  ;;  %v4438_v35 = vld [vmem:[%s7419_s22 + $0xd8] sm:$0xff] }
 0x71c   : > { %5421 = vmatpush3.msra.mxu0 %v4399_v24  ;;  %5467 = vmatprep.subr.mxu1 %v6599_v3  ;;  %v3191_v24 = vld [vmem:[%s7418_s21] sm:$0x3] }
 0x71d   : > { %5422 = vmatprep.subr.mxu0 %v6599_v3  ;;  %5468 = vmatpush3.msra.mxu1 %v2922_v37  ;;  %v4437_v37 = vld [vmem:[%s7419_s22 + $0xd0] sm:$0xff] }
 0x71e   : > { %5423 = vmatpush3.msra.mxu0 %v4398_v26  ;;  %5469 = vmatprep.subr.mxu1 %v6599_v3  ;;  %v3361_v26 = vld [vmem:[%s7419_s22 + $0x78] sm:$0xff] }
 0x71f   : > { %5424 = vmatprep.subr.mxu0 %v6599_v3  ;;  %5470 = vmatpush3.msra.mxu1 %v2921_v39  ;;  %v4436_v39 = vld [vmem:[%s7419_s22 + $0xc8] sm:$0xff] }
 0x720   : > { %5425 = vmatpush3.msra.mxu0 %v4397_v28  ;;  %5471 = vmatprep.subr.mxu1 %v6599_v3  ;;  %v3360_v28 = vld [vmem:[%s7419_s22 + $0x70] sm:$0xff] }
 0x721   : > { %5426 = vmatprep.subr.mxu0 %v6599_v3  ;;  %5472 = vmatpush3.msra.mxu1 %v2920_v41  ;;  %v4435_v41 = vld [vmem:[%s7419_s22 + $0xc0] sm:$0xff] }
 0x722   : > { %5427 = vmatpush3.msra.mxu0 %v4396_v30  ;;  %5473 = vmatprep.subr.mxu1 %v6599_v3  ;;  %v3359_v30 = vld [vmem:[%s7419_s22 + $0x68] sm:$0xff] }
 0x723   : > { %5428 = vmatprep.subr.mxu0 %v6599_v3  ;;  %5474 = vmatpush3.msra.mxu1 %v2919_v43  ;;  %v4434_v43 = vld [vmem:[%s7419_s22 + $0xb8] sm:$0xff] }
 0x724   : > { %5429 = vmatpush3.msra.mxu0 %v4395_v32  ;;  %5475 = vmatprep.subr.mxu1 %v6599_v3  ;;  %v3358_v32 = vld [vmem:[%s7419_s22 + $0x60] sm:$0xff] }
 0x725   : > { %5430 = vmatprep.subr.mxu0 %v6599_v3  ;;  %5476 = vmatpush3.msra.mxu1 %v2918_v45  ;;  %v4433_v45 = vld [vmem:[%s7419_s22 + $0xb0] sm:$0xff] }
 0x726   : > { %5431 = vmatpush3.msra.mxu0 %v4394_v34  ;;  %5520 = vmatprep.subr.mxu1 %v6599_v3  ;;  %v3357_v34 = vld [vmem:[%s7419_s22 + $0x58] sm:$0xff] }
 0x727   : > { %5432 = vmatprep.subr.mxu0 %v6599_v3 }
 0x728   : > { %5433 = vmatpush3.msra.mxu0 %v4393_v36  ;;  %v3356_v36 = vld [vmem:[%s7419_s22 + $0x50] sm:$0xff] }
 0x729   : > { %5434 = vmatprep.subr.mxu0 %v6599_v3 }
 0x72a   : > { %5435 = vmatpush3.msra.mxu0 %v4392_v38  ;;  %v3355_v38 = vld [vmem:[%s7419_s22 + $0x48] sm:$0xff] }
 0x72b   : > { %5436 = vmatprep.subr.mxu0 %v6599_v3 }
 0x72c   : > { %5437 = vmatpush3.msra.mxu0 %v4391_v40  ;;  %v3354_v40 = vld [vmem:[%s7419_s22 + $0x40] sm:$0xff] }
 0x72d   : > { %5438 = vmatprep.subr.mxu0 %v6599_v3 }
 0x72e   : > { %5439 = vmatpush3.msra.mxu0 %v4390_v42  ;;  %v3353_v42 = vld [vmem:[%s7419_s22 + $0x38] sm:$0xff] }
 0x72f   : > { %5440 = vmatprep.subr.mxu0 %v6599_v3 }
 0x730   : > { %5441 = vmatpush3.msra.mxu0 %v4389_v44  ;;  %v3352_v44 = vld [vmem:[%s7419_s22 + $0x30] sm:$0xff] }
 0x731   : > { %5480 = vmatprep.subr.mxu0 %v6599_v3 }
 0x7c1   : > { %v2745_v46 = vpop.f32.mrf.mxu0 }
 0x7c2   : > { %v2901_v47 = vpop.f32.mrf.mxu1 }
 0x7c3   : > { %v5371_v48 = vpop.f32.mrf.mxu0 }
 0x7c4   : > { %v5409_v49 = vpop.f32.mrf.mxu1  ;;  %v3350_v48 = vld [vmem:[%s7419_s22 + $0x20] sm:$0xff] }
 0x7c5   : > { %v4431_v49 = vld [vmem:[%s7419_s22 + $0xa0] sm:$0xff] }
 0x7d1   : > { %v2818_v50 = vpop.f32.mrf.mxu0 }
 0x7d2   : > { %v2819_v51 = vadd.f32 %v2818_v50, %v2745_v46  ;;  %v3351_v46 = vld [vmem:[%s7419_s22 + $0x28] sm:$0xff]  ;;  %v3349_v50 = vld [vmem:[%s7419_s22 + $0x18] sm:$0xff] }
 0x7d3   : > { %v5390_v53 = vpop.f32.mrf.mxu0 }
 0x7d4   : > { %v2905_v54 = vadd.f32 %v2901_v47, %v2819_v51  ;;  %v4432_v47 = vld [vmem:[%s7419_s22 + $0xa8] sm:$0xff]  ;;  %v4430_v51 = vld [vmem:[%s7419_s22 + $0x98] sm:$0xff]  ;;  %v4429_v53 = vld [vmem:[%s7419_s22 + $0x90] sm:$0xff] }
 0x7d6   : > { %v2913_v55 = vadd.f32 %v4388_v52, %v2905_v54  ;;  %v3348_v52 = vld [vmem:[%s7419_s22 + $0x10] sm:$0xff]  ;;  %v3347_v54 = vld [vmem:[%s7419_s22 + $0x8] sm:$0xff] }
 0x7d8   : > { %v2914_v56 = vmax.f32 %v2913_v55, 0.0  ;;  %v4428_v55 = vld [vmem:[%s7419_s22 + $0x88] sm:$0xff] }
 0x7da   : > { %2916 = vst [vmem:[#allocation7 + $0x1] sm:$0xf] %v2914_v56  ;;  %v3346_v56 = vld [vmem:[%s7419_s22] sm:$0xff] }
 0x7e1   : > { %v2934_v58 = vld [vmem:[#allocation7 + $0x1] sm:$0xf] }
 0x7e2   : > { %v2917_v59 = vld [vmem:[#allocation7] sm:$0xf]  ;;  %5443 = vmatmul.mubr.f32.vlgmr.msra.gmra.mxu0 %v2934_v58 }
 0x7e3   : > { %5478 = vmatmul.mubr.f32.vlgmr.msra.gmra.mxu1 %v2917_v59  ;;  %5481 = vmatpush3.msra.mxu0 %v4420_v57  ;;  %v3092_v12 = vld [vmem:[#allocation7 + $0x2] sm:$0xf]  ;;  %v4427_v57 = vld [vmem:[%s7419_s22 + $0x80] sm:$0xff] }
 0x7e4   : > { %5512 = vmatprep.mubr.msk.f32.mxu0 %vm5853_vm2, %v6599_v3  ;;  %5482 = vmatprep.subr.mxu0 %v6599_v3 }
 0x7e5   : > { %5522 = vmatprep.mubr.msk.f32.mxu1 %vm5853_vm2, %v6599_v3  ;;  %5483 = vmatpush3.msra.mxu0 %v4419_v60 }
 0x7e6   : > { %5484 = vmatprep.subr.mxu0 %v6599_v3 }
 0x7e7   : > { %5485 = vmatpush3.msra.mxu0 %v4418_v61  ;;  %v3540_v61 = vld [vmem:[#allocation12 + $0x78] sm:$0xff] }
 0x7e8   : > { %5486 = vmatprep.subr.mxu0 %v6599_v3 }
 0x7e9   : > { %5487 = vmatpush3.msra.mxu0 %v4417_v62  ;;  %v3696_v62 = vld [vmem:[#allocation12 + $0xb8] sm:$0xff] }
 0x7ea   : > { %5488 = vmatprep.subr.mxu0 %v6599_v3 }
 0x7eb   : > { %5489 = vmatpush3.msra.mxu0 %v4416_v63 }
 0x7ec   : > { %5490 = vmatprep.subr.mxu0 %v6599_v3 }
 0x7ed   : > { %5491 = vmatpush3.msra.mxu0 %v4415_v1 }
 0x7ee   : > { %5492 = vmatprep.subr.mxu0 %v6599_v3 }
 0x7ef   : > { %5493 = vmatpush3.msra.mxu0 %v4414_v2  ;;  %v3539_v2 = vld [vmem:[#allocation12 + $0x70] sm:$0xff] }
 0x7f0   : > { %5494 = vmatprep.subr.mxu0 %v6599_v3 }
 0x7f1   : > { %5495 = vmatpush3.msra.mxu0 %v4413_v4  ;;  %v3695_v4 = vld [vmem:[#allocation12 + $0xb0] sm:$0xff] }
 0x7f2   : > { %5496 = vmatprep.subr.mxu0 %v6599_v3 }
 0x7f3   : > { %5497 = vmatpush3.msra.mxu0 %v4412_v5  ;;  %v3538_v5 = vld [vmem:[#allocation12 + $0x68] sm:$0xff] }
 0x7f4   : > { %5498 = vmatprep.subr.mxu0 %v6599_v3 }
 0x7f5   : > { %5499 = vmatpush3.msra.mxu0 %v4411_v0  ;;  %v3694_v0 = vld [vmem:[#allocation12 + $0xa8] sm:$0xff] }
 0x7f6   : > { %5500 = vmatprep.subr.mxu0 %v6599_v3 }
 0x7f7   : > { %5501 = vmatpush3.msra.mxu0 %v4410_v6  ;;  %v3537_v6 = vld [vmem:[#allocation12 + $0x60] sm:$0xff] }
 0x7f8   : > { %5502 = vmatprep.subr.mxu0 %v6599_v3 }
 0x7f9   : > { %5503 = vmatpush3.msra.mxu0 %v4409_v7  ;;  %v3693_v7 = vld [vmem:[#allocation12 + $0xa0] sm:$0xff] }
 0x7fa   : > { %5504 = vmatprep.subr.mxu0 %v6599_v3 }
 0x7fb   : > { %5505 = vmatpush3.msra.mxu0 %v4408_v8  ;;  %v3536_v8 = vld [vmem:[#allocation12 + $0x58] sm:$0xff] }
 0x7fc   : > { %5506 = vmatprep.subr.mxu0 %v6599_v3 }
 0x7fd   : > { %5507 = vmatpush3.msra.mxu0 %v4407_v9  ;;  %v3535_v9 = vld [vmem:[#allocation12 + $0x50] sm:$0xff] }
 0x7fe   : > { %5508 = vmatprep.subr.mxu0 %v6599_v3 }
 0x7ff   : > { %5509 = vmatpush3.msra.mxu0 %v4406_v10  ;;  %v3692_v10 = vld [vmem:[#allocation12 + $0x98] sm:$0xff] }
 0x800   : > { %5510 = vmatprep.subr.mxu0 %v6599_v3 }
 0x801   : > { %5511 = vmatpush3.msra.mxu0 %v4405_v11  ;;  %v3534_v11 = vld [vmem:[#allocation12 + $0x48] sm:$0xff] }
 0x802   : > { %5513 = vmatmul.mubr.f32.vlgmr.msra.gmra.mxu0 %v3092_v12  ;;  %5515 = vmatprep.subr.mxu0 %v6599_v3  ;;  %v3691_v12 = vld [vmem:[#allocation12 + $0x90] sm:$0xff] }
 0x803   : > { %5517 = vmatprep.mubr.msk.f32.mxu0 %vm5853_vm2, %v6599_v3 }
 0x8a2   : > { %v3018_v13 = vpop.f32.mrf.mxu0 }
 0x8a3   : > { %v3088_v14 = vpop.f32.mrf.mxu1 }
 0x8a4   : > { %v5444_v15 = vpop.f32.mrf.mxu0  ;;  %v3089_v17 = vadd.f32 %v3088_v14, %v3018_v13  ;;  %v3690_v13 = vld [vmem:[#allocation12 + $0x88] sm:$0xff]  ;;  %v3533_v14 = vld [vmem:[#allocation12 + $0x40] sm:$0xff] }
 0x8a5   : > { %v5479_v16 = vpop.f32.mrf.mxu1  ;;  %v3689_v15 = vld [vmem:[#allocation12 + $0x80] sm:$0xff] }
 0x8c2   : > { %v3176_v18 = vpop.f32.mrf.mxu0 }
 0x8c3   : > { %v3180_v20 = vadd.f32 %v3176_v18, %v3089_v17 }
 0x8c4   : > { %v5514_v21 = vpop.f32.mrf.mxu0 }
 0x8c5   : > { %v3188_v22 = vadd.f32 %v4421_v19, %v3180_v20  ;;  %v3530_v21 = vld [vmem:[#allocation12 + $0x38] sm:$0xff] }
 0x8c7   : > { %v3189_v23 = vmax.f32 %v3188_v22, 0.0 }
 0x8c9   : > { %3190 = vst [vmem:[%s862_s9] sm:$0xf] %v3189_v23  ;;  %5516 = vmatpush3.msk.msra.mxu0 %vm3196_vm7, %v3189_v23  ;;  %5521 = vmatpush3.msk.msra.mxu1 %vm3196_vm7, %v3189_v23 }
 0x8ca   : > { %5518 = vmatmul.mubr.msk.f32.vlgmr.msra.gmra.mxu0 %vm3192_vm8, %v3191_v24  ;;  %5523 = vmatmul.mubr.msk.f32.vlgmr.msra.gmra.mxu1 %vm3192_vm8, %v4424_v25  ;;  %v3529_v24 = vld [vmem:[#allocation12 + $0x30] sm:$0xff]  ;;  %v3528_v25 = vld [vmem:[#allocation12 + $0x28] sm:$0xff] }
 0x8cb   : > { %5525 = vmatprep.subr.mxu1 %v6599_v3  ;;  %5560 = vmatprep.subr.mxu0 %v6599_v3 }
 0x8cc   : > { %5526 = vmatpush3.msra.mxu1 %v3361_v26  ;;  %5561 = vmatpush3.msra.mxu0 %v4442_v27  ;;  %v3527_v26 = vld [vmem:[#allocation12 + $0x20] sm:$0xff]  ;;  %v3526_v27 = vld [vmem:[#allocation12 + $0x18] sm:$0xff] }
 0x8cd   : > { %5527 = vmatprep.subr.mxu1 %v6599_v3  ;;  %5562 = vmatprep.subr.mxu0 %v6599_v3 }
 0x8ce   : > { %5528 = vmatpush3.msra.mxu1 %v3360_v28  ;;  %5563 = vmatpush3.msra.mxu0 %v4441_v29  ;;  %v3525_v28 = vld [vmem:[#allocation12 + $0x10] sm:$0xff]  ;;  %v3524_v29 = vld [vmem:[#allocation12 + $0x8] sm:$0xff] }
 0x8cf   : > { %5529 = vmatprep.subr.mxu1 %v6599_v3  ;;  %5564 = vmatprep.subr.mxu0 %v6599_v3 }
 0x8d0   : > { %5530 = vmatpush3.msra.mxu1 %v3359_v30  ;;  %5565 = vmatpush3.msra.mxu0 %v4440_v31  ;;  %v3523_v30 = vld [vmem:[#allocation12] sm:$0xff] }
 0x8d1   : > { %5531 = vmatprep.subr.mxu1 %v6599_v3  ;;  %5566 = vmatprep.subr.mxu0 %v6599_v3 }
 0x8d2   : > { %5532 = vmatpush3.msra.mxu1 %v3358_v32  ;;  %5567 = vmatpush3.msra.mxu0 %v4439_v33  ;;  %v3800_v32 = vld [vmem:[#allocation14 + $0x78] sm:$0xff] }
 0x8d3   : > { %5533 = vmatprep.subr.mxu1 %v6599_v3  ;;  %5568 = vmatprep.subr.mxu0 %v6599_v3  ;;  %v3790_v33 = vld [vmem:[#allocation14 + $0x38] sm:$0xff] }
 0x8d4   : > { %5534 = vmatpush3.msra.mxu1 %v3357_v34  ;;  %5569 = vmatpush3.msra.mxu0 %v4438_v35  ;;  %v3799_v34 = vld [vmem:[#allocation14 + $0x70] sm:$0xff] }
 0x8d5   : > { %5535 = vmatprep.subr.mxu1 %v6599_v3  ;;  %5570 = vmatprep.subr.mxu0 %v6599_v3  ;;  %v3789_v35 = vld [vmem:[#allocation14 + $0x30] sm:$0xff] }
 0x8d6   : > { %5536 = vmatpush3.msra.mxu1 %v3356_v36  ;;  %5571 = vmatpush3.msra.mxu0 %v4437_v37  ;;  %v3798_v36 = vld [vmem:[#allocation14 + $0x68] sm:$0xff] }
 0x8d7   : > { %5537 = vmatprep.subr.mxu1 %v6599_v3  ;;  %5572 = vmatprep.subr.mxu0 %v6599_v3  ;;  %v3788_v37 = vld [vmem:[#allocation14 + $0x28] sm:$0xff] }
 0x8d8   : > { %5538 = vmatpush3.msra.mxu1 %v3355_v38  ;;  %5573 = vmatpush3.msra.mxu0 %v4436_v39  ;;  %v3797_v38 = vld [vmem:[#allocation14 + $0x60] sm:$0xff] }
 0x8d9   : > { %5539 = vmatprep.subr.mxu1 %v6599_v3  ;;  %5574 = vmatprep.subr.mxu0 %v6599_v3  ;;  %v3787_v39 = vld [vmem:[#allocation14 + $0x20] sm:$0xff] }
 0x8da   : > { %5540 = vmatpush3.msra.mxu1 %v3354_v40  ;;  %5575 = vmatpush3.msra.mxu0 %v4435_v41  ;;  %v3796_v40 = vld [vmem:[#allocation14 + $0x58] sm:$0xff] }
 0x8db   : > { %5541 = vmatprep.subr.mxu1 %v6599_v3  ;;  %5576 = vmatprep.subr.mxu0 %v6599_v3  ;;  %v3786_v41 = vld [vmem:[#allocation14 + $0x18] sm:$0xff] }
 0x8dc   : > { %5542 = vmatpush3.msra.mxu1 %v3353_v42  ;;  %5577 = vmatpush3.msra.mxu0 %v4434_v43  ;;  %v3795_v42 = vld [vmem:[#allocation14 + $0x50] sm:$0xff] }
 0x8dd   : > { %5543 = vmatprep.subr.mxu1 %v6599_v3  ;;  %5578 = vmatprep.subr.mxu0 %v6599_v3  ;;  %v3785_v43 = vld [vmem:[#allocation14 + $0x10] sm:$0xff] }
 0x8de   : > { %5544 = vmatpush3.msra.mxu1 %v3352_v44  ;;  %5579 = vmatpush3.msra.mxu0 %v4433_v45  ;;  %v3794_v44 = vld [vmem:[#allocation14 + $0x48] sm:$0xff] }
 0x8df   : > { %5545 = vmatprep.subr.mxu1 %v6599_v3  ;;  %5580 = vmatprep.subr.mxu0 %v6599_v3  ;;  %v3784_v45 = vld [vmem:[#allocation14 + $0x8] sm:$0xff] }
 0x8e0   : > { %5546 = vmatpush3.msra.mxu1 %v3351_v46  ;;  %5581 = vmatpush3.msra.mxu0 %v4432_v47  ;;  %v3793_v46 = vld [vmem:[#allocation14 + $0x40] sm:$0xff] }
 0x8e1   : > { %5547 = vmatprep.subr.mxu1 %v6599_v3  ;;  %5582 = vmatprep.subr.mxu0 %v6599_v3  ;;  %v3783_v47 = vld [vmem:[#allocation14] sm:$0xff] }
 0x8e2   : > { %5548 = vmatpush3.msra.mxu1 %v3350_v48  ;;  %5583 = vmatpush3.msra.mxu0 %v4431_v49 }
 0x8e3   : > { %5549 = vmatprep.subr.mxu1 %v6599_v3  ;;  %5584 = vmatprep.subr.mxu0 %v6599_v3 }
 0x8e4   : > { %5550 = vmatpush3.msra.mxu1 %v3349_v50  ;;  %5585 = vmatpush3.msra.mxu0 %v4430_v51 }
 0x8e5   : > { %5551 = vmatprep.subr.mxu1 %v6599_v3  ;;  %5586 = vmatprep.subr.mxu0 %v6599_v3 }
 0x8e6   : > { %5552 = vmatpush3.msra.mxu1 %v3348_v52  ;;  %5587 = vmatpush3.msra.mxu0 %v4429_v53 }
 0x8e7   : > { %5553 = vmatprep.subr.mxu1 %v6599_v3  ;;  %5588 = vmatprep.subr.mxu0 %v6599_v3 }
 0x8e8   : > { %5557 = vmatprep.mubr.msk.f32.mxu1 %vm5853_vm2, %v6599_v3  ;;  %5592 = vmatprep.mubr.msk.f32.mxu0 %vm5853_vm2, %v6599_v3 }
 0x8e9   : > { %5554 = vmatpush3.msra.mxu1 %v3347_v54  ;;  %5589 = vmatpush3.msra.mxu0 %v4428_v55  ;;  %v4446_v54 = vld [vmem:[%s7411_s14] ss:$0 sm:$0xff] }
 0x8ea   : > { %5555 = vmatprep.subr.mxu1 %v6599_v3  ;;  %5590 = vmatprep.subr.mxu0 %v6599_v3 }
 0x8eb   : > { %5556 = vmatpush3.msra.mxu1 %v3346_v56  ;;  %5591 = vmatpush3.msra.mxu0 %v4427_v57 }
 0x8ec   : > { %5595 = vmatprep.subr.mxu1 %v6599_v3  ;;  %5633 = vmatprep.subr.mxu0 %v6599_v3 }
 0x98a   : > { %v3266_v58 = vpop.f32.mrf.mxu0  ;;  %v3341_v59 = vpop.f32.mrf.mxu1 }
 0x98b   : > { %v3345_v60 = vmax.f32 %v3266_v58, %v3341_v59  ;;  %v3956_v59 = vld [vmem:[#allocation14 + $0xb8] sm:$0xff] }
 0x98c   : > { %v5519_v63 = vpop.f32.mrf.mxu0  ;;  %v5524_v1 = vpop.f32.mrf.mxu1 }
 0x98d   : > { %5558 = vmatmul.mubr.f32.vlgmr.msra.gmra.mxu1 %v3345_v60  ;;  %5593 = vmatmul.mubr.f32.vlgmr.msra.gmra.mxu0 %v3345_v60  ;;  %v3954_v63 = vld [vmem:[#allocation14 + $0xa8] sm:$0xff]  ;;  %v3953_v1 = vld [vmem:[#allocation14 + $0xa0] sm:$0xff] }
 0x98e   : > { %5596 = vmatpush3.msra.mxu1 %v3540_v61  ;;  %5634 = vmatpush3.msra.mxu0 %v3696_v62  ;;  %v3955_v62 = vld [vmem:[#allocation14 + $0xb0] sm:$0xff] }
 0x98f   : > { %5597 = vmatprep.subr.mxu1 %v6599_v3  ;;  %5635 = vmatprep.subr.mxu0 %v6599_v3 }
 0x990   : > { %5598 = vmatpush3.msra.mxu1 %v3539_v2  ;;  %5636 = vmatpush3.msra.mxu0 %v3695_v4  ;;  %v3952_v2 = vld [vmem:[#allocation14 + $0x98] sm:$0xff]  ;;  %v3951_v4 = vld [vmem:[#allocation14 + $0x90] sm:$0xff] }
 0x991   : > { %5599 = vmatprep.subr.mxu1 %v6599_v3  ;;  %5637 = vmatprep.subr.mxu0 %v6599_v3 }
 0x992   : > { %5600 = vmatpush3.msra.mxu1 %v3538_v5  ;;  %5611 = vmatprep.mubr.msk.f32.mxu1 %vm5853_vm2, %v6599_v3  ;;  %v3950_v5 = vld [vmem:[#allocation14 + $0x88] sm:$0xff] }
 0x993   : > { %5601 = vmatprep.subr.mxu1 %v6599_v3  ;;  %5649 = vmatprep.mubr.msk.f32.mxu0 %vm5853_vm2, %v6599_v3 }
 0x994   : > { %5638 = vmatpush3.msra.mxu0 %v3694_v0  ;;  %5602 = vmatpush3.msra.mxu1 %v3537_v6  ;;  %v3949_v0 = vld [vmem:[#allocation14 + $0x80] sm:$0xff] }
 0x995   : > { %5639 = vmatprep.subr.mxu0 %v6599_v3  ;;  %5603 = vmatprep.subr.mxu1 %v6599_v3 }
 0x996   : > { %5640 = vmatpush3.msra.mxu0 %v3693_v7  ;;  %5604 = vmatpush3.msra.mxu1 %v3536_v8 }
 0x997   : > { %5641 = vmatprep.subr.mxu0 %v6599_v3  ;;  %5605 = vmatprep.subr.mxu1 %v6599_v3 }
 0x998   : > { %5642 = vmatpush3.msra.mxu0 %v3692_v10  ;;  %5606 = vmatpush3.msra.mxu1 %v3535_v9 }
 0x999   : > { %5643 = vmatprep.subr.mxu0 %v6599_v3  ;;  %5607 = vmatprep.subr.mxu1 %v6599_v3 }
 0x99a   : > { %5644 = vmatpush3.msra.mxu0 %v3691_v12  ;;  %5608 = vmatpush3.msra.mxu1 %v3534_v11 }
 0x99b   : > { %5645 = vmatprep.subr.mxu0 %v6599_v3  ;;  %5609 = vmatprep.subr.mxu1 %v6599_v3 }
 0x99c   : > { %5646 = vmatpush3.msra.mxu0 %v3690_v13  ;;  %5610 = vmatpush3.msra.mxu1 %v3533_v14  ;;  %v4450_v13 = vld [vmem:[%s7413_s16] ss:$0 sm:$0xff] }
 0x99d   : > { %5647 = vmatprep.subr.mxu0 %v6599_v3  ;;  %5614 = vmatprep.subr.mxu1 %v6599_v3 }
 0x99e   : > { %5648 = vmatpush3.msra.mxu0 %v3689_v15 }
 0x99f   : > { %5671 = vmatprep.subr.mxu0 %v6599_v3 }
 0xa4d   : > { %v3428_v16 = vpop.f32.mrf.mxu1  ;;  %v3515_v17 = vpop.f32.mrf.mxu0 }
 0xa4e   : > { %v3519_v18 = vmax.f32 %v3428_v16, %v3515_v17 }
 0xa4f   : > { %v5559_v19 = vpop.f32.mrf.mxu1  ;;  %v5594_v20 = vpop.f32.mrf.mxu0 }
 0xa50   : > { %3521 = vst.msk [vmem:[#allocation8 + $0x1] sm:$0x3] %vm872_vm1, %v3519_v18 }
 0xa57   : > { %v3531_v22 = vld [vmem:[#allocation8 + $0x1] sm:$0x3] }
 0xa58   : > { %v3687_v23 = vld [vmem:[#allocation8 + $0x2] sm:$0x3]  ;;  %5612 = vmatmul.mubr.msk.f32.vlgmr.msra.gmra.mxu1 %vm869_vm0, %v3531_v22  ;;  %v3522_v31 = vld [vmem:[#allocation8] sm:$0x3] }
 0xa59   : > { %5650 = vmatmul.mubr.msk.f32.vlgmr.msra.gmra.mxu0 %vm869_vm0, %v3687_v23  ;;  %5615 = vmatpush3.msra.mxu1 %v3530_v21 }
 0xa5a   : > { %5630 = vmatprep.mubr.msk.f32.mxu1 %vm5853_vm2, %v6599_v3  ;;  %5616 = vmatprep.subr.mxu1 %v6599_v3 }
 0xa5b   : > { %5687 = vmatprep.mubr.msk.f32.mxu0 %vm5853_vm2, %v6599_v3  ;;  %5617 = vmatpush3.msra.mxu1 %v3529_v24 }
 0xa5c   : > { %5618 = vmatprep.subr.mxu1 %v6599_v3  ;;  %5672 = vmatpush3.msra.mxu0 %v3790_v33 }
 0xa5d   : > { %5619 = vmatpush3.msra.mxu1 %v3528_v25  ;;  %5673 = vmatprep.subr.mxu0 %v6599_v3 }
 0xa5e   : > { %5620 = vmatprep.subr.mxu1 %v6599_v3  ;;  %5674 = vmatpush3.msra.mxu0 %v3789_v35 }
 0xa5f   : > { %5621 = vmatpush3.msra.mxu1 %v3527_v26  ;;  %5675 = vmatprep.subr.mxu0 %v6599_v3 }
 0xa60   : > { %5622 = vmatprep.subr.mxu1 %v6599_v3  ;;  %5676 = vmatpush3.msra.mxu0 %v3788_v37 }
 0xa61   : > { %5623 = vmatpush3.msra.mxu1 %v3526_v27  ;;  %5677 = vmatprep.subr.mxu0 %v6599_v3 }
 0xa62   : > { %5624 = vmatprep.subr.mxu1 %v6599_v3  ;;  %5678 = vmatpush3.msra.mxu0 %v3787_v39 }
 0xa63   : > { %5625 = vmatpush3.msra.mxu1 %v3525_v28  ;;  %5679 = vmatprep.subr.mxu0 %v6599_v3 }
 0xa64   : > { %5626 = vmatprep.subr.mxu1 %v6599_v3  ;;  %5680 = vmatpush3.msra.mxu0 %v3786_v41 }
 0xa65   : > { %5627 = vmatpush3.msra.mxu1 %v3524_v29  ;;  %5681 = vmatprep.subr.mxu0 %v6599_v3 }
 0xa66   : > { %5628 = vmatprep.subr.mxu1 %v6599_v3  ;;  %5682 = vmatpush3.msra.mxu0 %v3785_v43 }
 0xa67   : > { %5629 = vmatpush3.msra.mxu1 %v3523_v30  ;;  %5683 = vmatprep.subr.mxu0 %v6599_v3 }
 0xa68   : > { %5631 = vmatmul.mubr.msk.f32.vlgmr.msra.gmra.mxu1 %vm869_vm0, %v3522_v31  ;;  %5652 = vmatprep.subr.mxu1 %v6599_v3 }
 0xa69   : > { %5668 = vmatprep.mubr.msk.f32.mxu1 %vm5853_vm2, %v6599_v3  ;;  %5653 = vmatpush3.msra.mxu1 %v3800_v32 }
 0xa6a   : > { %5654 = vmatprep.subr.mxu1 %v6599_v3  ;;  %5684 = vmatpush3.msra.mxu0 %v3784_v45 }
 0xa6b   : > { %5655 = vmatpush3.msra.mxu1 %v3799_v34  ;;  %5685 = vmatprep.subr.mxu0 %v6599_v3 }
 0xa6c   : > { %5656 = vmatprep.subr.mxu1 %v6599_v3  ;;  %5686 = vmatpush3.msra.mxu0 %v3783_v47 }
 0xa6d   : > { %5657 = vmatpush3.msra.mxu1 %v3798_v36 }
 0xa6e   : > { %5658 = vmatprep.subr.mxu1 %v6599_v3 }
 0xa6f   : > { %5659 = vmatpush3.msra.mxu1 %v3797_v38 }
 0xa70   : > { %5660 = vmatprep.subr.mxu1 %v6599_v3 }
 0xa71   : > { %5661 = vmatpush3.msra.mxu1 %v3796_v40 }
 0xa72   : > { %5662 = vmatprep.subr.mxu1 %v6599_v3 }
 0xa73   : > { %5663 = vmatpush3.msra.mxu1 %v3795_v42 }
 0xa74   : > { %5664 = vmatprep.subr.mxu1 %v6599_v3 }
 0xa75   : > { %5665 = vmatpush3.msra.mxu1 %v3794_v44 }
 0xa76   : > { %5666 = vmatprep.subr.mxu1 %v6599_v3 }
 0xa77   : > { %5667 = vmatpush3.msra.mxu1 %v3793_v46 }
 0xa78   : > { %5690 = vmatprep.subr.mxu1 %v6599_v3 }
 0xb18   : > { %v3610_v48 = vpop.f32.mrf.mxu1 }
 0xb19   : > { %v3766_v49 = vpop.f32.mrf.mxu0 }
 0xb1a   : > { %v5613_v50 = vpop.f32.mrf.mxu1 }
 0xb1b   : > { %v5651_v51 = vpop.f32.mrf.mxu0 }
 0xb28   : > { %v3683_v52 = vpop.f32.mrf.mxu1 }
 0xb29   : > { %v3684_v53 = vadd.f32 %v3683_v52, %v3610_v48 }
 0xb2a   : > { %v5632_v55 = vpop.f32.mrf.mxu1 }
 0xb2b   : > { %v3770_v56 = vadd.f32 %v3766_v49, %v3684_v53 }
 0xb2d   : > { %v3778_v57 = vadd.f32 %v4446_v54, %v3770_v56 }
 0xb2f   : > { %v3779_v58 = vmax.f32 %v3778_v57, 0.0 }
 0xb31   : > { %3781 = vst.msk [vmem:[#allocation9 + $0x1] sm:$0x3] %vm872_vm1, %v3779_v58 }
 0xb38   : > { %v3791_v60 = vld [vmem:[#allocation9 + $0x1] sm:$0x3] }
 0xb39   : > { %v3782_v61 = vld [vmem:[#allocation9] sm:$0x3]  ;;  %5669 = vmatmul.mubr.msk.f32.vlgmr.msra.gmra.mxu1 %vm869_vm0, %v3791_v60  ;;  %v3947_v6 = vld [vmem:[#allocation9 + $0x2] sm:$0x3] }
 0xb3a   : > { %5688 = vmatmul.mubr.msk.f32.vlgmr.msra.gmra.mxu0 %vm869_vm0, %v3782_v61  ;;  %5691 = vmatpush3.msra.mxu1 %v3956_v59 }
 0xb3b   : > { %5706 = vmatprep.mubr.msk.f32.mxu1 %vm5853_vm2, %v6599_v3  ;;  %5692 = vmatprep.subr.mxu1 %v6599_v3 }
 0xb3c   : > { %5693 = vmatpush3.msra.mxu1 %v3955_v62 }
 0xb3d   : > { %5694 = vmatprep.subr.mxu1 %v6599_v3 }
 0xb3e   : > { %5695 = vmatpush3.msra.mxu1 %v3954_v63 }
 0xb3f   : > { %5696 = vmatprep.subr.mxu1 %v6599_v3 }
 0xb40   : > { %5697 = vmatpush3.msra.mxu1 %v3953_v1 }
 0xb41   : > { %5698 = vmatprep.subr.mxu1 %v6599_v3 }
 0xb42   : > { %5699 = vmatpush3.msra.mxu1 %v3952_v2 }
 0xb43   : > { %5700 = vmatprep.subr.mxu1 %v6599_v3 }
 0xb44   : > { %5701 = vmatpush3.msra.mxu1 %v3951_v4 }
 0xb45   : > { %5702 = vmatprep.subr.mxu1 %v6599_v3 }
 0xb46   : > { %5703 = vmatpush3.msra.mxu1 %v3950_v5 }
 0xb47   : > { %5704 = vmatprep.subr.mxu1 %v6599_v3 }
 0xb48   : > { %5705 = vmatpush3.msra.mxu1 %v3949_v0 }
 0xb49   : > { %5707 = vmatmul.mubr.msk.f32.vlgmr.msra.gmra.mxu1 %vm869_vm0, %v3947_v6 }
 0xbf9   : > { %v3870_v7 = vpop.f32.mrf.mxu1 }
 0xbfa   : > { %v3943_v8 = vpop.f32.mrf.mxu0 }
 0xbfb   : > { %v5670_v9 = vpop.f32.mrf.mxu1  ;;  %v3944_v11 = vadd.f32 %v3943_v8, %v3870_v7 }
 0xbfc   : > { %v5689_v10 = vpop.f32.mrf.mxu0 }
 0xc09   : > { %v4026_v12 = vpop.f32.mrf.mxu1 }
 0xc0a   : > { %v4030_v14 = vadd.f32 %v4026_v12, %v3944_v11 }
 0xc0b   : > { %v5708_v15 = vpop.f32.mrf.mxu1 }
 0xc0c   : > { %v4038_v16 = vadd.f32 %v4450_v13, %v4030_v14 }
 0xc0e   : > { %v4039_v3 = vmax.f32 %v4038_v16, 0.0 }
 0xc10   : > { %4040 = vst.msk [vmem:[%s866_s0] sm:$0x3] %vm872_vm1, %v4039_v3 }
 0xc11 PF: > { %s39_s27 = sadd.s32 1, %s5845_s27  }
 0xc12   : > { %p36_p2 = scmp.ge.s32.totalorder %s39_s27, 4  }
 0xc14   :  { %38 = sbr.rel (!%p36_p2) target bundleno = 14 (0xe), region = 213 }
 0xc19   :  { %4104 = vsyncpa [#allocation11], 1 }
 0xc1a   :  { %4106 = vsyncpa [#allocation11 + $0x1], 1 }
 0xc1b   :  { %4107 = vsyncpa [#allocation13], 1 }

</bundles_post_ra>
